<compile_context>
chip_gen: v6e
topology: v6e:2x2x1
jax: 0.10.0
libtpu: 0.0.40
codegen_flags: <defaults>
</compile_context>

<pallas_src>
import functools

import jax
import jax.numpy as jnp
from jax.experimental import pallas as pl
from jax.experimental.pallas import tpu as pltpu


# ----------------------------------------------------------------------------- kernels
def _conv_lrelu_kernel(p_ref, w_ref, b_ref, o_ref):
    """layer0: out^T = LeakyReLU_0.2(W @ P^T + b)."""
    y = jnp.dot(w_ref[...], p_ref[...], preferred_element_type=jnp.float32) + b_ref[...]
    o_ref[...] = jnp.where(y > 0, y, 0.2 * y).astype(o_ref.dtype)


def _conv_bn_lrelu_kernel(p_ref, w_ref, g_ref, b_ref, o_ref, *, eps):
    """layers1-2: out^T = LeakyReLU_0.2(BatchNorm_batchstats(W @ P^T)) fused in one kernel."""
    y = jnp.dot(w_ref[...], p_ref[...], preferred_element_type=jnp.float32)   # (Cout, M)
    inv_m = 1.0 / y.shape[1]
    mean = jnp.sum(y, axis=1, keepdims=True) * inv_m
    var = jnp.maximum(jnp.sum(y * y, axis=1, keepdims=True) * inv_m - mean * mean, 0.0)
    yn = (y - mean) * jax.lax.rsqrt(var + eps) * g_ref[...] + b_ref[...]
    o_ref[...] = jnp.where(yn > 0, yn, 0.2 * yn).astype(o_ref.dtype)


def _conv_bn_lrelu_head_kernel(p_ref, w_ref, g_ref, b_ref, w4_ref, sel_ref, b4_ref,
                               o_ref, *, eps):
    """layer3 (Conv+BN+LeakyReLU) fused with layer4 (4x4 valid conv -> 1 value per sample).

    y3^T is (C3, N*16) with column index m = n*16 + (oh*4 + ow).  layer4 is
    out[n] = b4 + sum_{c,s} w4[c, s] * y3^T[c, n*16 + s], computed with a tiled-w4
    elementwise product, a (M, N) block-diagonal selector matmul (stays on the MXU,
    avoids an in-kernel lane->sublane transpose), and a sublane reduce.
    """
    y = jnp.dot(w_ref[...], p_ref[...], preferred_element_type=jnp.float32)   # (C3, N*16)
    inv_m = 1.0 / y.shape[1]
    mean = jnp.sum(y, axis=1, keepdims=True) * inv_m
    var = jnp.maximum(jnp.sum(y * y, axis=1, keepdims=True) * inv_m - mean * mean, 0.0)
    yn = (y - mean) * jax.lax.rsqrt(var + eps) * g_ref[...] + b_ref[...]
    y3 = jnp.where(yn > 0, yn, 0.2 * yn)                                      # (C3, N*16)

    prod = y3 * w4_ref[...]                                                   # (C3, N*16)
    per_sample = jnp.dot(prod, sel_ref[...], preferred_element_type=jnp.float32)  # (C3, N)
    o_ref[...] = (jnp.sum(per_sample, axis=0, keepdims=True)
                  + b4_ref[...]).astype(o_ref.dtype)                          # (1, N)


# ----------------------------------------------------------------------------- wrappers
def _pick_tile_m(m):
    """Largest lane-aligned tile that divides M (keeps stores unmasked, tiles big)."""
    for t in (2048, 1024, 512, 256, 128):
        if m > t and m % t == 0:
            return t
    return m


def conv_lrelu(pT, w2d, bias):
    """pT: (K, M), w2d: (Cout, K), bias: (Cout,) -> (Cout, M)."""
    Cout, K = w2d.shape
    M = pT.shape[1]
    tile_m = _pick_tile_m(M)
    grid = (M // tile_m,)
    return pl.pallas_call(
        _conv_lrelu_kernel,
        out_shape=jax.ShapeDtypeStruct((Cout, M), jnp.float32),
        grid=grid,
        in_specs=[pl.BlockSpec((K, tile_m), lambda i: (0, i)),
                  pl.BlockSpec((Cout, K), lambda i: (0, 0)),
                  pl.BlockSpec((Cout, 1), lambda i: (0, 0))],
        out_specs=pl.BlockSpec((Cout, tile_m), lambda i: (0, i)),
        compiler_params=pltpu.CompilerParams(dimension_semantics=("parallel",)),
    )(pT, w2d, bias.reshape(Cout, 1))


def conv_bn_lrelu(pT, w2d, gamma, beta, *, eps):
    """Fused conv + BatchNorm(batch stats) + LeakyReLU.  Full-M block (stats need all rows)."""
    Cout, K = w2d.shape
    M = pT.shape[1]
    kernel = functools.partial(_conv_bn_lrelu_kernel, eps=eps)
    return pl.pallas_call(
        kernel,
        out_shape=jax.ShapeDtypeStruct((Cout, M), jnp.float32),
        grid=(1,),
        in_specs=[pl.BlockSpec((K, M), lambda i: (0, 0)),
                  pl.BlockSpec((Cout, K), lambda i: (0, 0)),
                  pl.BlockSpec((Cout, 1), lambda i: (0, 0)),
                  pl.BlockSpec((Cout, 1), lambda i: (0, 0))],
        out_specs=pl.BlockSpec((Cout, M), lambda i: (0, 0)),
    )(pT, w2d, gamma.reshape(Cout, 1), beta.reshape(Cout, 1))


def conv_bn_lrelu_head(pT, w2d, gamma, beta, w4, b4, *, n_batch, eps):
    """Fused layer3 (conv+BN+LeakyReLU) and layer4 (4x4 valid conv).  Returns (1, N)."""
    Cout, K = w2d.shape
    M = pT.shape[1]            # n_batch * 16
    S = M // n_batch           # 16 spatial positions of the 4x4 head conv
    w4f = w4.reshape(Cout, S)                                            # (C3, 16)
    w4rep = jnp.tile(w4f, (1, n_batch))                                  # (C3, N*16)
    sel = jnp.repeat(jnp.eye(n_batch, dtype=jnp.float32), S, axis=0)     # (N*16, N)
    kernel = functools.partial(_conv_bn_lrelu_head_kernel, eps=eps)
    return pl.pallas_call(
        kernel,
        out_shape=jax.ShapeDtypeStruct((1, n_batch), jnp.float32),
        grid=(1,),
        in_specs=[pl.BlockSpec((K, M), lambda i: (0, 0)),
                  pl.BlockSpec((Cout, K), lambda i: (0, 0)),
                  pl.BlockSpec((Cout, 1), lambda i: (0, 0)),
                  pl.BlockSpec((Cout, 1), lambda i: (0, 0)),
                  pl.BlockSpec((Cout, M), lambda i: (0, 0)),
                  pl.BlockSpec((M, n_batch), lambda i: (0, 0)),
                  pl.BlockSpec((1, 1), lambda i: (0, 0))],
        out_specs=pl.BlockSpec((1, n_batch), lambda i: (0, 0)),
    )(pT, w2d, gamma.reshape(Cout, 1), beta.reshape(Cout, 1), w4rep, sel, b4.reshape(1, 1))


# ----------------------------------------------------------------------------- glue
def extract_patches(x_cnhw, kh, kw, stride, pad):
    """x: (C, N, H, W) -> (patches^T (C*KH*KW, N*OH*OW), OH, OW), K ordered (Cin, KH, KW)."""
    _, N, _, _ = x_cnhw.shape
    p = jax.lax.conv_general_dilated_patches(
        x_cnhw, filter_shape=(kh, kw), window_strides=(stride, stride),
        padding=((pad, pad), (pad, pad)),
        dimension_numbers=("CNHW", "OIHW", "CNHW"))
    K, _, OH, OW = p.shape                     # feature index = c*KH*KW + kh*KW + kw
    return p.reshape(K, N * OH * OW), OH, OW


# ----------------------------------------------------------------------------- model
def init_params(key, nch=3, nch_d=16):
    """Synthetic DCGAN-style params: conv ~ N(0, 0.02), BN gamma=1, beta=0, bias=0."""
    chans = [nch, nch_d, nch_d * 2, nch_d * 4, nch_d * 8, 1]
    params = {}
    keys = jax.random.split(key, 5)
    for li in range(5):
        cin, cout = chans[li], chans[li + 1]
        params[f"w{li}"] = 0.02 * jax.random.normal(keys[li], (cout, cin, 4, 4), jnp.float32)
        params[f"b{li}"] = jnp.zeros((cout,), jnp.float32)
    for li in (1, 2, 3):
        params[f"gamma{li}"] = jnp.ones((chans[li + 1],), jnp.float32)
        params[f"beta{li}"] = jnp.zeros((chans[li + 1],), jnp.float32)
    return params


def discriminator_forward(x, params, eps=1e-5):
    """x: (N, nch, 64, 64) float32 NCHW -> discriminator signal x.squeeze() (shape (N,))."""
    n = x.shape[0]
    a = jnp.transpose(x, (1, 0, 2, 3))                     # NCHW -> CNHW, kept through net

    # layer0: Conv(4,2,1) + LeakyReLU(0.2)   (one fused pallas_call)
    p, oh, ow = extract_patches(a, 4, 4, 2, 1)
    w0 = params["w0"]
    y = conv_lrelu(p, w0.reshape(w0.shape[0], -1), params["b0"])
    a = y.reshape(-1, n, oh, ow)

    # layers 1-2: Conv(4,2,1) + BatchNorm2d(batch stats) + LeakyReLU(0.2)  (one call each)
    # (conv bias omitted: exact no-op under training-mode BatchNorm)
    for li in (1, 2):
        p, oh, ow = extract_patches(a, 4, 4, 2, 1)
        w = params[f"w{li}"]
        y = conv_bn_lrelu(p, w.reshape(w.shape[0], -1),
                          params[f"gamma{li}"], params[f"beta{li}"], eps=eps)
        a = y.reshape(-1, n, oh, ow)

    # layer3 (Conv+BN+LeakyReLU) fused with layer4 (Conv(4,1,0) -> (N,1,1,1))
    p, oh, ow = extract_patches(a, 4, 4, 2, 1)             # spatial 8 -> 4
    w3 = params["w3"]
    y4 = conv_bn_lrelu_head(p, w3.reshape(w3.shape[0], -1),
                            params["gamma3"], params["beta3"],
                            params["w4"], params["b4"], n_batch=n, eps=eps)
    return jnp.squeeze(y4.reshape(n, 1, 1, 1))             # matches torch x.squeeze()


# ----------------------------------------------------------------------------- main
if __name__ == "__main__":
    key = jax.random.PRNGKey(0)
    k_x, k_p = jax.random.split(key)

    # 64x64 input is required so layer4's 4x4 valid conv yields 1x1; nch_d=16 keeps it small.
    N, NCH, NCH_D, H, W = 2, 3, 16, 64, 64
    x = jax.random.normal(k_x, (N, NCH, H, W), jnp.float32)
    params = init_params(k_p, nch=NCH, nch_d=NCH_D)

    fwd = jax.jit(discriminator_forward)
    out = fwd(x, params)
    jax.block_until_ready(out)
    assert out.shape == (N,), out.shape
    print("KERNEL_OK")
</pallas_src>

<mosaic_0001>
module attributes {stable_mosaic.version = 11 : i64} {
  func.func @_conv_lrelu_kernel(%arg0: i32, %arg1: memref<48x1024xf32, #tpu.memory_space<vmem>>, %arg2: memref<16x48xf32, #tpu.memory_space<vmem>>, %arg3: memref<16x1xf32, #tpu.memory_space<vmem>>, %arg4: memref<16x1024xf32, #tpu.memory_space<vmem>>) attributes {dimension_semantics = [#tpu.dimension_semantics<parallel>], iteration_bounds = array<i64: 2>, scalar_prefetch = 0 : i64, scratch_operands = 0 : i64, tpu.core_type = #tpu.core_type<tc>, window_params = [{transform_indices = @transform_0, window_bounds = array<i64: 48, 1024>}, {pipeline_mode = #tpu.pipeline_mode<synchronous>, transform_indices = @transform_1, window_bounds = array<i64: 16, 48>}, {pipeline_mode = #tpu.pipeline_mode<synchronous>, transform_indices = @transform_2, window_bounds = array<i64: 16, 1>}, {transform_indices = @transform_3, window_bounds = array<i64: 16, 1024>}]} {
    %c0 = arith.constant 0 : index
    %c0_0 = arith.constant 0 : index
    %0 = vector.load %arg2[%c0, %c0_0] : memref<16x48xf32, #tpu.memory_space<vmem>>, vector<16x48xf32>
    %c0_1 = arith.constant 0 : index
    %c0_2 = arith.constant 0 : index
    %1 = vector.load %arg1[%c0_1, %c0_2] : memref<48x1024xf32, #tpu.memory_space<vmem>>, vector<48x1024xf32>
    %cst = arith.constant dense<0.000000e+00> : vector<16x1024xf32>
    %2 = tpu.matmul %0, %1, %cst {dimension_numbers = #tpu.dot_dimension_numbers<[1], [0], [0], [1], [0, 0, 1, 1], [], []>} : vector<16x48xf32>, vector<48x1024xf32>, vector<16x1024xf32> -> vector<16x1024xf32>
    %c0_3 = arith.constant 0 : index
    %c0_4 = arith.constant 0 : index
    %3 = vector.load %arg3[%c0_3, %c0_4] : memref<16x1xf32, #tpu.memory_space<vmem>>, vector<16x1xf32>
    %4 = vector.broadcast %3 : vector<16x1xf32> to vector<16x1024xf32>
    %5 = arith.addf %2, %4 : vector<16x1024xf32>
    %cst_5 = arith.constant 0.000000e+00 : f32
    %6 = vector.broadcast %cst_5 : f32 to vector<16x1024xf32>
    %7 = arith.cmpf ogt, %5, %6 : vector<16x1024xf32>
    %cst_6 = arith.constant 2.000000e-01 : f32
    %8 = vector.broadcast %cst_6 : f32 to vector<16x1024xf32>
    %9 = arith.mulf %8, %5 : vector<16x1024xf32>
    %10 = arith.select %7, %5, %9 : vector<16x1024xi1>, vector<16x1024xf32>
    %c0_7 = arith.constant 0 : index
    %c0_8 = arith.constant 0 : index
    %11 = vector.load %arg4[%c0_7, %c0_8] : memref<16x1024xf32, #tpu.memory_space<vmem>>, vector<16x1024xf32>
    tpu.vector_store %arg4[%c0_7, %c0_8], %10 {strides = array<i32>} : memref<16x1024xf32, #tpu.memory_space<vmem>>, vector<16x1024xf32>,
    return
  }
  func.func @transform_0(%arg0: i32) -> (i32, i32) {
    %c0_i32 = arith.constant 0 : i32
    %c0_i32_0 = arith.constant 0 : i32
    return %c0_i32, %arg0 : i32, i32
  }
  func.func @transform_1(%arg0: i32) -> (i32, i32) {
    %c0_i32 = arith.constant 0 : i32
    %c0_i32_0 = arith.constant 0 : i32
    %c0_i32_1 = arith.constant 0 : i32
    return %c0_i32, %c0_i32_0 : i32, i32
  }
  func.func @transform_2(%arg0: i32) -> (i32, i32) {
    %c0_i32 = arith.constant 0 : i32
    %c0_i32_0 = arith.constant 0 : i32
    %c0_i32_1 = arith.constant 0 : i32
    return %c0_i32, %c0_i32_0 : i32, i32
  }
  func.func @transform_3(%arg0: i32) -> (i32, i32) {
    %c0_i32 = arith.constant 0 : i32
    %c0_i32_0 = arith.constant 0 : i32
    return %c0_i32, %arg0 : i32, i32
  }
}

module attributes {stable_mosaic.version = 11 : i64} {
  func.func @_conv_bn_lrelu_kernel(%arg0: i32, %arg1: memref<256x512xf32, #tpu.memory_space<vmem>>, %arg2: memref<32x256xf32, #tpu.memory_space<vmem>>, %arg3: memref<32x1xf32, #tpu.memory_space<vmem>>, %arg4: memref<32x1xf32, #tpu.memory_space<vmem>>, %arg5: memref<32x512xf32, #tpu.memory_space<vmem>>) attributes {dimension_semantics = [#tpu.dimension_semantics<arbitrary>], iteration_bounds = array<i64: 1>, scalar_prefetch = 0 : i64, scratch_operands = 0 : i64, tpu.core_type = #tpu.core_type<tc>, window_params = [{pipeline_mode = #tpu.pipeline_mode<synchronous>, transform_indices = @transform_0, window_bounds = array<i64: 256, 512>}, {pipeline_mode = #tpu.pipeline_mode<synchronous>, transform_indices = @transform_1, window_bounds = array<i64: 32, 256>}, {pipeline_mode = #tpu.pipeline_mode<synchronous>, transform_indices = @transform_2, window_bounds = array<i64: 32, 1>}, {pipeline_mode = #tpu.pipeline_mode<synchronous>, transform_indices = @transform_3, window_bounds = array<i64: 32, 1>}, {pipeline_mode = #tpu.pipeline_mode<synchronous>, transform_indices = @transform_4, window_bounds = array<i64: 32, 512>}]} {
    %c0 = arith.constant 0 : index
    %c0_0 = arith.constant 0 : index
    %0 = vector.load %arg2[%c0, %c0_0] : memref<32x256xf32, #tpu.memory_space<vmem>>, vector<32x256xf32>
    %c0_1 = arith.constant 0 : index
    %c0_2 = arith.constant 0 : index
    %1 = vector.load %arg1[%c0_1, %c0_2] : memref<256x512xf32, #tpu.memory_space<vmem>>, vector<256x512xf32>
    %cst = arith.constant dense<0.000000e+00> : vector<32x512xf32>
    %2 = tpu.matmul %0, %1, %cst {dimension_numbers = #tpu.dot_dimension_numbers<[1], [0], [0], [1], [0, 0, 1, 1], [], []>} : vector<32x256xf32>, vector<256x512xf32>, vector<32x512xf32> -> vector<32x512xf32>
    %cst_3 = arith.constant dense<0.000000e+00> : vector<32xf32>
    %3 = vector.multi_reduction <add>, %2, %cst_3 [1] : vector<32x512xf32> to vector<32xf32>
    %4 = vector.shape_cast %3 : vector<32xf32> to vector<32x1xf32>
    %cst_4 = arith.constant 0.001953125 : f32
    %5 = vector.broadcast %cst_4 : f32 to vector<32x1xf32>
    %6 = arith.mulf %4, %5 : vector<32x1xf32>
    %7 = arith.mulf %2, %2 : vector<32x512xf32>
    %cst_5 = arith.constant dense<0.000000e+00> : vector<32xf32>
    %8 = vector.multi_reduction <add>, %7, %cst_5 [1] : vector<32x512xf32> to vector<32xf32>
    %9 = vector.shape_cast %8 : vector<32xf32> to vector<32x1xf32>
    %cst_6 = arith.constant 0.001953125 : f32
    %10 = vector.broadcast %cst_6 : f32 to vector<32x1xf32>
    %11 = arith.mulf %9, %10 : vector<32x1xf32>
    %12 = arith.mulf %6, %6 : vector<32x1xf32>
    %13 = arith.subf %11, %12 : vector<32x1xf32>
    %cst_7 = arith.constant 0.000000e+00 : f32
    %14 = vector.broadcast %cst_7 : f32 to vector<32x1xf32>
    %15 = arith.maximumf %13, %14 : vector<32x1xf32>
    %16 = vector.broadcast %6 : vector<32x1xf32> to vector<32x512xf32>
    %17 = arith.subf %2, %16 : vector<32x512xf32>
    %cst_8 = arith.constant 9.99999974E-6 : f32
    %18 = vector.broadcast %cst_8 : f32 to vector<32x1xf32>
    %19 = arith.addf %15, %18 : vector<32x1xf32>
    %20 = math.rsqrt %19 : vector<32x1xf32>
    %21 = vector.broadcast %20 : vector<32x1xf32> to vector<32x512xf32>
    %22 = arith.mulf %17, %21 : vector<32x512xf32>
    %c0_9 = arith.constant 0 : index
    %c0_10 = arith.constant 0 : index
    %23 = vector.load %arg3[%c0_9, %c0_10] : memref<32x1xf32, #tpu.memory_space<vmem>>, vector<32x1xf32>
    %24 = vector.broadcast %23 : vector<32x1xf32> to vector<32x512xf32>
    %25 = arith.mulf %22, %24 : vector<32x512xf32>
    %c0_11 = arith.constant 0 : index
    %c0_12 = arith.constant 0 : index
    %26 = vector.load %arg4[%c0_11, %c0_12] : memref<32x1xf32, #tpu.memory_space<vmem>>, vector<32x1xf32>
    %27 = vector.broadcast %26 : vector<32x1xf32> to vector<32x512xf32>
    %28 = arith.addf %25, %27 : vector<32x512xf32>
    %cst_13 = arith.constant 0.000000e+00 : f32
    %29 = vector.broadcast %cst_13 : f32 to vector<32x512xf32>
    %30 = arith.cmpf ogt, %28, %29 : vector<32x512xf32>
    %cst_14 = arith.constant 2.000000e-01 : f32
    %31 = vector.broadcast %cst_14 : f32 to vector<32x512xf32>
    %32 = arith.mulf %31, %28 : vector<32x512xf32>
    %33 = arith.select %30, %28, %32 : vector<32x512xi1>, vector<32x512xf32>
    %c0_15 = arith.constant 0 : index
    %c0_16 = arith.constant 0 : index
    %34 = vector.load %arg5[%c0_15, %c0_16] : memref<32x512xf32, #tpu.memory_space<vmem>>, vector<32x512xf32>
    tpu.vector_store %arg5[%c0_15, %c0_16], %33 {strides = array<i32>} : memref<32x512xf32, #tpu.memory_space<vmem>>, vector<32x512xf32>,
    return
  }
  func.func @transform_0(%arg0: i32) -> (i32, i32) {
    %c0_i32 = arith.constant 0 : i32
    %c0_i32_0 = arith.constant 0 : i32
    %c0_i32_1 = arith.constant 0 : i32
    return %c0_i32, %c0_i32_0 : i32, i32
  }
  func.func @transform_1(%arg0: i32) -> (i32, i32) {
    %c0_i32 = arith.constant 0 : i32
    %c0_i32_0 = arith.constant 0 : i32
    %c0_i32_1 = arith.constant 0 : i32
    return %c0_i32, %c0_i32_0 : i32, i32
  }
  func.func @transform_2(%arg0: i32) -> (i32, i32) {
    %c0_i32 = arith.constant 0 : i32
    %c0_i32_0 = arith.constant 0 : i32
    %c0_i32_1 = arith.constant 0 : i32
    return %c0_i32, %c0_i32_0 : i32, i32
  }
  func.func @transform_3(%arg0: i32) -> (i32, i32) {
    %c0_i32 = arith.constant 0 : i32
    %c0_i32_0 = arith.constant 0 : i32
    %c0_i32_1 = arith.constant 0 : i32
    return %c0_i32, %c0_i32_0 : i32, i32
  }
  func.func @transform_4(%arg0: i32) -> (i32, i32) {
    %c0_i32 = arith.constant 0 : i32
    %c0_i32_0 = arith.constant 0 : i32
    %c0_i32_1 = arith.constant 0 : i32
    return %c0_i32, %c0_i32_0 : i32, i32
  }
}

module attributes {stable_mosaic.version = 11 : i64} {
  func.func @_conv_bn_lrelu_kernel(%arg0: i32, %arg1: memref<512x128xf32, #tpu.memory_space<vmem>>, %arg2: memref<64x512xf32, #tpu.memory_space<vmem>>, %arg3: memref<64x1xf32, #tpu.memory_space<vmem>>, %arg4: memref<64x1xf32, #tpu.memory_space<vmem>>, %arg5: memref<64x128xf32, #tpu.memory_space<vmem>>) attributes {dimension_semantics = [#tpu.dimension_semantics<arbitrary>], iteration_bounds = array<i64: 1>, scalar_prefetch = 0 : i64, scratch_operands = 0 : i64, tpu.core_type = #tpu.core_type<tc>, window_params = [{pipeline_mode = #tpu.pipeline_mode<synchronous>, transform_indices = @transform_0, window_bounds = array<i64: 512, 128>}, {pipeline_mode = #tpu.pipeline_mode<synchronous>, transform_indices = @transform_1, window_bounds = array<i64: 64, 512>}, {pipeline_mode = #tpu.pipeline_mode<synchronous>, transform_indices = @transform_2, window_bounds = array<i64: 64, 1>}, {pipeline_mode = #tpu.pipeline_mode<synchronous>, transform_indices = @transform_3, window_bounds = array<i64: 64, 1>}, {pipeline_mode = #tpu.pipeline_mode<synchronous>, transform_indices = @transform_4, window_bounds = array<i64: 64, 128>}]} {
    %c0 = arith.constant 0 : index
    %c0_0 = arith.constant 0 : index
    %0 = vector.load %arg2[%c0, %c0_0] : memref<64x512xf32, #tpu.memory_space<vmem>>, vector<64x512xf32>
    %c0_1 = arith.constant 0 : index
    %c0_2 = arith.constant 0 : index
    %1 = vector.load %arg1[%c0_1, %c0_2] : memref<512x128xf32, #tpu.memory_space<vmem>>, vector<512x128xf32>
    %cst = arith.constant dense<0.000000e+00> : vector<64x128xf32>
    %2 = tpu.matmul %0, %1, %cst {dimension_numbers = #tpu.dot_dimension_numbers<[1], [0], [0], [1], [0, 0, 1, 1], [], []>} : vector<64x512xf32>, vector<512x128xf32>, vector<64x128xf32> -> vector<64x128xf32>
    %cst_3 = arith.constant dense<0.000000e+00> : vector<64xf32>
    %3 = vector.multi_reduction <add>, %2, %cst_3 [1] : vector<64x128xf32> to vector<64xf32>
    %4 = vector.shape_cast %3 : vector<64xf32> to vector<64x1xf32>
    %cst_4 = arith.constant 7.812500e-03 : f32
    %5 = vector.broadcast %cst_4 : f32 to vector<64x1xf32>
    %6 = arith.mulf %4, %5 : vector<64x1xf32>
    %7 = arith.mulf %2, %2 : vector<64x128xf32>
    %cst_5 = arith.constant dense<0.000000e+00> : vector<64xf32>
    %8 = vector.multi_reduction <add>, %7, %cst_5 [1] : vector<64x128xf32> to vector<64xf32>
    %9 = vector.shape_cast %8 : vector<64xf32> to vector<64x1xf32>
    %cst_6 = arith.constant 7.812500e-03 : f32
    %10 = vector.broadcast %cst_6 : f32 to vector<64x1xf32>
    %11 = arith.mulf %9, %10 : vector<64x1xf32>
    %12 = arith.mulf %6, %6 : vector<64x1xf32>
    %13 = arith.subf %11, %12 : vector<64x1xf32>
    %cst_7 = arith.constant 0.000000e+00 : f32
    %14 = vector.broadcast %cst_7 : f32 to vector<64x1xf32>
    %15 = arith.maximumf %13, %14 : vector<64x1xf32>
    %16 = vector.broadcast %6 : vector<64x1xf32> to vector<64x128xf32>
    %17 = arith.subf %2, %16 : vector<64x128xf32>
    %cst_8 = arith.constant 9.99999974E-6 : f32
    %18 = vector.broadcast %cst_8 : f32 to vector<64x1xf32>
    %19 = arith.addf %15, %18 : vector<64x1xf32>
    %20 = math.rsqrt %19 : vector<64x1xf32>
    %21 = vector.broadcast %20 : vector<64x1xf32> to vector<64x128xf32>
    %22 = arith.mulf %17, %21 : vector<64x128xf32>
    %c0_9 = arith.constant 0 : index
    %c0_10 = arith.constant 0 : index
    %23 = vector.load %arg3[%c0_9, %c0_10] : memref<64x1xf32, #tpu.memory_space<vmem>>, vector<64x1xf32>
    %24 = vector.broadcast %23 : vector<64x1xf32> to vector<64x128xf32>
    %25 = arith.mulf %22, %24 : vector<64x128xf32>
    %c0_11 = arith.constant 0 : index
    %c0_12 = arith.constant 0 : index
    %26 = vector.load %arg4[%c0_11, %c0_12] : memref<64x1xf32, #tpu.memory_space<vmem>>, vector<64x1xf32>
    %27 = vector.broadcast %26 : vector<64x1xf32> to vector<64x128xf32>
    %28 = arith.addf %25, %27 : vector<64x128xf32>
    %cst_13 = arith.constant 0.000000e+00 : f32
    %29 = vector.broadcast %cst_13 : f32 to vector<64x128xf32>
    %30 = arith.cmpf ogt, %28, %29 : vector<64x128xf32>
    %cst_14 = arith.constant 2.000000e-01 : f32
    %31 = vector.broadcast %cst_14 : f32 to vector<64x128xf32>
    %32 = arith.mulf %31, %28 : vector<64x128xf32>
    %33 = arith.select %30, %28, %32 : vector<64x128xi1>, vector<64x128xf32>
    %c0_15 = arith.constant 0 : index
    %c0_16 = arith.constant 0 : index
    %34 = vector.load %arg5[%c0_15, %c0_16] : memref<64x128xf32, #tpu.memory_space<vmem>>, vector<64x128xf32>
    tpu.vector_store %arg5[%c0_15, %c0_16], %33 {strides = array<i32>} : memref<64x128xf32, #tpu.memory_space<vmem>>, vector<64x128xf32>,
    return
  }
  func.func @transform_0(%arg0: i32) -> (i32, i32) {
    %c0_i32 = arith.constant 0 : i32
    %c0_i32_0 = arith.constant 0 : i32
    %c0_i32_1 = arith.constant 0 : i32
    return %c0_i32, %c0_i32_0 : i32, i32
  }
  func.func @transform_1(%arg0: i32) -> (i32, i32) {
    %c0_i32 = arith.constant 0 : i32
    %c0_i32_0 = arith.constant 0 : i32
    %c0_i32_1 = arith.constant 0 : i32
    return %c0_i32, %c0_i32_0 : i32, i32
  }
  func.func @transform_2(%arg0: i32) -> (i32, i32) {
    %c0_i32 = arith.constant 0 : i32
    %c0_i32_0 = arith.constant 0 : i32
    %c0_i32_1 = arith.constant 0 : i32
    return %c0_i32, %c0_i32_0 : i32, i32
  }
  func.func @transform_3(%arg0: i32) -> (i32, i32) {
    %c0_i32 = arith.constant 0 : i32
    %c0_i32_0 = arith.constant 0 : i32
    %c0_i32_1 = arith.constant 0 : i32
    return %c0_i32, %c0_i32_0 : i32, i32
  }
  func.func @transform_4(%arg0: i32) -> (i32, i32) {
    %c0_i32 = arith.constant 0 : i32
    %c0_i32_0 = arith.constant 0 : i32
    %c0_i32_1 = arith.constant 0 : i32
    return %c0_i32, %c0_i32_0 : i32, i32
  }
}

module attributes {stable_mosaic.version = 11 : i64} {
  func.func @_conv_bn_lrelu_head_kernel(%arg0: i32, %arg1: memref<1024x32xf32, #tpu.memory_space<vmem>>, %arg2: memref<128x1024xf32, #tpu.memory_space<vmem>>, %arg3: memref<128x1xf32, #tpu.memory_space<vmem>>, %arg4: memref<128x1xf32, #tpu.memory_space<vmem>>, %arg5: memref<128x32xf32, #tpu.memory_space<vmem>>, %arg6: memref<32x2xf32, #tpu.memory_space<vmem>>, %arg7: memref<1x1xf32, #tpu.memory_space<vmem>>, %arg8: memref<1x2xf32, #tpu.memory_space<vmem>>) attributes {dimension_semantics = [#tpu.dimension_semantics<arbitrary>], iteration_bounds = array<i64: 1>, scalar_prefetch = 0 : i64, scratch_operands = 0 : i64, tpu.core_type = #tpu.core_type<tc>, window_params = [{pipeline_mode = #tpu.pipeline_mode<synchronous>, transform_indices = @transform_0, window_bounds = array<i64: 1024, 32>}, {pipeline_mode = #tpu.pipeline_mode<synchronous>, transform_indices = @transform_1, window_bounds = array<i64: 128, 1024>}, {pipeline_mode = #tpu.pipeline_mode<synchronous>, transform_indices = @transform_2, window_bounds = array<i64: 128, 1>}, {pipeline_mode = #tpu.pipeline_mode<synchronous>, transform_indices = @transform_3, window_bounds = array<i64: 128, 1>}, {pipeline_mode = #tpu.pipeline_mode<synchronous>, transform_indices = @transform_4, window_bounds = array<i64: 128, 32>}, {pipeline_mode = #tpu.pipeline_mode<synchronous>, transform_indices = @transform_5, window_bounds = array<i64: 32, 2>}, {pipeline_mode = #tpu.pipeline_mode<synchronous>, transform_indices = @transform_6, window_bounds = array<i64: 1, 1>}, {pipeline_mode = #tpu.pipeline_mode<synchronous>, transform_indices = @transform_7, window_bounds = array<i64: 1, 2>}]} {
    %c0 = arith.constant 0 : index
    %c0_0 = arith.constant 0 : index
    %0 = vector.load %arg2[%c0, %c0_0] : memref<128x1024xf32, #tpu.memory_space<vmem>>, vector<128x1024xf32>
    %c0_1 = arith.constant 0 : index
    %c0_2 = arith.constant 0 : index
    %1 = vector.load %arg1[%c0_1, %c0_2] : memref<1024x32xf32, #tpu.memory_space<vmem>>, vector<1024x32xf32>
    %cst = arith.constant dense<0.000000e+00> : vector<128x32xf32>
    %2 = tpu.matmul %0, %1, %cst {dimension_numbers = #tpu.dot_dimension_numbers<[1], [0], [0], [1], [0, 0, 1, 1], [], []>} : vector<128x1024xf32>, vector<1024x32xf32>, vector<128x32xf32> -> vector<128x32xf32>
    %cst_3 = arith.constant dense<0.000000e+00> : vector<128xf32>
    %3 = vector.multi_reduction <add>, %2, %cst_3 [1] : vector<128x32xf32> to vector<128xf32>
    %4 = vector.shape_cast %3 : vector<128xf32> to vector<128x1xf32>
    %cst_4 = arith.constant 3.125000e-02 : f32
    %5 = vector.broadcast %cst_4 : f32 to vector<128x1xf32>
    %6 = arith.mulf %4, %5 : vector<128x1xf32>
    %7 = arith.mulf %2, %2 : vector<128x32xf32>
    %cst_5 = arith.constant dense<0.000000e+00> : vector<128xf32>
    %8 = vector.multi_reduction <add>, %7, %cst_5 [1] : vector<128x32xf32> to vector<128xf32>
    %9 = vector.shape_cast %8 : vector<128xf32> to vector<128x1xf32>
    %cst_6 = arith.constant 3.125000e-02 : f32
    %10 = vector.broadcast %cst_6 : f32 to vector<128x1xf32>
    %11 = arith.mulf %9, %10 : vector<128x1xf32>
    %12 = arith.mulf %6, %6 : vector<128x1xf32>
    %13 = arith.subf %11, %12 : vector<128x1xf32>
    %cst_7 = arith.constant 0.000000e+00 : f32
    %14 = vector.broadcast %cst_7 : f32 to vector<128x1xf32>
    %15 = arith.maximumf %13, %14 : vector<128x1xf32>
    %16 = vector.broadcast %6 : vector<128x1xf32> to vector<128x32xf32>
    %17 = arith.subf %2, %16 : vector<128x32xf32>
    %cst_8 = arith.constant 9.99999974E-6 : f32
    %18 = vector.broadcast %cst_8 : f32 to vector<128x1xf32>
    %19 = arith.addf %15, %18 : vector<128x1xf32>
    %20 = math.rsqrt %19 : vector<128x1xf32>
    %21 = vector.broadcast %20 : vector<128x1xf32> to vector<128x32xf32>
    %22 = arith.mulf %17, %21 : vector<128x32xf32>
    %c0_9 = arith.constant 0 : index
    %c0_10 = arith.constant 0 : index
    %23 = vector.load %arg3[%c0_9, %c0_10] : memref<128x1xf32, #tpu.memory_space<vmem>>, vector<128x1xf32>
    %24 = vector.broadcast %23 : vector<128x1xf32> to vector<128x32xf32>
    %25 = arith.mulf %22, %24 : vector<128x32xf32>
    %c0_11 = arith.constant 0 : index
    %c0_12 = arith.constant 0 : index
    %26 = vector.load %arg4[%c0_11, %c0_12] : memref<128x1xf32, #tpu.memory_space<vmem>>, vector<128x1xf32>
    %27 = vector.broadcast %26 : vector<128x1xf32> to vector<128x32xf32>
    %28 = arith.addf %25, %27 : vector<128x32xf32>
    %cst_13 = arith.constant 0.000000e+00 : f32
    %29 = vector.broadcast %cst_13 : f32 to vector<128x32xf32>
    %30 = arith.cmpf ogt, %28, %29 : vector<128x32xf32>
    %cst_14 = arith.constant 2.000000e-01 : f32
    %31 = vector.broadcast %cst_14 : f32 to vector<128x32xf32>
    %32 = arith.mulf %31, %28 : vector<128x32xf32>
    %33 = arith.select %30, %28, %32 : vector<128x32xi1>, vector<128x32xf32>
    %c0_15 = arith.constant 0 : index
    %c0_16 = arith.constant 0 : index
    %34 = vector.load %arg5[%c0_15, %c0_16] : memref<128x32xf32, #tpu.memory_space<vmem>>, vector<128x32xf32>
    %35 = arith.mulf %33, %34 : vector<128x32xf32>
    %c0_17 = arith.constant 0 : index
    %c0_18 = arith.constant 0 : index
    %36 = vector.load %arg6[%c0_17, %c0_18] : memref<32x2xf32, #tpu.memory_space<vmem>>, vector<32x2xf32>
    %cst_19 = arith.constant dense<0.000000e+00> : vector<128x2xf32>
    %37 = tpu.matmul %35, %36, %cst_19 {dimension_numbers = #tpu.dot_dimension_numbers<[1], [0], [0], [1], [0, 0, 1, 1], [], []>} : vector<128x32xf32>, vector<32x2xf32>, vector<128x2xf32> -> vector<128x2xf32>
    %cst_20 = arith.constant dense<0.000000e+00> : vector<2xf32>
    %38 = vector.multi_reduction <add>, %37, %cst_20 [0] : vector<128x2xf32> to vector<2xf32>
    %39 = vector.shape_cast %38 : vector<2xf32> to vector<1x2xf32>
    %c0_21 = arith.constant 0 : index
    %c0_22 = arith.constant 0 : index
    %40 = vector.load %arg7[%c0_21, %c0_22] : memref<1x1xf32, #tpu.memory_space<vmem>>, vector<1x1xf32>
    %41 = vector.broadcast %40 : vector<1x1xf32> to vector<1x2xf32>
    %42 = arith.addf %39, %41 : vector<1x2xf32>
    %c0_23 = arith.constant 0 : index
    %c0_24 = arith.constant 0 : index
    %43 = vector.load %arg8[%c0_23, %c0_24] : memref<1x2xf32, #tpu.memory_space<vmem>>, vector<1x2xf32>
    tpu.vector_store %arg8[%c0_23, %c0_24], %42 {strides = array<i32>} : memref<1x2xf32, #tpu.memory_space<vmem>>, vector<1x2xf32>,
    return
  }
  func.func @transform_0(%arg0: i32) -> (i32, i32) {
    %c0_i32 = arith.constant 0 : i32
    %c0_i32_0 = arith.constant 0 : i32
    %c0_i32_1 = arith.constant 0 : i32
    return %c0_i32, %c0_i32_0 : i32, i32
  }
  func.func @transform_1(%arg0: i32) -> (i32, i32) {
    %c0_i32 = arith.constant 0 : i32
    %c0_i32_0 = arith.constant 0 : i32
    %c0_i32_1 = arith.constant 0 : i32
    return %c0_i32, %c0_i32_0 : i32, i32
  }
  func.func @transform_2(%arg0: i32) -> (i32, i32) {
    %c0_i32 = arith.constant 0 : i32
    %c0_i32_0 = arith.constant 0 : i32
    %c0_i32_1 = arith.constant 0 : i32
    return %c0_i32, %c0_i32_0 : i32, i32
  }
  func.func @transform_3(%arg0: i32) -> (i32, i32) {
    %c0_i32 = arith.constant 0 : i32
    %c0_i32_0 = arith.constant 0 : i32
    %c0_i32_1 = arith.constant 0 : i32
    return %c0_i32, %c0_i32_0 : i32, i32
  }
  func.func @transform_4(%arg0: i32) -> (i32, i32) {
    %c0_i32 = arith.constant 0 : i32
    %c0_i32_0 = arith.constant 0 : i32
    %c0_i32_1 = arith.constant 0 : i32
    return %c0_i32, %c0_i32_0 : i32, i32
  }
  func.func @transform_5(%arg0: i32) -> (i32, i32) {
    %c0_i32 = arith.constant 0 : i32
    %c0_i32_0 = arith.constant 0 : i32
    %c0_i32_1 = arith.constant 0 : i32
    return %c0_i32, %c0_i32_0 : i32, i32
  }
  func.func @transform_6(%arg0: i32) -> (i32, i32) {
    %c0_i32 = arith.constant 0 : i32
    %c0_i32_0 = arith.constant 0 : i32
    %c0_i32_1 = arith.constant 0 : i32
    return %c0_i32, %c0_i32_0 : i32, i32
  }
  func.func @transform_7(%arg0: i32) -> (i32, i32) {
    %c0_i32 = arith.constant 0 : i32
    %c0_i32_0 = arith.constant 0 : i32
    %c0_i32_1 = arith.constant 0 : i32
    return %c0_i32, %c0_i32_0 : i32, i32
  }
}

</mosaic_0001>

<bundles_post_ra>
// kernel: discriminator_forward.4
= control target key start
LH: loop header
LB: loop body
LE: loop exit
PB: predicated region body
PF: predicated region fallthrough
CT: control target
= control target key end

     0   :  { %s933_s12 = smov 0   ;;  %s935_s13 = smov 0   ;;  %s1235_s0 = inlined_call_operand.vmem [shape: f32[48,2048], index: 0, kind: input, shape index: {}]   ;;  %s1236_s1 = inlined_call_operand.vmem [shape: f32[16,48], index: 1, kind: input, shape index: {}]   ;;  %s1237_s2 = inlined_call_operand.vmem [shape: f32[16,1], index: 2, kind: input, shape index: {}]   ;;  %s1238_s3 = inlined_call_operand.vmem [shape: f32[16,2048], index: 3, kind: output, shape index: {}]  }
   0x1   :  { %s937_s14 = smov 0  }
   0x2 LB: > { %s835_s15 = sadd.s32 4294967295, %s909_s14   ;;  %s950_s16 = sadd.s32 1, %s909_s14   ;;  %s909_s14 = sphi %s937_s14, %s1242_s14   ;;  %s905_s13 = sphi %s935_s13, %s1241_s13   ;;  %s901_s12 = sphi %s933_s12, %s1240_s12  }
   0x3   : > { %s17_s17 = ssub.s32 %s909_s14, %s950_s16  ;;  %s20_s18 = sadd.s32 1, %s905_s13 }
   0x4   : > { %p18_p0 = scmp.eq.s32.totalorder %s17_s17, 0  ;;  %p27_p1 = scmp.ne.s32.totalorder %s905_s13, %s901_s12 }
   0x5   : > { %p28_p2 = scmp.eq.s32.totalorder %s909_s14, 0  ;;  %p99_p3 = scmp.eq.s32.totalorder %s835_s15, 1 }
   0x6   : > { %s961_s19 = scalar_select %p18_p0, %s905_s13, %s20_s18  }
   0x7   : > { %p29_p4 = por %p28_p2, %p27_p1  ;;  %p963_p5 = por %p99_p3, %p27_p1 }
   0x8   : > { %p838_p6 = scmp.ge.s32.totalorder %s909_s14, 2 }
   0xa   : > { %127 = sbr.rel (%p838_p6) target bundleno = 44 (0x2c), region = 24 }
   0xf   : > { %130 = sbr.rel (!%p29_p4) target bundleno = 44 (0x2c), region = 28  ;;  %s132_s21 = sand.u32 (%p29_p4), 1, %s905_s13  }
  0x10   : > { %s856_s22 = sshll.u32 (%p29_p4), %s909_s14, 6  ;;  %s858_s23 = smul.u32 (%p29_p4), 384, %s132_s21 }
  0x11   : > { %s973_s26 = scalar_lea.vmem (%p29_p4), %s1235_s0, %s856_s22 }
  0x12   : > { %v150_v0 = vld [vmem:[%s973_s26] sm:$0xff] (%p29_p4)  ;;  %v152_v1 = vld [vmem:[%s973_s26 + $0x8] sm:$0xff] (%p29_p4)  ;;  %v154_v2 = vld [vmem:[%s973_s26 + $0x10] sm:$0xff] (%p29_p4)  ;;  %s981_s27 = scalar_lea.vmem (%p29_p4), [#allocation2], %s858_s23 }
  0x13   : > { %v156_v3 = vld [vmem:[%s973_s26 + $0x18] sm:$0xff] (%p29_p4)  ;;  %v158_v4 = vld [vmem:[%s973_s26 + $0x20] sm:$0xff] (%p29_p4)  ;;  %v160_v5 = vld [vmem:[%s973_s26 + $0x28] sm:$0xff] (%p29_p4)  ;;  %151 = vst [vmem:[%s981_s27] sm:$0xff] (%p29_p4), %v150_v0 }
  0x14   : > { %153 = vst [vmem:[%s981_s27 + $0x8] sm:$0xff] %v152_v1  ;;  %155 = vst [vmem:[%s981_s27 + $0x10] sm:$0xff] %v154_v2  ;;  %v162_v6 = vld [vmem:[%s973_s26 + $0x30] sm:$0xff]  ;;  %v164_v7 = vld [vmem:[%s973_s26 + $0x38] sm:$0xff] }
  0x15   : > { %157 = vst [vmem:[%s981_s27 + $0x18] sm:$0xff] %v156_v3  ;;  %159 = vst [vmem:[%s981_s27 + $0x20] sm:$0xff] %v158_v4  ;;  %v166_v8 = vld [vmem:[%s973_s26 + $0x80] sm:$0xff]  ;;  %v168_v9 = vld [vmem:[%s973_s26 + $0x88] sm:$0xff] }
  0x16   : > { %161 = vst [vmem:[%s981_s27 + $0x28] sm:$0xff] %v160_v5  ;;  %163 = vst [vmem:[%s981_s27 + $0x30] sm:$0xff] %v162_v6  ;;  %v170_v10 = vld [vmem:[%s973_s26 + $0x90] sm:$0xff]  ;;  %v172_v11 = vld [vmem:[%s973_s26 + $0x98] sm:$0xff] }
  0x17   : > { %165 = vst [vmem:[%s981_s27 + $0x38] sm:$0xff] %v164_v7  ;;  %167 = vst [vmem:[%s981_s27 + $0x40] sm:$0xff] %v166_v8  ;;  %v174_v12 = vld [vmem:[%s973_s26 + $0xa0] sm:$0xff]  ;;  %v176_v13 = vld [vmem:[%s973_s26 + $0xa8] sm:$0xff] }
  0x18   : > { %169 = vst [vmem:[%s981_s27 + $0x48] sm:$0xff] %v168_v9  ;;  %171 = vst [vmem:[%s981_s27 + $0x50] sm:$0xff] %v170_v10  ;;  %v178_v14 = vld [vmem:[%s973_s26 + $0xb0] sm:$0xff]  ;;  %v180_v15 = vld [vmem:[%s973_s26 + $0xb8] sm:$0xff] }
  0x19   : > { %173 = vst [vmem:[%s981_s27 + $0x58] sm:$0xff] %v172_v11  ;;  %175 = vst [vmem:[%s981_s27 + $0x60] sm:$0xff] %v174_v12  ;;  %v182_v16 = vld [vmem:[%s973_s26 + $0x100] sm:$0xff]  ;;  %v184_v17 = vld [vmem:[%s973_s26 + $0x108] sm:$0xff] }
  0x1a   : > { %177 = vst [vmem:[%s981_s27 + $0x68] sm:$0xff] %v176_v13  ;;  %179 = vst [vmem:[%s981_s27 + $0x70] sm:$0xff] %v178_v14  ;;  %v186_v18 = vld [vmem:[%s973_s26 + $0x110] sm:$0xff]  ;;  %v188_v19 = vld [vmem:[%s973_s26 + $0x118] sm:$0xff] }
  0x1b   : > { %181 = vst [vmem:[%s981_s27 + $0x78] sm:$0xff] %v180_v15  ;;  %183 = vst [vmem:[%s981_s27 + $0x80] sm:$0xff] %v182_v16  ;;  %v190_v20 = vld [vmem:[%s973_s26 + $0x120] sm:$0xff]  ;;  %v192_v21 = vld [vmem:[%s973_s26 + $0x128] sm:$0xff] }
  0x1c   : > { %185 = vst [vmem:[%s981_s27 + $0x88] sm:$0xff] %v184_v17  ;;  %187 = vst [vmem:[%s981_s27 + $0x90] sm:$0xff] %v186_v18  ;;  %v194_v22 = vld [vmem:[%s973_s26 + $0x130] sm:$0xff]  ;;  %v196_v23 = vld [vmem:[%s973_s26 + $0x138] sm:$0xff] }
  0x1d   : > { %189 = vst [vmem:[%s981_s27 + $0x98] sm:$0xff] %v188_v19  ;;  %191 = vst [vmem:[%s981_s27 + $0xa0] sm:$0xff] %v190_v20  ;;  %v198_v24 = vld [vmem:[%s973_s26 + $0x180] sm:$0xff]  ;;  %v200_v25 = vld [vmem:[%s973_s26 + $0x188] sm:$0xff] }
  0x1e   : > { %193 = vst [vmem:[%s981_s27 + $0xa8] sm:$0xff] %v192_v21  ;;  %195 = vst [vmem:[%s981_s27 + $0xb0] sm:$0xff] %v194_v22  ;;  %v202_v26 = vld [vmem:[%s973_s26 + $0x190] sm:$0xff]  ;;  %v204_v27 = vld [vmem:[%s973_s26 + $0x198] sm:$0xff] }
  0x1f   : > { %197 = vst [vmem:[%s981_s27 + $0xb8] sm:$0xff] %v196_v23  ;;  %199 = vst [vmem:[%s981_s27 + $0xc0] sm:$0xff] %v198_v24  ;;  %v206_v28 = vld [vmem:[%s973_s26 + $0x1a0] sm:$0xff]  ;;  %v208_v29 = vld [vmem:[%s973_s26 + $0x1a8] sm:$0xff] }
  0x20   : > { %201 = vst [vmem:[%s981_s27 + $0xc8] sm:$0xff] %v200_v25  ;;  %203 = vst [vmem:[%s981_s27 + $0xd0] sm:$0xff] %v202_v26  ;;  %v210_v30 = vld [vmem:[%s973_s26 + $0x1b0] sm:$0xff]  ;;  %v212_v31 = vld [vmem:[%s973_s26 + $0x1b8] sm:$0xff] }
  0x21   : > { %205 = vst [vmem:[%s981_s27 + $0xd8] sm:$0xff] %v204_v27  ;;  %207 = vst [vmem:[%s981_s27 + $0xe0] sm:$0xff] %v206_v28  ;;  %v214_v32 = vld [vmem:[%s973_s26 + $0x200] sm:$0xff]  ;;  %v216_v33 = vld [vmem:[%s973_s26 + $0x208] sm:$0xff] }
  0x22   : > { %209 = vst [vmem:[%s981_s27 + $0xe8] sm:$0xff] %v208_v29  ;;  %211 = vst [vmem:[%s981_s27 + $0xf0] sm:$0xff] %v210_v30  ;;  %v218_v34 = vld [vmem:[%s973_s26 + $0x210] sm:$0xff]  ;;  %v220_v35 = vld [vmem:[%s973_s26 + $0x218] sm:$0xff] }
  0x23   : > { %213 = vst [vmem:[%s981_s27 + $0xf8] sm:$0xff] %v212_v31  ;;  %215 = vst [vmem:[%s981_s27 + $0x100] sm:$0xff] %v214_v32  ;;  %v222_v36 = vld [vmem:[%s973_s26 + $0x220] sm:$0xff]  ;;  %v224_v37 = vld [vmem:[%s973_s26 + $0x228] sm:$0xff] }
  0x24   : > { %217 = vst [vmem:[%s981_s27 + $0x108] sm:$0xff] %v216_v33  ;;  %219 = vst [vmem:[%s981_s27 + $0x110] sm:$0xff] %v218_v34  ;;  %v226_v38 = vld [vmem:[%s973_s26 + $0x230] sm:$0xff]  ;;  %v228_v39 = vld [vmem:[%s973_s26 + $0x238] sm:$0xff] }
  0x25   : > { %221 = vst [vmem:[%s981_s27 + $0x118] sm:$0xff] %v220_v35  ;;  %223 = vst [vmem:[%s981_s27 + $0x120] sm:$0xff] %v222_v36  ;;  %v230_v40 = vld [vmem:[%s973_s26 + $0x280] sm:$0xff]  ;;  %v232_v41 = vld [vmem:[%s973_s26 + $0x288] sm:$0xff] }
  0x26   : > { %225 = vst [vmem:[%s981_s27 + $0x128] sm:$0xff] %v224_v37  ;;  %227 = vst [vmem:[%s981_s27 + $0x130] sm:$0xff] %v226_v38  ;;  %v234_v42 = vld [vmem:[%s973_s26 + $0x290] sm:$0xff]  ;;  %v236_v43 = vld [vmem:[%s973_s26 + $0x298] sm:$0xff] }
  0x27   : > { %229 = vst [vmem:[%s981_s27 + $0x138] sm:$0xff] %v228_v39  ;;  %231 = vst [vmem:[%s981_s27 + $0x140] sm:$0xff] %v230_v40  ;;  %v238_v44 = vld [vmem:[%s973_s26 + $0x2a0] sm:$0xff]  ;;  %v240_v45 = vld [vmem:[%s973_s26 + $0x2a8] sm:$0xff] }
  0x28   : > { %233 = vst [vmem:[%s981_s27 + $0x148] sm:$0xff] %v232_v41  ;;  %235 = vst [vmem:[%s981_s27 + $0x150] sm:$0xff] %v234_v42  ;;  %v242_v46 = vld [vmem:[%s973_s26 + $0x2b0] sm:$0xff]  ;;  %v244_v47 = vld [vmem:[%s973_s26 + $0x2b8] sm:$0xff] }
  0x29   : > { %237 = vst [vmem:[%s981_s27 + $0x158] sm:$0xff] %v236_v43  ;;  %239 = vst [vmem:[%s981_s27 + $0x160] sm:$0xff] %v238_v44 }
  0x2a   : > { %241 = vst [vmem:[%s981_s27 + $0x168] sm:$0xff] %v240_v45  ;;  %243 = vst [vmem:[%s981_s27 + $0x170] sm:$0xff] %v242_v46 }
  0x2b   : > { %245 = vst [vmem:[%s981_s27 + $0x178] sm:$0xff] %v244_v47 }
  0x2c PF: > { %p841_p7 = scmp.ge.s32.totalorder %s909_s14, 1  ;;  %p250_p8 = scmp.lt.s32.totalorder %s909_s14, 3 }
  0x2e   : > { %p251_p9 = pnand %p841_p7, %p250_p8 }
  0x2f   : > { %s257_s28 = sand.u32 (!%p251_p9), 1, %s901_s12  }
  0x30   : > { %254 = sbr.rel (%p251_p9) target bundleno = 299 (0x12b), region = 51  ;;  %s842_s17 = sshll.u32 (!%p251_p9), %s257_s28, 7 }
  0x31   : > { %s859_s29 = smul.u32 (!%p251_p9), 384, %s257_s28  ;;  %s1172_s12 = scalar_lea.vmem (!%p251_p9), [#allocation3], %s842_s17 }
  0x33   : > { %s1083_s5 = scalar_lea.vmem (!%p251_p9), [#allocation2], %s859_s29 }
  0x35   : > { %v911_v48 = vmov 0.0   ;;  %v331_v49 = vld [vmem:[%s1237_s2] sm:$0xff]  ;;  %v912_v50 = vmov 0   ;;  %v324_v51 = vld [vmem:[%s1083_s5 + $0x148] sm:$0xff]  ;;  %v326_v52 = vld [vmem:[%s1083_s5 + $0x158] sm:$0xff]  ;;  %vm343_vm0 = vcmask 392192  }
  0x36   : > { %414 = vmatprep.mubr.f32.mxu0 %v911_v48  ;;  %491 = vmatprep.mubr.f32.mxu1 %v911_v48  ;;  %v323_v53 = vld [vmem:[%s1083_s5 + $0x140] sm:$0xff]  ;;  %v325_v54 = vld [vmem:[%s1083_s5 + $0x150] sm:$0xff]  ;;  %v316_v55 = vld [vmem:[%s1083_s5 + $0x108] sm:$0xff]  ;;  %s857_s18 = sshll.u32 (%p963_p5), %s835_s15, 6 }
  0x37   : > { %886 = vset.pattern.permute.xlu0 %v912_v50  ;;  %370 = vmatprep.subr.mxu0 %v324_v51  ;;  %v318_v56 = vld [vmem:[%s1083_s5 + $0x118] sm:$0xff]  ;;  %v315_v57 = vld [vmem:[%s1083_s5 + $0x100] sm:$0xff]  ;;  %v317_v58 = vld [vmem:[%s1083_s5 + $0x110] sm:$0xff]  ;;  %s731_s20 = scalar_lea.vmem (%p963_p5), %s1238_s3, %s857_s18 }
  0x38   : > { %335 = vperm.xlu0 %886, %v331_v49   ;;  %447 = vmatprep.subr.mxu1 %v326_v52  ;;  %v308_v59 = vld [vmem:[%s1083_s5 + $0xc8] sm:$0xff]  ;;  %v310_v60 = vld [vmem:[%s1083_s5 + $0xd8] sm:$0xff]  ;;  %v307_v61 = vld [vmem:[%s1083_s5 + $0xc0] sm:$0xff] }
  0x39   : > { %371 = vmatpush1.msra.mxu0 %v323_v53  ;;  %448 = vmatpush1.msra.mxu1 %v325_v54  ;;  %v309_v62 = vld [vmem:[%s1083_s5 + $0xd0] sm:$0xff]  ;;  %v300_v63 = vld [vmem:[%s1083_s5 + $0x88] sm:$0xff]  ;;  %v302_v0 = vld [vmem:[%s1083_s5 + $0x98] sm:$0xff] }
  0x3a   : > { %372 = vmatprep.subr.mxu0 %v316_v55  ;;  %449 = vmatprep.subr.mxu1 %v318_v56  ;;  %v299_v1 = vld [vmem:[%s1083_s5 + $0x80] sm:$0xff]  ;;  %v301_v2 = vld [vmem:[%s1083_s5 + $0x90] sm:$0xff]  ;;  %v292_v3 = vld [vmem:[%s1083_s5 + $0x48] sm:$0xff] }
  0x3b   : > { %373 = vmatpush1.msra.mxu0 %v315_v57  ;;  %450 = vmatpush1.msra.mxu1 %v317_v58  ;;  %v294_v4 = vld [vmem:[%s1083_s5 + $0x58] sm:$0xff]  ;;  %v291_v5 = vld [vmem:[%s1083_s5 + $0x40] sm:$0xff]  ;;  %v293_v6 = vld [vmem:[%s1083_s5 + $0x50] sm:$0xff] }
  0x3c   : > { %374 = vmatprep.subr.mxu0 %v308_v59  ;;  %451 = vmatprep.subr.mxu1 %v310_v60  ;;  %v284_v7 = vld [vmem:[%s1083_s5 + $0x8] sm:$0xff]  ;;  %v286_v8 = vld [vmem:[%s1083_s5 + $0x18] sm:$0xff]  ;;  %v283_v9 = vld [vmem:[%s1083_s5] sm:$0xff] }
  0x3d   : > { %375 = vmatpush1.msra.mxu0 %v307_v61  ;;  %452 = vmatpush1.msra.mxu1 %v309_v62  ;;  %v285_v10 = vld [vmem:[%s1083_s5 + $0x10] sm:$0xff]  ;;  %v1112_v11 = vld [vmem:[%s1236_s1] sm:$0xff]  ;;  %v328_v12 = vld [vmem:[%s1083_s5 + $0x168] sm:$0xff] }
  0x3e   : > { %376 = vmatprep.subr.mxu0 %v300_v63  ;;  %453 = vmatprep.subr.mxu1 %v302_v0  ;;  %v330_v13 = vld [vmem:[%s1083_s5 + $0x178] sm:$0xff]  ;;  %v327_v14 = vld [vmem:[%s1083_s5 + $0x160] sm:$0xff]  ;;  %v329_v15 = vld [vmem:[%s1083_s5 + $0x170] sm:$0xff] }
  0x3f   : > { %377 = vmatpush1.msra.mxu0 %v299_v1  ;;  %454 = vmatpush1.msra.mxu1 %v301_v2  ;;  %v320_v16 = vld [vmem:[%s1083_s5 + $0x128] sm:$0xff]  ;;  %v322_v17 = vld [vmem:[%s1083_s5 + $0x138] sm:$0xff]  ;;  %v319_v18 = vld [vmem:[%s1083_s5 + $0x120] sm:$0xff] }
  0x40   : > { %378 = vmatprep.subr.mxu0 %v292_v3  ;;  %455 = vmatprep.subr.mxu1 %v294_v4  ;;  %v321_v19 = vld [vmem:[%s1083_s5 + $0x130] sm:$0xff]  ;;  %v282_v20 = vld [vmem:[%s1236_s1 + $0x8] sm:$0xff]  ;;  %v314_v22 = vld [vmem:[%s1083_s5 + $0xf8] sm:$0xff] }
  0x41   : > { %379 = vmatpush1.msra.mxu0 %v291_v5  ;;  %456 = vmatpush1.msra.mxu1 %v293_v6  ;;  %v312_v21 = vld [vmem:[%s1083_s5 + $0xe8] sm:$0xff]  ;;  %v311_v23 = vld [vmem:[%s1083_s5 + $0xe0] sm:$0xff]  ;;  %v313_v24 = vld [vmem:[%s1083_s5 + $0xf0] sm:$0xff] }
  0x42   : > { %380 = vmatprep.subr.mxu0 %v284_v7  ;;  %457 = vmatprep.subr.mxu1 %v286_v8  ;;  %v304_v25 = vld [vmem:[%s1083_s5 + $0xa8] sm:$0xff]  ;;  %v306_v26 = vld [vmem:[%s1083_s5 + $0xb8] sm:$0xff]  ;;  %v303_v27 = vld [vmem:[%s1083_s5 + $0xa0] sm:$0xff] }
  0x43   : > { %381 = vmatpush1.msra.mxu0 %v283_v9  ;;  %458 = vmatpush1.msra.mxu1 %v285_v10  ;;  %v305_v28 = vld [vmem:[%s1083_s5 + $0xb0] sm:$0xff]  ;;  %v296_v29 = vld [vmem:[%s1083_s5 + $0x68] sm:$0xff]  ;;  %v298_v30 = vld [vmem:[%s1083_s5 + $0x78] sm:$0xff] }
  0x44   : > { %843 = vmatmul.mubr.msk.f32.vlgmr.msra.gmra.mxu0 %vm343_vm0, %v1112_v11  ;;  %845 = vmatmul.mubr.msk.f32.vlgmr.msra.gmra.mxu1 %vm343_vm0, %v1112_v11  ;;  %v295_v31 = vld [vmem:[%s1083_s5 + $0x60] sm:$0xff]  ;;  %v297_v32 = vld [vmem:[%s1083_s5 + $0x70] sm:$0xff]  ;;  %v288_v33 = vld [vmem:[%s1083_s5 + $0x28] sm:$0xff] }
  0x45   : > { %524 = vmatprep.subr.mxu0 %v328_v12  ;;  %601 = vmatprep.subr.mxu1 %v330_v13  ;;  %v290_v34 = vld [vmem:[%s1083_s5 + $0x38] sm:$0xff]  ;;  %v287_v35 = vld [vmem:[%s1083_s5 + $0x20] sm:$0xff]  ;;  %v289_v36 = vld [vmem:[%s1083_s5 + $0x30] sm:$0xff] }
  0x46   : > { %525 = vmatpush1.msra.mxu0 %v327_v14  ;;  %602 = vmatpush1.msra.mxu1 %v329_v15  ;;  %v332_v37 = vld [vmem:[%s1237_s2 + $0x8] sm:$0xff] }
  0x47   : > { %526 = vmatprep.subr.mxu0 %v320_v16  ;;  %603 = vmatprep.subr.mxu1 %v322_v17 }
  0x48   : > { %420 = vmatprep.mubr.f32.mxu0 %v911_v48  ;;  %497 = vmatprep.mubr.f32.mxu1 %v911_v48 }
  0x49   : > { %527 = vmatpush1.msra.mxu0 %v319_v18  ;;  %604 = vmatpush1.msra.mxu1 %v321_v19 }
  0x4a   : > { %844 = vmatmul.mubr.msk.f32.gmra.mxu0 %vm343_vm0, %v282_v20  ;;  %846 = vmatmul.mubr.msk.f32.gmra.mxu1 %vm343_vm0, %v282_v20 }
  0x4b   : > { %528 = vmatprep.subr.mxu0 %v312_v21  ;;  %605 = vmatprep.subr.mxu1 %v314_v22 }
  0x4c   : > { %529 = vmatpush1.msra.mxu0 %v311_v23  ;;  %606 = vmatpush1.msra.mxu1 %v313_v24 }
  0x4d   : > { %530 = vmatprep.subr.mxu0 %v304_v25  ;;  %607 = vmatprep.subr.mxu1 %v306_v26 }
  0x4e   : > { %531 = vmatpush1.msra.mxu0 %v303_v27  ;;  %608 = vmatpush1.msra.mxu1 %v305_v28 }
  0x4f   : > { %532 = vmatprep.subr.mxu0 %v296_v29  ;;  %609 = vmatprep.subr.mxu1 %v298_v30 }
  0x50   : > { %533 = vmatpush1.msra.mxu0 %v295_v31  ;;  %610 = vmatpush1.msra.mxu1 %v297_v32 }
  0x51   : > { %534 = vmatprep.subr.mxu0 %v288_v33  ;;  %611 = vmatprep.subr.mxu1 %v290_v34 }
  0x52   : > { %535 = vmatpush1.msra.mxu0 %v287_v35  ;;  %568 = vmatprep.mubr.f32.mxu0 %v911_v48 }
  0x53   : > { %612 = vmatpush1.msra.mxu1 %v289_v36  ;;  %645 = vmatprep.mubr.f32.mxu1 %v911_v48 }
  0x54   : > { %847 = vmatmul.mubr.msk.f32.vlgmr.msra.gmra.mxu0 %vm343_vm0, %v1112_v11  ;;  %849 = vmatmul.mubr.msk.f32.vlgmr.msra.gmra.mxu1 %vm343_vm0, %v1112_v11 }
  0x55   : > { %574 = vmatprep.mubr.f32.mxu0 %v911_v48  ;;  %651 = vmatprep.mubr.f32.mxu1 %v911_v48 }
  0x56   : > { %340 = vperm.xlu0 %886, %v332_v37  }
  0x58   : > { %848 = vmatmul.mubr.msk.f32.gmra.mxu0 %vm343_vm0, %v282_v20  ;;  %850 = vmatmul.mubr.msk.f32.gmra.mxu1 %vm343_vm0, %v282_v20 }
  0xb3   : > { %v1162_v38 = vpop.permute.xlu0 %335 }
  0xd1   : > { %v1170_v49 = vpop.permute.xlu0 %340 }
 0x104   : > { %v416_v39 = vpop.f32.mrf.mxu0  ;;  %v493_v40 = vpop.f32.mrf.mxu1 }
 0x105   : > { %v417_v41 = vadd.f32 %v416_v39, %v1162_v38  ;;  %v494_v42 = vadd.f32 %v493_v40, %v1162_v38 }
 0x106   : > { %v418_v43 = vpop.f32.mrf.mxu0  ;;  %v495_v44 = vpop.f32.mrf.mxu1 }
 0x107   : > { %vm658_vm1 = vcmp.gt.f32.partialorder %v417_v41, 0.0  ;;  %v674_v45 = vmul.f32 0.2, %v417_v41  ;;  %vm660_vm2 = vcmp.gt.f32.partialorder %v494_v42, 0.0  ;;  %v676_v46 = vmul.f32 0.2, %v494_v42 }
 0x108   : > { %v419_v47 = vadd.f32 %v418_v43, %v1162_v38  ;;  %v496_v48 = vadd.f32 %v495_v44, %v1162_v38 }
 0x109   : > { %v690_v50 = vsel %vm658_vm1, %v417_v41, %v674_v45  ;;  %v692_v51 = vsel %vm660_vm2, %v494_v42, %v676_v46 }
 0x10a   : > { %706 = vst [vmem:[%s1172_s12] sm:$0xff] %v690_v50  ;;  %708 = vst [vmem:[%s1172_s12 + $0x10] sm:$0xff] %v692_v51  ;;  %vm659_vm3 = vcmp.gt.f32.partialorder %v419_v47, 0.0  ;;  %v675_v52 = vmul.f32 0.2, %v419_v47  ;;  %vm661_vm4 = vcmp.gt.f32.partialorder %v496_v48, 0.0  ;;  %v422_v54 = vpop.f32.mrf.mxu0  ;;  %v499_v55 = vpop.f32.mrf.mxu1 }
 0x10b   : > { %v677_v53 = vmul.f32 0.2, %v496_v48  ;;  %v423_v56 = vadd.f32 %v422_v54, %v1170_v49  ;;  %v500_v57 = vadd.f32 %v499_v55, %v1170_v49 }
 0x10c   : > { %v691_v58 = vsel %vm659_vm3, %v419_v47, %v675_v52  ;;  %v424_v60 = vpop.f32.mrf.mxu0  ;;  %v501_v61 = vpop.f32.mrf.mxu1 }
 0x10d   : > { %v693_v59 = vsel %vm661_vm4, %v496_v48, %v677_v53  ;;  %707 = vst [vmem:[%s1172_s12 + $0x8] sm:$0xff] %v691_v58  ;;  %vm666_vm5 = vcmp.gt.f32.partialorder %v423_v56, 0.0  ;;  %vm668_vm6 = vcmp.gt.f32.partialorder %v500_v57, 0.0  ;;  %v682_v62 = vmul.f32 0.2, %v423_v56 }
 0x10e   : > { %709 = vst [vmem:[%s1172_s12 + $0x18] sm:$0xff] %v693_v59  ;;  %v684_v63 = vmul.f32 0.2, %v500_v57  ;;  %v425_v0 = vadd.f32 %v424_v60, %v1170_v49  ;;  %v502_v1 = vadd.f32 %v501_v61, %v1170_v49 }
 0x10f   : > { %v698_v2 = vsel %vm666_vm5, %v423_v56, %v682_v62 }
 0x110   : > { %v700_v3 = vsel %vm668_vm6, %v500_v57, %v684_v63  ;;  %714 = vst [vmem:[%s1172_s12 + $0x40] sm:$0xff] %v698_v2  ;;  %vm667_vm7 = vcmp.gt.f32.partialorder %v425_v0, 0.0  ;;  %v683_v4 = vmul.f32 0.2, %v425_v0  ;;  %vm669_vm8 = vcmp.gt.f32.partialorder %v502_v1, 0.0 }
 0x111   : > { %716 = vst [vmem:[%s1172_s12 + $0x50] sm:$0xff] %v700_v3  ;;  %v685_v5 = vmul.f32 0.2, %v502_v1  ;;  %v744_v40 = vld [vmem:[%s1172_s12] sm:$0xff] (%p963_p5)  ;;  %v748_v42 = vld [vmem:[%s1172_s12 + $0x10] sm:$0xff] (%p963_p5) }
 0x112   : > { %v699_v6 = vsel %vm667_vm7, %v425_v0, %v683_v4  ;;  %745 = vst [vmem:[%s731_s20] sm:$0xff] (%p963_p5), %v744_v40  ;;  %749 = vst [vmem:[%s731_s20 + $0x10] sm:$0xff] (%p963_p5), %v748_v42 }
 0x113   : > { %v701_v7 = vsel %vm669_vm8, %v502_v1, %v685_v5  ;;  %715 = vst [vmem:[%s1172_s12 + $0x48] sm:$0xff] %v699_v6 }
 0x114   : > { %717 = vst [vmem:[%s1172_s12 + $0x58] sm:$0xff] %v701_v7  ;;  %v570_v8 = vpop.f32.mrf.mxu0  ;;  %v647_v9 = vpop.f32.mrf.mxu1  ;;  %v746_v41 = vld [vmem:[%s1172_s12 + $0x8] sm:$0xff] (%p963_p5) }
 0x115   : > { %v571_v10 = vadd.f32 %v570_v8, %v1162_v38  ;;  %v648_v11 = vadd.f32 %v647_v9, %v1162_v38  ;;  %v750_v43 = vld [vmem:[%s1172_s12 + $0x18] sm:$0xff] (%p963_p5)  ;;  %747 = vst [vmem:[%s731_s20 + $0x8] sm:$0xff] (%p963_p5), %v746_v41 }
 0x116   : > { %v572_v12 = vpop.f32.mrf.mxu0  ;;  %v649_v13 = vpop.f32.mrf.mxu1  ;;  %751 = vst [vmem:[%s731_s20 + $0x18] sm:$0xff] (%p963_p5), %v750_v43 }
 0x117   : > { %vm662_vm9 = vcmp.gt.f32.partialorder %v571_v10, 0.0  ;;  %v678_v14 = vmul.f32 0.2, %v571_v10  ;;  %vm664_vm10 = vcmp.gt.f32.partialorder %v648_v11, 0.0  ;;  %v680_v15 = vmul.f32 0.2, %v648_v11 }
 0x118   : > { %v573_v16 = vadd.f32 %v572_v12, %v1162_v38  ;;  %v650_v17 = vadd.f32 %v649_v13, %v1162_v38  ;;  %v576_v18 = vpop.f32.mrf.mxu0  ;;  %v653_v19 = vpop.f32.mrf.mxu1  ;;  %v760_v48 = vld [vmem:[%s1172_s12 + $0x40] sm:$0xff] (%p963_p5)  ;;  %v764_v50 = vld [vmem:[%s1172_s12 + $0x50] sm:$0xff] (%p963_p5) }
 0x119   : > { %v694_v20 = vsel %vm662_vm9, %v571_v10, %v678_v14  ;;  %v696_v21 = vsel %vm664_vm10, %v648_v11, %v680_v15  ;;  %v577_v22 = vadd.f32 %v576_v18, %v1170_v49  ;;  %v654_v23 = vadd.f32 %v653_v19, %v1170_v49  ;;  %761 = vst [vmem:[%s731_s20 + $0x80] sm:$0xff] (%p963_p5), %v760_v48 }
 0x11a   : > { %710 = vst [vmem:[%s1172_s12 + $0x20] sm:$0xff] %v694_v20  ;;  %712 = vst [vmem:[%s1172_s12 + $0x30] sm:$0xff] %v696_v21  ;;  %vm663_vm11 = vcmp.gt.f32.partialorder %v573_v16, 0.0  ;;  %v679_v24 = vmul.f32 0.2, %v573_v16  ;;  %vm665_vm12 = vcmp.gt.f32.partialorder %v650_v17, 0.0  ;;  %v578_v26 = vpop.f32.mrf.mxu0  ;;  %v655_v27 = vpop.f32.mrf.mxu1 }
 0x11b   : > { %v681_v25 = vmul.f32 0.2, %v650_v17  ;;  %vm670_vm13 = vcmp.gt.f32.partialorder %v577_v22, 0.0  ;;  %v686_v28 = vmul.f32 0.2, %v577_v22  ;;  %vm672_vm14 = vcmp.gt.f32.partialorder %v654_v23, 0.0 }
 0x11c   : > { %v688_v29 = vmul.f32 0.2, %v654_v23  ;;  %v695_v30 = vsel %vm663_vm11, %v573_v16, %v679_v24  ;;  %v579_v32 = vadd.f32 %v578_v26, %v1170_v49  ;;  %v656_v33 = vadd.f32 %v655_v27, %v1170_v49  ;;  %v762_v49 = vld [vmem:[%s1172_s12 + $0x48] sm:$0xff] (%p963_p5)  ;;  %v766_v51 = vld [vmem:[%s1172_s12 + $0x58] sm:$0xff] (%p963_p5)  ;;  %765 = vst [vmem:[%s731_s20 + $0x90] sm:$0xff] (%p963_p5), %v764_v50 }
 0x11d   : > { %v697_v31 = vsel %vm665_vm12, %v650_v17, %v681_v25  ;;  %711 = vst [vmem:[%s1172_s12 + $0x28] sm:$0xff] %v695_v30  ;;  %v702_v34 = vsel %vm670_vm13, %v577_v22, %v686_v28  ;;  %763 = vst [vmem:[%s731_s20 + $0x88] sm:$0xff] (%p963_p5), %v762_v49 }
 0x11e   : > { %713 = vst [vmem:[%s1172_s12 + $0x38] sm:$0xff] %v697_v31  ;;  %v704_v35 = vsel %vm672_vm14, %v654_v23, %v688_v29  ;;  %718 = vst [vmem:[%s1172_s12 + $0x60] sm:$0xff] %v702_v34  ;;  %vm671_vm15 = vcmp.gt.f32.partialorder %v579_v32, 0.0  ;;  %v687_v36 = vmul.f32 0.2, %v579_v32  ;;  %vm673_vm0 = vcmp.gt.f32.partialorder %v656_v33, 0.0 }
 0x11f   : > { %720 = vst [vmem:[%s1172_s12 + $0x70] sm:$0xff] %v704_v35  ;;  %v689_v37 = vmul.f32 0.2, %v656_v33  ;;  %728 = sbr.rel (!%p963_p5) target bundleno = 299 (0x12b), region = 59  ;;  %767 = vst [vmem:[%s731_s20 + $0x98] sm:$0xff] (%p963_p5), %v766_v51 }
 0x120   : > { %v703_v38 = vsel %vm671_vm15, %v579_v32, %v687_v36 }
 0x121   : > { %v705_v39 = vsel %vm673_vm0, %v656_v33, %v689_v37  ;;  %719 = vst [vmem:[%s1172_s12 + $0x68] sm:$0xff] %v703_v38  ;;  %v752_v44 = vld [vmem:[%s1172_s12 + $0x20] sm:$0xff] (%p963_p5)  ;;  %v756_v46 = vld [vmem:[%s1172_s12 + $0x30] sm:$0xff] (%p963_p5) }
 0x122   : > { %721 = vst [vmem:[%s1172_s12 + $0x78] sm:$0xff] %v705_v39  ;;  %753 = vst [vmem:[%s731_s20 + $0x20] sm:$0xff] (%p963_p5), %v752_v44 }
 0x123   : > { %757 = vst [vmem:[%s731_s20 + $0x30] sm:$0xff] (%p963_p5), %v756_v46 }
 0x124   : > { %v754_v45 = vld [vmem:[%s1172_s12 + $0x28] sm:$0xff] }
 0x125   : > { %755 = vst [vmem:[%s731_s20 + $0x28] sm:$0xff] %v754_v45  ;;  %v758_v47 = vld [vmem:[%s1172_s12 + $0x38] sm:$0xff]  ;;  %v768_v52 = vld [vmem:[%s1172_s12 + $0x60] sm:$0xff] }
 0x126   : > { %759 = vst [vmem:[%s731_s20 + $0x38] sm:$0xff] %v758_v47  ;;  %v772_v54 = vld [vmem:[%s1172_s12 + $0x70] sm:$0xff]  ;;  %769 = vst [vmem:[%s731_s20 + $0xa0] sm:$0xff] %v768_v52 }
 0x127   : > { %773 = vst [vmem:[%s731_s20 + $0xb0] sm:$0xff] %v772_v54 }
 0x128   : > { %v770_v53 = vld [vmem:[%s1172_s12 + $0x68] sm:$0xff] }
 0x129   : > { %771 = vst [vmem:[%s731_s20 + $0xa8] sm:$0xff] %v770_v53  ;;  %v774_v55 = vld [vmem:[%s1172_s12 + $0x78] sm:$0xff] }
 0x12a   : > { %775 = vst [vmem:[%s731_s20 + $0xb8] sm:$0xff] %v774_v55 }
 0x12b PF: > { %p10_p10 = scmp.ge.s32.totalorder %s950_s16, 4   ;;  %s1240_s12 = smov %s905_s13 }
 0x12c   : > { %s1241_s13 = smov %s961_s19  ;;  %s1242_s14 = smov %s950_s16 }
 0x12d   :  { %12 = sbr.rel (!%p10_p10) target bundleno = 2 (0x2), region = 113 }

// kernel: discriminator_forward.5
= control target key start
LH: loop header
LB: loop body
LE: loop exit
PB: predicated region body
PF: predicated region fallthrough
CT: control target
= control target key end

     0   :  { %s1218_s0 = inlined_call_operand.vmem [shape: f32[256,512], index: 0, kind: input, shape index: {}]   ;;  %s1219_s1 = inlined_call_operand.vmem [shape: f32[32,256], index: 1, kind: input, shape index: {}]   ;;  %s1220_s2 = inlined_call_operand.vmem [shape: f32[32,1], index: 2, kind: input, shape index: {}]   ;;  %s1221_s3 = inlined_call_operand.vmem [shape: f32[32,1], index: 3, kind: input, shape index: {}]   ;;  %s1222_s4 = inlined_call_operand.vmem [shape: f32[32,512], index: 4, kind: output, shape index: {}]  }
   0x1   :  { %v86_v0 = vld [vmem:[%s1218_s0 + $0x1e8] sm:$0xff]  ;;  %v85_v1 = vld [vmem:[%s1218_s0 + $0x1e0] sm:$0xff]  ;;  %v88_v3 = vld [vmem:[%s1218_s0 + $0x1f8] sm:$0xff] }
   0x2   :  { %v82_v2 = vld [vmem:[%s1218_s0 + $0x1c8] sm:$0xff]  ;;  %153 = vmatprep.subr.mxu0 %v86_v0  ;;  %v81_v4 = vld [vmem:[%s1218_s0 + $0x1c0] sm:$0xff]  ;;  %v87_v5 = vld [vmem:[%s1218_s0 + $0x1f0] sm:$0xff]  ;;  %242 = vmatprep.subr.mxu1 %v88_v3 }
   0x3   :  { %154 = vmatpush1.msra.mxu0 %v85_v1  ;;  %v78_v6 = vld [vmem:[%s1218_s0 + $0x1a8] sm:$0xff]  ;;  %v84_v7 = vld [vmem:[%s1218_s0 + $0x1d8] sm:$0xff]  ;;  %243 = vmatpush1.msra.mxu1 %v87_v5  ;;  %v77_v8 = vld [vmem:[%s1218_s0 + $0x1a0] sm:$0xff] }
   0x4   :  { %155 = vmatprep.subr.mxu0 %v82_v2  ;;  %v83_v9 = vld [vmem:[%s1218_s0 + $0x1d0] sm:$0xff]  ;;  %v80_v10 = vld [vmem:[%s1218_s0 + $0x1b8] sm:$0xff]  ;;  %244 = vmatprep.subr.mxu1 %v84_v7  ;;  %v74_v11 = vld [vmem:[%s1218_s0 + $0x188] sm:$0xff] }
   0x5   :  { %156 = vmatpush1.msra.mxu0 %v81_v4  ;;  %v79_v12 = vld [vmem:[%s1218_s0 + $0x1b0] sm:$0xff]  ;;  %245 = vmatpush1.msra.mxu1 %v83_v9  ;;  %v73_v13 = vld [vmem:[%s1218_s0 + $0x180] sm:$0xff]  ;;  %v76_v14 = vld [vmem:[%s1218_s0 + $0x198] sm:$0xff] }
   0x6   :  { %157 = vmatprep.subr.mxu0 %v78_v6  ;;  %246 = vmatprep.subr.mxu1 %v80_v10  ;;  %v70_v15 = vld [vmem:[%s1218_s0 + $0x168] sm:$0xff]  ;;  %v75_v16 = vld [vmem:[%s1218_s0 + $0x190] sm:$0xff]  ;;  %v69_v17 = vld [vmem:[%s1218_s0 + $0x160] sm:$0xff] }
   0x7   :  { %158 = vmatpush1.msra.mxu0 %v77_v8  ;;  %247 = vmatpush1.msra.mxu1 %v79_v12  ;;  %v72_v18 = vld [vmem:[%s1218_s0 + $0x178] sm:$0xff]  ;;  %v66_v19 = vld [vmem:[%s1218_s0 + $0x148] sm:$0xff]  ;;  %v71_v20 = vld [vmem:[%s1218_s0 + $0x170] sm:$0xff] }
   0x8   :  { %159 = vmatprep.subr.mxu0 %v74_v11  ;;  %248 = vmatprep.subr.mxu1 %v76_v14  ;;  %v65_v21 = vld [vmem:[%s1218_s0 + $0x140] sm:$0xff]  ;;  %v68_v22 = vld [vmem:[%s1218_s0 + $0x158] sm:$0xff]  ;;  %v62_v23 = vld [vmem:[%s1218_s0 + $0x128] sm:$0xff] }
   0x9   :  { %160 = vmatpush1.msra.mxu0 %v73_v13  ;;  %249 = vmatpush1.msra.mxu1 %v75_v16  ;;  %v67_v24 = vld [vmem:[%s1218_s0 + $0x150] sm:$0xff]  ;;  %v61_v25 = vld [vmem:[%s1218_s0 + $0x120] sm:$0xff]  ;;  %v64_v26 = vld [vmem:[%s1218_s0 + $0x138] sm:$0xff] }
   0xa   :  { %161 = vmatprep.subr.mxu0 %v70_v15  ;;  %250 = vmatprep.subr.mxu1 %v72_v18  ;;  %v58_v27 = vld [vmem:[%s1218_s0 + $0x108] sm:$0xff]  ;;  %v63_v28 = vld [vmem:[%s1218_s0 + $0x130] sm:$0xff]  ;;  %v57_v29 = vld [vmem:[%s1218_s0 + $0x100] sm:$0xff] }
   0xb   :  { %162 = vmatpush1.msra.mxu0 %v69_v17  ;;  %251 = vmatpush1.msra.mxu1 %v71_v20  ;;  %v60_v30 = vld [vmem:[%s1218_s0 + $0x118] sm:$0xff]  ;;  %v54_v31 = vld [vmem:[%s1218_s0 + $0xe8] sm:$0xff]  ;;  %v59_v32 = vld [vmem:[%s1218_s0 + $0x110] sm:$0xff] }
   0xc   :  { %163 = vmatprep.subr.mxu0 %v66_v19  ;;  %252 = vmatprep.subr.mxu1 %v68_v22  ;;  %v53_v33 = vld [vmem:[%s1218_s0 + $0xe0] sm:$0xff]  ;;  %v56_v34 = vld [vmem:[%s1218_s0 + $0xf8] sm:$0xff]  ;;  %v50_v35 = vld [vmem:[%s1218_s0 + $0xc8] sm:$0xff] }
   0xd   :  { %164 = vmatpush1.msra.mxu0 %v65_v21  ;;  %253 = vmatpush1.msra.mxu1 %v67_v24  ;;  %v55_v36 = vld [vmem:[%s1218_s0 + $0xf0] sm:$0xff]  ;;  %v49_v37 = vld [vmem:[%s1218_s0 + $0xc0] sm:$0xff]  ;;  %v52_v38 = vld [vmem:[%s1218_s0 + $0xd8] sm:$0xff] }
   0xe   :  { %165 = vmatprep.subr.mxu0 %v62_v23  ;;  %254 = vmatprep.subr.mxu1 %v64_v26  ;;  %v46_v39 = vld [vmem:[%s1218_s0 + $0xa8] sm:$0xff]  ;;  %v51_v40 = vld [vmem:[%s1218_s0 + $0xd0] sm:$0xff]  ;;  %v45_v41 = vld [vmem:[%s1218_s0 + $0xa0] sm:$0xff] }
   0xf   :  { %166 = vmatpush1.msra.mxu0 %v61_v25  ;;  %255 = vmatpush1.msra.mxu1 %v63_v28  ;;  %v48_v42 = vld [vmem:[%s1218_s0 + $0xb8] sm:$0xff]  ;;  %v42_v43 = vld [vmem:[%s1218_s0 + $0x88] sm:$0xff]  ;;  %v47_v44 = vld [vmem:[%s1218_s0 + $0xb0] sm:$0xff] }
  0x10   :  { %167 = vmatprep.subr.mxu0 %v58_v27  ;;  %256 = vmatprep.subr.mxu1 %v60_v30  ;;  %v41_v45 = vld [vmem:[%s1218_s0 + $0x80] sm:$0xff]  ;;  %v44_v46 = vld [vmem:[%s1218_s0 + $0x98] sm:$0xff]  ;;  %v38_v47 = vld [vmem:[%s1218_s0 + $0x68] sm:$0xff] }
  0x11   :  { %168 = vmatpush1.msra.mxu0 %v57_v29  ;;  %257 = vmatpush1.msra.mxu1 %v59_v32  ;;  %v43_v48 = vld [vmem:[%s1218_s0 + $0x90] sm:$0xff]  ;;  %v37_v49 = vld [vmem:[%s1218_s0 + $0x60] sm:$0xff]  ;;  %v40_v50 = vld [vmem:[%s1218_s0 + $0x78] sm:$0xff] }
  0x12   :  { %169 = vmatprep.subr.mxu0 %v54_v31  ;;  %258 = vmatprep.subr.mxu1 %v56_v34  ;;  %v34_v51 = vld [vmem:[%s1218_s0 + $0x48] sm:$0xff]  ;;  %v39_v52 = vld [vmem:[%s1218_s0 + $0x70] sm:$0xff]  ;;  %v33_v53 = vld [vmem:[%s1218_s0 + $0x40] sm:$0xff] }
  0x13   :  { %170 = vmatpush1.msra.mxu0 %v53_v33  ;;  %259 = vmatpush1.msra.mxu1 %v55_v36  ;;  %v36_v54 = vld [vmem:[%s1218_s0 + $0x58] sm:$0xff]  ;;  %v30_v55 = vld [vmem:[%s1218_s0 + $0x28] sm:$0xff]  ;;  %v35_v56 = vld [vmem:[%s1218_s0 + $0x50] sm:$0xff] }
  0x14   :  { %171 = vmatprep.subr.mxu0 %v50_v35  ;;  %260 = vmatprep.subr.mxu1 %v52_v38  ;;  %v29_v57 = vld [vmem:[%s1218_s0 + $0x20] sm:$0xff]  ;;  %v32_v58 = vld [vmem:[%s1218_s0 + $0x38] sm:$0xff]  ;;  %v26_v59 = vld [vmem:[%s1218_s0 + $0x8] sm:$0xff] }
  0x15   :  { %172 = vmatpush1.msra.mxu0 %v49_v37  ;;  %261 = vmatpush1.msra.mxu1 %v51_v40  ;;  %v31_v60 = vld [vmem:[%s1218_s0 + $0x30] sm:$0xff]  ;;  %v25_v61 = vld [vmem:[%s1218_s0] sm:$0xff]  ;;  %v28_v62 = vld [vmem:[%s1218_s0 + $0x18] sm:$0xff] }
  0x16   :  { %173 = vmatprep.subr.mxu0 %v46_v39  ;;  %262 = vmatprep.subr.mxu1 %v48_v42  ;;  %v150_v63 = vld [vmem:[%s1218_s0 + $0x3e8] sm:$0xff]  ;;  %v27_v0 = vld [vmem:[%s1218_s0 + $0x10] sm:$0xff]  ;;  %v149_v1 = vld [vmem:[%s1218_s0 + $0x3e0] sm:$0xff] }
  0x17   :  { %174 = vmatpush1.msra.mxu0 %v45_v41  ;;  %263 = vmatpush1.msra.mxu1 %v47_v44  ;;  %v152_v2 = vld [vmem:[%s1218_s0 + $0x3f8] sm:$0xff]  ;;  %v146_v3 = vld [vmem:[%s1218_s0 + $0x3c8] sm:$0xff]  ;;  %v151_v4 = vld [vmem:[%s1218_s0 + $0x3f0] sm:$0xff] }
  0x18   :  { %175 = vmatprep.subr.mxu0 %v42_v43  ;;  %264 = vmatprep.subr.mxu1 %v44_v46  ;;  %v145_v5 = vld [vmem:[%s1218_s0 + $0x3c0] sm:$0xff]  ;;  %v148_v6 = vld [vmem:[%s1218_s0 + $0x3d8] sm:$0xff]  ;;  %v142_v7 = vld [vmem:[%s1218_s0 + $0x3a8] sm:$0xff] }
  0x19   :  { %176 = vmatpush1.msra.mxu0 %v41_v45  ;;  %265 = vmatpush1.msra.mxu1 %v43_v48  ;;  %v147_v8 = vld [vmem:[%s1218_s0 + $0x3d0] sm:$0xff]  ;;  %v141_v9 = vld [vmem:[%s1218_s0 + $0x3a0] sm:$0xff]  ;;  %v144_v10 = vld [vmem:[%s1218_s0 + $0x3b8] sm:$0xff] }
  0x1a   :  { %177 = vmatprep.subr.mxu0 %v38_v47  ;;  %266 = vmatprep.subr.mxu1 %v40_v50  ;;  %v138_v11 = vld [vmem:[%s1218_s0 + $0x388] sm:$0xff]  ;;  %v143_v12 = vld [vmem:[%s1218_s0 + $0x3b0] sm:$0xff]  ;;  %v137_v13 = vld [vmem:[%s1218_s0 + $0x380] sm:$0xff] }
  0x1b   :  { %178 = vmatpush1.msra.mxu0 %v37_v49  ;;  %267 = vmatpush1.msra.mxu1 %v39_v52  ;;  %v140_v14 = vld [vmem:[%s1218_s0 + $0x398] sm:$0xff]  ;;  %v134_v15 = vld [vmem:[%s1218_s0 + $0x368] sm:$0xff]  ;;  %v139_v16 = vld [vmem:[%s1218_s0 + $0x390] sm:$0xff] }
  0x1c   :  { %179 = vmatprep.subr.mxu0 %v34_v51  ;;  %268 = vmatprep.subr.mxu1 %v36_v54  ;;  %v133_v17 = vld [vmem:[%s1218_s0 + $0x360] sm:$0xff]  ;;  %v136_v18 = vld [vmem:[%s1218_s0 + $0x378] sm:$0xff]  ;;  %v130_v19 = vld [vmem:[%s1218_s0 + $0x348] sm:$0xff] }
  0x1d   :  { %180 = vmatpush1.msra.mxu0 %v33_v53  ;;  %269 = vmatpush1.msra.mxu1 %v35_v56  ;;  %v135_v20 = vld [vmem:[%s1218_s0 + $0x370] sm:$0xff]  ;;  %v129_v21 = vld [vmem:[%s1218_s0 + $0x340] sm:$0xff]  ;;  %v132_v22 = vld [vmem:[%s1218_s0 + $0x358] sm:$0xff] }
  0x1e   :  { %181 = vmatprep.subr.mxu0 %v30_v55  ;;  %270 = vmatprep.subr.mxu1 %v32_v58  ;;  %v126_v23 = vld [vmem:[%s1218_s0 + $0x328] sm:$0xff]  ;;  %v131_v24 = vld [vmem:[%s1218_s0 + $0x350] sm:$0xff]  ;;  %v125_v25 = vld [vmem:[%s1218_s0 + $0x320] sm:$0xff] }
  0x1f   :  { %182 = vmatpush1.msra.mxu0 %v29_v57  ;;  %271 = vmatpush1.msra.mxu1 %v31_v60  ;;  %v128_v26 = vld [vmem:[%s1218_s0 + $0x338] sm:$0xff]  ;;  %v122_v27 = vld [vmem:[%s1218_s0 + $0x308] sm:$0xff]  ;;  %v127_v28 = vld [vmem:[%s1218_s0 + $0x330] sm:$0xff] }
  0x20   :  { %183 = vmatprep.subr.mxu0 %v26_v59  ;;  %272 = vmatprep.subr.mxu1 %v28_v62  ;;  %v121_v29 = vld [vmem:[%s1218_s0 + $0x300] sm:$0xff]  ;;  %v124_v30 = vld [vmem:[%s1218_s0 + $0x318] sm:$0xff]  ;;  %v118_v31 = vld [vmem:[%s1218_s0 + $0x2e8] sm:$0xff] }
  0x21   :  { %184 = vmatpush1.msra.mxu0 %v25_v61  ;;  %273 = vmatpush1.msra.mxu1 %v27_v0  ;;  %v123_v32 = vld [vmem:[%s1218_s0 + $0x310] sm:$0xff]  ;;  %v117_v33 = vld [vmem:[%s1218_s0 + $0x2e0] sm:$0xff]  ;;  %v120_v34 = vld [vmem:[%s1218_s0 + $0x2f8] sm:$0xff] }
  0x22   :  { %185 = vmatprep.subr.mxu0 %v150_v63  ;;  %274 = vmatprep.subr.mxu1 %v152_v2  ;;  %v114_v35 = vld [vmem:[%s1218_s0 + $0x2c8] sm:$0xff]  ;;  %v119_v36 = vld [vmem:[%s1218_s0 + $0x2f0] sm:$0xff]  ;;  %v113_v37 = vld [vmem:[%s1218_s0 + $0x2c0] sm:$0xff] }
  0x23   :  { %186 = vmatpush2.msra.mxu0 %v149_v1  ;;  %275 = vmatpush2.msra.mxu1 %v151_v4  ;;  %v116_v38 = vld [vmem:[%s1218_s0 + $0x2d8] sm:$0xff]  ;;  %v110_v39 = vld [vmem:[%s1218_s0 + $0x2a8] sm:$0xff]  ;;  %v115_v40 = vld [vmem:[%s1218_s0 + $0x2d0] sm:$0xff] }
  0x24   :  { %187 = vmatprep.subr.mxu0 %v146_v3  ;;  %276 = vmatprep.subr.mxu1 %v148_v6  ;;  %v109_v41 = vld [vmem:[%s1218_s0 + $0x2a0] sm:$0xff]  ;;  %v112_v42 = vld [vmem:[%s1218_s0 + $0x2b8] sm:$0xff]  ;;  %v106_v43 = vld [vmem:[%s1218_s0 + $0x288] sm:$0xff] }
  0x25   :  { %188 = vmatpush2.msra.mxu0 %v145_v5  ;;  %277 = vmatpush2.msra.mxu1 %v147_v8  ;;  %v111_v44 = vld [vmem:[%s1218_s0 + $0x2b0] sm:$0xff]  ;;  %v105_v45 = vld [vmem:[%s1218_s0 + $0x280] sm:$0xff]  ;;  %v108_v46 = vld [vmem:[%s1218_s0 + $0x298] sm:$0xff]  ;;  %v606_v8 = vmov 0  }
  0x26   :  { %189 = vmatprep.subr.mxu0 %v142_v7  ;;  %278 = vmatprep.subr.mxu1 %v144_v10  ;;  %v102_v47 = vld [vmem:[%s1218_s0 + $0x268] sm:$0xff]  ;;  %v107_v48 = vld [vmem:[%s1218_s0 + $0x290] sm:$0xff]  ;;  %v101_v49 = vld [vmem:[%s1218_s0 + $0x260] sm:$0xff] }
  0x27   :  { %190 = vmatpush2.msra.mxu0 %v141_v9  ;;  %279 = vmatpush2.msra.mxu1 %v143_v12  ;;  %v104_v50 = vld [vmem:[%s1218_s0 + $0x278] sm:$0xff]  ;;  %v98_v51 = vld [vmem:[%s1218_s0 + $0x248] sm:$0xff]  ;;  %v103_v52 = vld [vmem:[%s1218_s0 + $0x270] sm:$0xff] }
  0x28   :  { %191 = vmatprep.subr.mxu0 %v138_v11  ;;  %280 = vmatprep.subr.mxu1 %v140_v14  ;;  %v97_v53 = vld [vmem:[%s1218_s0 + $0x240] sm:$0xff]  ;;  %v100_v54 = vld [vmem:[%s1218_s0 + $0x258] sm:$0xff]  ;;  %v94_v55 = vld [vmem:[%s1218_s0 + $0x228] sm:$0xff] }
  0x29   :  { %192 = vmatpush2.msra.mxu0 %v137_v13  ;;  %281 = vmatpush2.msra.mxu1 %v139_v16  ;;  %v99_v56 = vld [vmem:[%s1218_s0 + $0x250] sm:$0xff]  ;;  %v93_v57 = vld [vmem:[%s1218_s0 + $0x220] sm:$0xff]  ;;  %v96_v58 = vld [vmem:[%s1218_s0 + $0x238] sm:$0xff] }
  0x2a   :  { %193 = vmatprep.subr.mxu0 %v134_v15  ;;  %282 = vmatprep.subr.mxu1 %v136_v18  ;;  %v90_v59 = vld [vmem:[%s1218_s0 + $0x208] sm:$0xff]  ;;  %v89_v61 = vld [vmem:[%s1218_s0 + $0x200] sm:$0xff]  ;;  %v95_v62 = vld [vmem:[%s1218_s0 + $0x230] sm:$0xff] }
  0x2b   :  { %194 = vmatpush2.msra.mxu0 %v133_v17  ;;  %283 = vmatpush2.msra.mxu1 %v135_v20  ;;  %v18_v60 = vld [vmem:[%s1219_s1 + $0x8] sm:$0xff]  ;;  %v17_v63 = vld [vmem:[%s1219_s1] sm:$0xff]  ;;  %v92_v0 = vld [vmem:[%s1218_s0 + $0x218] sm:$0xff] }
  0x2c   :  { %195 = vmatprep.subr.mxu0 %v130_v19  ;;  %284 = vmatprep.subr.mxu1 %v132_v22  ;;  %v91_v1 = vld [vmem:[%s1218_s0 + $0x210] sm:$0xff]  ;;  %v20_v2 = vld [vmem:[%s1219_s1 + $0x18] sm:$0xff]  ;;  %v22_v4 = vld [vmem:[%s1219_s1 + $0x28] sm:$0xff] }
  0x2d   :  { %196 = vmatpush2.msra.mxu0 %v129_v21  ;;  %285 = vmatpush2.msra.mxu1 %v131_v24  ;;  %v19_v3 = vld [vmem:[%s1219_s1 + $0x10] sm:$0xff]  ;;  %v21_v5 = vld [vmem:[%s1219_s1 + $0x20] sm:$0xff]  ;;  %v24_v6 = vld [vmem:[%s1219_s1 + $0x38] sm:$0xff] }
  0x2e   :  { %197 = vmatprep.subr.mxu0 %v126_v23  ;;  %286 = vmatprep.subr.mxu1 %v128_v26  ;;  %v23_v7 = vld [vmem:[%s1219_s1 + $0x30] sm:$0xff] }
  0x2f   :  { %198 = vmatpush2.msra.mxu0 %v125_v25  ;;  %287 = vmatpush2.msra.mxu1 %v127_v28 }
  0x30   :  { %199 = vmatprep.subr.mxu0 %v122_v27  ;;  %288 = vmatprep.subr.mxu1 %v124_v30 }
  0x31   :  { %200 = vmatpush2.msra.mxu0 %v121_v29  ;;  %289 = vmatpush2.msra.mxu1 %v123_v32 }
  0x32   :  { %201 = vmatprep.subr.mxu0 %v118_v31  ;;  %290 = vmatprep.subr.mxu1 %v120_v34 }
  0x33   :  { %202 = vmatpush2.msra.mxu0 %v117_v33  ;;  %291 = vmatpush2.msra.mxu1 %v119_v36 }
  0x34   :  { %203 = vmatprep.subr.mxu0 %v114_v35  ;;  %292 = vmatprep.subr.mxu1 %v116_v38 }
  0x35   :  { %204 = vmatpush2.msra.mxu0 %v113_v37  ;;  %293 = vmatpush2.msra.mxu1 %v115_v40 }
  0x36   :  { %205 = vmatprep.subr.mxu0 %v110_v39  ;;  %294 = vmatprep.subr.mxu1 %v112_v42 }
  0x37   :  { %206 = vmatpush2.msra.mxu0 %v109_v41  ;;  %295 = vmatpush2.msra.mxu1 %v111_v44 }
  0x38   :  { %207 = vmatprep.subr.mxu0 %v106_v43  ;;  %296 = vmatprep.subr.mxu1 %v108_v46 }
  0x39   :  { %208 = vmatpush2.msra.mxu0 %v105_v45  ;;  %297 = vmatpush2.msra.mxu1 %v107_v48 }
  0x3a   :  { %209 = vmatprep.subr.mxu0 %v102_v47  ;;  %298 = vmatprep.subr.mxu1 %v104_v50 }
  0x3b   :  { %210 = vmatpush2.msra.mxu0 %v101_v49  ;;  %299 = vmatpush2.msra.mxu1 %v103_v52  ;;  %v449_v52 = vld [vmem:[%s1220_s2 + $0x10] sm:$0xff] }
  0x3c   :  { %211 = vmatprep.subr.mxu0 %v98_v51  ;;  %300 = vmatprep.subr.mxu1 %v100_v54  ;;  %v448_v51 = vld [vmem:[%s1220_s2 + $0x8] sm:$0xff]  ;;  %v450_v54 = vld [vmem:[%s1220_s2 + $0x18] sm:$0xff] }
  0x3d   :  { %212 = vmatpush2.msra.mxu0 %v97_v53  ;;  %301 = vmatpush2.msra.mxu1 %v99_v56  ;;  %v447_v53 = vld [vmem:[%s1220_s2] sm:$0xff]  ;;  %v488_v56 = vld [vmem:[%s1221_s3 + $0x8] sm:$0xff] }
  0x3e   :  { %213 = vmatprep.subr.mxu0 %v94_v55  ;;  %302 = vmatprep.subr.mxu1 %v96_v58  ;;  %v487_v55 = vld [vmem:[%s1221_s3] sm:$0xff] }
  0x3f   :  { %214 = vmatpush2.msra.mxu0 %v93_v57  ;;  %217 = vmatprep.mubr.f32.mxu0 %v18_v60  ;;  %v489_v57 = vld [vmem:[%s1221_s3 + $0x10] sm:$0xff] }
  0x40   :  { %215 = vmatprep.subr.mxu0 %v90_v59  ;;  %303 = vmatpush2.msra.mxu1 %v95_v62 }
  0x41   :  { %216 = vmatpush2.msra.mxu0 %v89_v61  ;;  %304 = vmatprep.subr.mxu1 %v92_v0 }
  0x42   :  { %218 = vmatmul.mubr.f32.vlgmr.msra.gmra.mxu0 %v17_v63  ;;  %305 = vmatpush2.msra.mxu1 %v91_v1 }
  0x43   :  { %306 = vmatprep.mubr.f32.mxu1 %v18_v60  ;;  %223 = vmatprep.mubr.f32.mxu0 %v20_v2 }
  0x44   :  { %307 = vmatmul.mubr.f32.vlgmr.msra.gmra.mxu1 %v17_v63  ;;  %597 = vset.pattern.permute.xlu1 %v606_v8 }
  0x45   :  { %312 = vmatprep.mubr.f32.mxu1 %v20_v2  ;;  %596 = vset.pattern.permute.xlu0 %v606_v8  ;;  %v490_v8 = vld [vmem:[%s1221_s3 + $0x18] sm:$0xff] }
  0x46   :  { %224 = vmatmul.mubr.f32.gmra.mxu0 %v19_v3 }
  0x47   :  { %229 = vmatprep.mubr.f32.mxu0 %v22_v4 }
  0x48   :  { %313 = vmatmul.mubr.f32.gmra.mxu1 %v19_v3 }
  0x49   :  { %318 = vmatprep.mubr.f32.mxu1 %v22_v4 }
  0x4a   :  { %230 = vmatmul.mubr.f32.gmra.mxu0 %v21_v5 }
  0x4b   :  { %235 = vmatprep.mubr.f32.mxu0 %v24_v6 }
  0x4c   :  { %319 = vmatmul.mubr.f32.gmra.mxu1 %v21_v5 }
  0x4d   :  { %324 = vmatprep.mubr.f32.mxu1 %v24_v6 }
  0x4e   :  { %236 = vmatmul.mubr.f32.gmra.mxu0 %v23_v7 }
  0x50   :  { %325 = vmatmul.mubr.f32.gmra.mxu1 %v23_v7 }
 0x102   :  { %v1040_v9 = vpop.f32.mrf.mxu0 }
 0x103   :  { %v355_v12 = vmul.f32 %v1040_v9, %v1040_v9 }
 0x104   :  { %v1042_v10 = vpop.f32.mrf.mxu0  ;;  %v1044_v11 = vpop.f32.mrf.mxu1 }
 0x105   :  { %v331_v13 = vadd.f32 %v1042_v10, %v1040_v9  ;;  %v356_v14 = vmul.f32 %v1042_v10, %v1042_v10  ;;  %v357_v15 = vmul.f32 %v1044_v11, %v1044_v11 }
 0x106   :  { %v1054_v16 = vpop.f32.mrf.mxu0  ;;  %v1056_v17 = vpop.f32.mrf.mxu1 }
 0x107   :  { %v332_v18 = vadd.f32 %v331_v13, %v1044_v11  ;;  %v371_v19 = vadd.f32 %v356_v14, %v355_v12  ;;  %v359_v20 = vmul.f32 %v1054_v16, %v1054_v16  ;;  %v358_v29 = vmul.f32 %v1056_v17, %v1056_v17 }
 0x108   :  { %v1061_v21 = vpop.f32.mrf.mxu0  ;;  %v1063_v22 = vpop.f32.mrf.mxu1 }
 0x109   :  { %v336_v23 = vadd.f32 %v1061_v21, %v1054_v16  ;;  %v360_v24 = vmul.f32 %v1061_v21, %v1061_v21  ;;  %v361_v25 = vmul.f32 %v1063_v22, %v1063_v22  ;;  %v333_v26 = vadd.f32 %v332_v18, %v1056_v17 }
 0x10a   :  { %v1072_v27 = vpop.f32.mrf.mxu0  ;;  %v1074_v28 = vpop.f32.mrf.mxu1  ;;  %v372_v30 = vadd.f32 %v371_v19, %v357_v15 }
 0x10b   :  { %v363_v31 = vmul.f32 %v1072_v27, %v1072_v27  ;;  %334 = vadd.xlane.f32.xlu0 %v333_v26  ;;  %v376_v32 = vadd.f32 %v360_v24, %v359_v20  ;;  %v362_v36 = vmul.f32 %v1074_v28, %v1074_v28  ;;  %v337_v37 = vadd.f32 %v336_v23, %v1063_v22 }
 0x10c   :  { %v1080_v33 = vpop.f32.mrf.mxu0  ;;  %v1082_v34 = vpop.f32.mrf.mxu1  ;;  %v373_v35 = vadd.f32 %v372_v30, %v358_v29 }
 0x10d   :  { %v341_v38 = vadd.f32 %v1080_v33, %v1072_v27  ;;  %v364_v39 = vmul.f32 %v1080_v33, %v1080_v33  ;;  %v365_v40 = vmul.f32 %v1082_v34, %v1082_v34  ;;  %v377_v41 = vadd.f32 %v376_v32, %v361_v25 }
 0x10e   :  { %v1093_v42 = vpop.f32.mrf.mxu1  ;;  %v338_v46 = vadd.f32 %v337_v37, %v1074_v28  ;;  %v1121_v58 = vpop.f32.mrf.mxu0 }
 0x10f   :  { %374 = vadd.xlane.f32.xlu0 %v373_v35  ;;  %v378_v43 = vadd.f32 %v377_v41, %v362_v36  ;;  %v342_v44 = vadd.f32 %v341_v38, %v1082_v34  ;;  %v381_v45 = vadd.f32 %v364_v39, %v363_v31  ;;  %v366_v47 = vmul.f32 %v1093_v42, %v1093_v42 }
 0x110   :  { %v1123_v59 = vpop.f32.mrf.mxu0  ;;  %v367_v60 = vmul.f32 %v1121_v58, %v1121_v58  ;;  %v1131_v63 = vpop.f32.mrf.mxu1 }
 0x111   :  { %379 = vadd.xlane.f32.xlu1 %v378_v43  ;;  %v382_v48 = vadd.f32 %v381_v45, %v365_v40  ;;  %v343_v49 = vadd.f32 %v342_v44, %v1093_v42  ;;  %v346_v61 = vadd.f32 %v1123_v59, %v1121_v58  ;;  %v368_v62 = vmul.f32 %v1123_v59, %v1123_v59 }
 0x112   :  { %v369_v1 = vmul.f32 %v1131_v63, %v1131_v63  ;;  %v1136_v3 = vpop.f32.mrf.mxu1 }
 0x113   :  { %339 = vadd.xlane.f32.xlu0 %v338_v46  ;;  %v383_v50 = vadd.f32 %v382_v48, %v366_v47  ;;  %v386_v0 = vadd.f32 %v368_v62, %v367_v60  ;;  %v347_v2 = vadd.f32 %v346_v61, %v1131_v63  ;;  %v370_v4 = vmul.f32 %v1136_v3, %v1136_v3 }
 0x115   :  { %344 = vadd.xlane.f32.xlu1 %v343_v49  ;;  %v348_v5 = vadd.f32 %v347_v2, %v1136_v3  ;;  %v387_v6 = vadd.f32 %v386_v0, %v369_v1 }
 0x117   :  { %384 = vadd.xlane.f32.xlu0 %v383_v50  ;;  %v388_v7 = vadd.f32 %v387_v6, %v370_v4 }
 0x126   :  { %458 = vperm.xlu1 %597, %v448_v51  }
 0x12a   :  { %463 = vperm.xlu1 %597, %v449_v52  }
 0x12d   :  { %453 = vperm.xlu0 %596, %v447_v53  }
 0x12e   :  { %468 = vperm.xlu1 %597, %v450_v54  }
 0x132   :  { %493 = vperm.xlu1 %597, %v487_v55  }
 0x136   :  { %498 = vperm.xlu1 %597, %v488_v56  }
 0x13a   :  { %503 = vperm.xlu1 %597, %v489_v57  }
 0x15e   :  { %349 = vadd.xlane.f32.xlu1 %v348_v5 }
 0x162   :  { %389 = vadd.xlane.f32.xlu1 %v388_v7 }
 0x173   :  { %508 = vperm.xlu1 %597, %v490_v8  }
 0x194   :  { %v335_v12 = vpop.xlane.xlu0 %334 }
 0x195   :  { %v351_v13 = vmul.f32 0.001953125, %v335_v12 }
 0x197   :  { %v395_v15 = vmul.f32 %v351_v13, %v351_v13  ;;  %v407_v48 = vsub.f32 %v1040_v9, %v351_v13  ;;  %v408_v49 = vsub.f32 %v1042_v10, %v351_v13  ;;  %v409_v50 = vsub.f32 %v1044_v11, %v351_v13 }
 0x198   :  { %v375_v14 = vpop.xlane.xlu0 %374  ;;  %v410_v51 = vsub.f32 %v1056_v17, %v351_v13 }
 0x199   :  { %v391_v18 = vmul.f32 0.001953125, %v375_v14 }
 0x19a   :  { %v380_v19 = vpop.xlane.xlu1 %379 }
 0x19b   :  { %v399_v20 = vsub.f32 %v391_v18, %v395_v15  ;;  %v392_v30 = vmul.f32 0.001953125, %v380_v19 }
 0x19c   :  { %v340_v23 = vpop.xlane.xlu0 %339 }
 0x19d   :  { %v403_v24 = vmax.f32 %v399_v20, 0.0  ;;  %v352_v25 = vmul.f32 0.001953125, %v340_v23 }
 0x19e   :  { %v345_v26 = vpop.xlane.xlu1 %344 }
 0x19f   :  { %v423_v29 = vadd.f32 1e-05, %v403_v24  ;;  %v396_v31 = vmul.f32 %v352_v25, %v352_v25  ;;  %v353_v32 = vmul.f32 0.001953125, %v345_v26  ;;  %v411_v2 = vsub.f32 %v1054_v16, %v352_v25 }
 0x1a0   :  { %v385_v35 = vpop.xlane.xlu0 %384  ;;  %v412_v9 = vsub.f32 %v1061_v21, %v352_v25  ;;  %v413_v10 = vsub.f32 %v1063_v22, %v352_v25  ;;  %v414_v11 = vsub.f32 %v1074_v28, %v352_v25 }
 0x1a1   :  { %598 = vrsqrt.f32 %v423_v29  ;;  %v400_v36 = vsub.f32 %v392_v30, %v396_v31  ;;  %v393_v37 = vmul.f32 0.001953125, %v385_v35  ;;  %v397_v38 = vmul.f32 %v353_v32, %v353_v32 }
 0x1a2   :  { %v459_v39 = vpop.permute.xlu1 %458  ;;  %v415_v8 = vsub.f32 %v1072_v27, %v353_v32  ;;  %v416_v12 = vsub.f32 %v1080_v33, %v353_v32  ;;  %v417_v13 = vsub.f32 %v1082_v34, %v353_v32  ;;  %v418_v14 = vsub.f32 %v1093_v42, %v353_v32 }
 0x1a3   :  { %v404_v40 = vmax.f32 %v400_v36, 0.0  ;;  %v401_v41 = vsub.f32 %v393_v37, %v397_v38 }
 0x1a5   :  { %v424_v43 = vadd.f32 1e-05, %v404_v40  ;;  %v405_v44 = vmax.f32 %v401_v41, 0.0 }
 0x1a6   :  { %v464_v45 = vpop.permute.xlu1 %463 }
 0x1a7   :  { %600 = vrsqrt.f32 %v424_v43  ;;  %v425_v46 = vadd.f32 1e-05, %v405_v44 }
 0x1a8   :  { %v454_v53 = vpop.permute.xlu0 %453 }
 0x1a9   :  { %602 = vrsqrt.f32 %v425_v46 }
 0x1aa   :  { %v1144_v47 = vpop.permute.xlu1 %468 }
 0x1ae   :  { %v599_v52 = vpop.eup %598  ;;  %v494_v60 = vpop.permute.xlu1 %493 }
 0x1af   :  { %v431_v54 = vmul.f32 %v599_v52, %v407_v48  ;;  %v432_v55 = vmul.f32 %v599_v52, %v408_v49  ;;  %v433_v56 = vmul.f32 %v599_v52, %v409_v50  ;;  %v434_v57 = vmul.f32 %v599_v52, %v410_v51 }
 0x1b1   :  { %v471_v61 = vmul.f32 %v454_v53, %v431_v54  ;;  %v472_v62 = vmul.f32 %v454_v53, %v432_v55  ;;  %v473_v0 = vmul.f32 %v454_v53, %v433_v56  ;;  %v474_v1 = vmul.f32 %v454_v53, %v434_v57 }
 0x1b2   :  { %v499_v28 = vpop.permute.xlu1 %498 }
 0x1b3   :  { %v511_v17 = vadd.f32 %v494_v60, %v471_v61  ;;  %v512_v4 = vadd.f32 %v494_v60, %v472_v62  ;;  %v513_v5 = vadd.f32 %v494_v60, %v473_v0  ;;  %v514_v6 = vadd.f32 %v494_v60, %v474_v1 }
 0x1b4   :  { %v601_v7 = vpop.eup %600 }
 0x1b5   :  { %v435_v16 = vmul.f32 %v601_v7, %v411_v2  ;;  %v436_v15 = vmul.f32 %v601_v7, %v412_v9  ;;  %v437_v21 = vmul.f32 %v601_v7, %v413_v10  ;;  %v438_v18 = vmul.f32 %v601_v7, %v414_v11 }
 0x1b6   :  { %v603_v22 = vpop.eup %602  ;;  %vm527_vm0 = vcmp.gt.f32.partialorder %v511_v17, 0.0  ;;  %vm528_vm1 = vcmp.gt.f32.partialorder %v512_v4, 0.0  ;;  %vm529_vm2 = vcmp.gt.f32.partialorder %v513_v5, 0.0  ;;  %vm530_vm3 = vcmp.gt.f32.partialorder %v514_v6, 0.0 }
 0x1b7   :  { %v475_v19 = vmul.f32 %v459_v39, %v435_v16  ;;  %v476_v20 = vmul.f32 %v459_v39, %v436_v15  ;;  %v477_v23 = vmul.f32 %v459_v39, %v437_v21  ;;  %v478_v27 = vmul.f32 %v459_v39, %v438_v18 }
 0x1b8   :  { %v439_v24 = vmul.f32 %v603_v22, %v415_v8  ;;  %v440_v33 = vmul.f32 %v603_v22, %v416_v12  ;;  %v441_v25 = vmul.f32 %v603_v22, %v417_v13  ;;  %v442_v34 = vmul.f32 %v603_v22, %v418_v14 }
 0x1b9   :  { %v543_v26 = vmul.f32 0.2, %v511_v17  ;;  %v544_v42 = vmul.f32 0.2, %v512_v4  ;;  %v545_v29 = vmul.f32 0.2, %v513_v5  ;;  %v515_v30 = vadd.f32 %v499_v28, %v475_v19 }
 0x1ba   :  { %v479_v31 = vmul.f32 %v464_v45, %v439_v24  ;;  %v480_v32 = vmul.f32 %v464_v45, %v440_v33  ;;  %v481_v35 = vmul.f32 %v464_v45, %v441_v25  ;;  %v482_v36 = vmul.f32 %v464_v45, %v442_v34  ;;  %v504_v45 = vpop.permute.xlu1 %503 }
 0x1bb   :  { %v546_v37 = vmul.f32 0.2, %v514_v6  ;;  %v559_v38 = vsel %vm527_vm0, %v511_v17, %v543_v26  ;;  %v560_v40 = vsel %vm528_vm1, %v512_v4, %v544_v42  ;;  %v561_v41 = vsel %vm529_vm2, %v513_v5, %v545_v29 }
 0x1bc   :  { %575 = vst [vmem:[%s1222_s4] sm:$0xff] %v559_v38  ;;  %576 = vst [vmem:[%s1222_s4 + $0x8] sm:$0xff] %v560_v40  ;;  %v516_v39 = vadd.f32 %v499_v28, %v476_v20  ;;  %v517_v43 = vadd.f32 %v499_v28, %v477_v23  ;;  %v518_v44 = vadd.f32 %v499_v28, %v478_v27  ;;  %vm531_vm4 = vcmp.gt.f32.partialorder %v515_v30, 0.0 }
 0x1bd   :  { %577 = vst [vmem:[%s1222_s4 + $0x10] sm:$0xff] %v561_v41  ;;  %v562_v46 = vsel %vm530_vm3, %v514_v6, %v546_v37  ;;  %v547_v48 = vmul.f32 0.2, %v515_v30  ;;  %v519_v49 = vadd.f32 %v504_v45, %v479_v31  ;;  %v520_v50 = vadd.f32 %v504_v45, %v480_v32 }
 0x1be   :  { %578 = vst [vmem:[%s1222_s4 + $0x18] sm:$0xff] %v562_v46  ;;  %vm532_vm5 = vcmp.gt.f32.partialorder %v516_v39, 0.0  ;;  %vm533_vm6 = vcmp.gt.f32.partialorder %v517_v43, 0.0  ;;  %vm534_vm7 = vcmp.gt.f32.partialorder %v518_v44, 0.0  ;;  %v548_v51 = vmul.f32 0.2, %v516_v39 }
 0x1bf   :  { %v549_v52 = vmul.f32 0.2, %v517_v43  ;;  %v550_v53 = vmul.f32 0.2, %v518_v44  ;;  %v563_v54 = vsel %vm531_vm4, %v515_v30, %v547_v48  ;;  %v521_v55 = vadd.f32 %v504_v45, %v481_v35 }
 0x1c0   :  { %v564_v56 = vsel %vm532_vm5, %v516_v39, %v548_v51  ;;  %579 = vst [vmem:[%s1222_s4 + $0x20] sm:$0xff] %v563_v54  ;;  %v522_v57 = vadd.f32 %v504_v45, %v482_v36  ;;  %vm535_vm8 = vcmp.gt.f32.partialorder %v519_v49, 0.0  ;;  %vm536_vm9 = vcmp.gt.f32.partialorder %v520_v50, 0.0 }
 0x1c1   :  { %v565_v60 = vsel %vm533_vm6, %v517_v43, %v549_v52  ;;  %v566_v61 = vsel %vm534_vm7, %v518_v44, %v550_v53  ;;  %580 = vst [vmem:[%s1222_s4 + $0x28] sm:$0xff] %v564_v56  ;;  %vm537_vm10 = vcmp.gt.f32.partialorder %v521_v55, 0.0  ;;  %v551_v62 = vmul.f32 0.2, %v519_v49 }
 0x1c2   :  { %581 = vst [vmem:[%s1222_s4 + $0x30] sm:$0xff] %v565_v60  ;;  %582 = vst [vmem:[%s1222_s4 + $0x38] sm:$0xff] %v566_v61  ;;  %vm538_vm11 = vcmp.gt.f32.partialorder %v522_v57, 0.0  ;;  %v552_v0 = vmul.f32 0.2, %v520_v50 }
 0x1c3   :  { %v553_v1 = vmul.f32 0.2, %v521_v55  ;;  %v554_v2 = vmul.f32 0.2, %v522_v57  ;;  %v567_v9 = vsel %vm535_vm8, %v519_v49, %v551_v62 }
 0x1c4   :  { %v568_v10 = vsel %vm536_vm9, %v520_v50, %v552_v0  ;;  %583 = vst [vmem:[%s1222_s4 + $0x40] sm:$0xff] %v567_v9 }
 0x1c5   :  { %v569_v11 = vsel %vm537_vm10, %v521_v55, %v553_v1  ;;  %v570_v17 = vsel %vm538_vm11, %v522_v57, %v554_v2  ;;  %584 = vst [vmem:[%s1222_s4 + $0x48] sm:$0xff] %v568_v10 }
 0x1c6   :  { %585 = vst [vmem:[%s1222_s4 + $0x50] sm:$0xff] %v569_v11  ;;  %586 = vst [vmem:[%s1222_s4 + $0x58] sm:$0xff] %v570_v17 }
 0x1e7   :  { %v350_v4 = vpop.xlane.xlu1 %349 }
 0x1e8   :  { %v354_v5 = vmul.f32 0.001953125, %v350_v4 }
 0x1ea   :  { %v398_v7 = vmul.f32 %v354_v5, %v354_v5  ;;  %v419_v16 = vsub.f32 %v1121_v58, %v354_v5  ;;  %v420_v15 = vsub.f32 %v1123_v59, %v354_v5  ;;  %v421_v21 = vsub.f32 %v1131_v63, %v354_v5 }
 0x1eb   :  { %v390_v6 = vpop.xlane.xlu1 %389  ;;  %v422_v18 = vsub.f32 %v1136_v3, %v354_v5 }
 0x1ec   :  { %v394_v8 = vmul.f32 0.001953125, %v390_v6 }
 0x1ee   :  { %v402_v12 = vsub.f32 %v394_v8, %v398_v7 }
 0x1ef   :  { %v509_v58 = vpop.permute.xlu1 %508 }
 0x1f0   :  { %v406_v13 = vmax.f32 %v402_v12, 0.0 }
 0x1f2   :  { %v426_v14 = vadd.f32 1e-05, %v406_v13 }
 0x1f4   :  { %604 = vrsqrt.f32 %v426_v14 }
 0x201   :  { %v605_v22 = vpop.eup %604 }
 0x202   :  { %v443_v28 = vmul.f32 %v605_v22, %v419_v16  ;;  %v444_v19 = vmul.f32 %v605_v22, %v420_v15  ;;  %v445_v20 = vmul.f32 %v605_v22, %v421_v21  ;;  %v446_v23 = vmul.f32 %v605_v22, %v422_v18 }
 0x204   :  { %v483_v27 = vmul.f32 %v1144_v47, %v443_v28  ;;  %v484_v24 = vmul.f32 %v1144_v47, %v444_v19  ;;  %v485_v33 = vmul.f32 %v1144_v47, %v445_v20  ;;  %v486_v25 = vmul.f32 %v1144_v47, %v446_v23 }
 0x206   :  { %v523_v34 = vadd.f32 %v509_v58, %v483_v27  ;;  %v524_v59 = vadd.f32 %v509_v58, %v484_v24  ;;  %v525_v26 = vadd.f32 %v509_v58, %v485_v33  ;;  %v526_v63 = vadd.f32 %v509_v58, %v486_v25 }
 0x208   :  { %vm539_vm12 = vcmp.gt.f32.partialorder %v523_v34, 0.0  ;;  %vm540_vm13 = vcmp.gt.f32.partialorder %v524_v59, 0.0  ;;  %vm541_vm14 = vcmp.gt.f32.partialorder %v525_v26, 0.0  ;;  %vm542_vm15 = vcmp.gt.f32.partialorder %v526_v63, 0.0 }
 0x209   :  { %v555_v3 = vmul.f32 0.2, %v523_v34  ;;  %v556_v42 = vmul.f32 0.2, %v524_v59  ;;  %v557_v29 = vmul.f32 0.2, %v525_v26 }
 0x20a   :  { %v558_v30 = vmul.f32 0.2, %v526_v63 }
 0x20b   :  { %v571_v31 = vsel %vm539_vm12, %v523_v34, %v555_v3  ;;  %v572_v32 = vsel %vm540_vm13, %v524_v59, %v556_v42  ;;  %v573_v35 = vsel %vm541_vm14, %v525_v26, %v557_v29 }
 0x20c   :  { %v574_v36 = vsel %vm542_vm15, %v526_v63, %v558_v30  ;;  %587 = vst [vmem:[%s1222_s4 + $0x60] sm:$0xff] %v571_v31  ;;  %588 = vst [vmem:[%s1222_s4 + $0x68] sm:$0xff] %v572_v32 }
 0x20d   :  { %589 = vst [vmem:[%s1222_s4 + $0x70] sm:$0xff] %v573_v35  ;;  %590 = vst [vmem:[%s1222_s4 + $0x78] sm:$0xff] %v574_v36 }

// kernel: discriminator_forward.6
= control target key start
LH: loop header
LB: loop body
LE: loop exit
PB: predicated region body
PF: predicated region fallthrough
CT: control target
= control target key end

     0   :  { %v714_v3 = vmov 0   ;;  %s1214_s0 = inlined_call_operand.vmem [shape: f32[512,128], index: 0, kind: input, shape index: {}]   ;;  %s1215_s1 = inlined_call_operand.vmem [shape: f32[64,512], index: 1, kind: input, shape index: {}]   ;;  %s1216_s2 = inlined_call_operand.vmem [shape: f32[64,1], index: 2, kind: input, shape index: {}]   ;;  %s1217_s3 = inlined_call_operand.vmem [shape: f32[64,1], index: 3, kind: input, shape index: {}]   ;;  %s1218_s4 = inlined_call_operand.vmem [shape: f32[64,128], index: 4, kind: output, shape index: {}]  }
   0x1   :  { %v80_v0 = vld [vmem:[%s1214_s0 + $0xf8] sm:$0xff]  ;;  %697 = vset.pattern.permute.xlu1 %v714_v3  ;;  %696 = vset.pattern.permute.xlu0 %v714_v3  ;;  %v79_v5 = vld [vmem:[%s1214_s0 + $0xf0] sm:$0xff]  ;;  %v78_v9 = vld [vmem:[%s1214_s0 + $0xe8] sm:$0xff] }
   0x2   :  { %v112_v1 = vld [vmem:[%s1214_s0 + $0x1f8] sm:$0xff]  ;;  %583 = vmatprep.subr.mxu0 %v80_v0  ;;  %v111_v6 = vld [vmem:[%s1214_s0 + $0x1f0] sm:$0xff]  ;;  %v110_v10 = vld [vmem:[%s1214_s0 + $0x1e8] sm:$0xff] }
   0x3   :  { %v64_v2 = vld [vmem:[%s1214_s0 + $0x78] sm:$0xff]  ;;  %639 = vmatprep.subr.mxu1 %v112_v1  ;;  %v63_v7 = vld [vmem:[%s1214_s0 + $0x70] sm:$0xff]  ;;  %v62_v11 = vld [vmem:[%s1214_s0 + $0x68] sm:$0xff] }
   0x4   :  { %v96_v4 = vld [vmem:[%s1214_s0 + $0x178] sm:$0xff]  ;;  %584 = vmatpush3.msra.mxu0 %v64_v2  ;;  %v95_v8 = vld [vmem:[%s1214_s0 + $0x170] sm:$0xff]  ;;  %v94_v12 = vld [vmem:[%s1214_s0 + $0x168] sm:$0xff] }
   0x5   :  { %640 = vmatpush3.msra.mxu1 %v96_v4  ;;  %585 = vmatprep.subr.mxu0 %v79_v5  ;;  %v77_v13 = vld [vmem:[%s1214_s0 + $0xe0] sm:$0xff]  ;;  %v76_v17 = vld [vmem:[%s1214_s0 + $0xd8] sm:$0xff]  ;;  %v75_v21 = vld [vmem:[%s1214_s0 + $0xd0] sm:$0xff] }
   0x6   :  { %641 = vmatprep.subr.mxu1 %v111_v6  ;;  %586 = vmatpush3.msra.mxu0 %v63_v7  ;;  %v109_v14 = vld [vmem:[%s1214_s0 + $0x1e0] sm:$0xff]  ;;  %v108_v18 = vld [vmem:[%s1214_s0 + $0x1d8] sm:$0xff]  ;;  %v107_v22 = vld [vmem:[%s1214_s0 + $0x1d0] sm:$0xff] }
   0x7   :  { %642 = vmatpush3.msra.mxu1 %v95_v8  ;;  %587 = vmatprep.subr.mxu0 %v78_v9  ;;  %v61_v15 = vld [vmem:[%s1214_s0 + $0x60] sm:$0xff]  ;;  %v60_v19 = vld [vmem:[%s1214_s0 + $0x58] sm:$0xff]  ;;  %v59_v23 = vld [vmem:[%s1214_s0 + $0x50] sm:$0xff] }
   0x8   :  { %643 = vmatprep.subr.mxu1 %v110_v10  ;;  %v93_v16 = vld [vmem:[%s1214_s0 + $0x160] sm:$0xff]  ;;  %588 = vmatpush3.msra.mxu0 %v62_v11  ;;  %v92_v20 = vld [vmem:[%s1214_s0 + $0x158] sm:$0xff]  ;;  %v91_v24 = vld [vmem:[%s1214_s0 + $0x150] sm:$0xff] }
   0x9   :  { %644 = vmatpush3.msra.mxu1 %v94_v12  ;;  %589 = vmatprep.subr.mxu0 %v77_v13  ;;  %v74_v25 = vld [vmem:[%s1214_s0 + $0xc8] sm:$0xff]  ;;  %v73_v29 = vld [vmem:[%s1214_s0 + $0xc0] sm:$0xff]  ;;  %v72_v33 = vld [vmem:[%s1214_s0 + $0xb8] sm:$0xff] }
   0xa   :  { %645 = vmatprep.subr.mxu1 %v109_v14  ;;  %590 = vmatpush3.msra.mxu0 %v61_v15  ;;  %v106_v26 = vld [vmem:[%s1214_s0 + $0x1c8] sm:$0xff]  ;;  %v105_v30 = vld [vmem:[%s1214_s0 + $0x1c0] sm:$0xff]  ;;  %v104_v34 = vld [vmem:[%s1214_s0 + $0x1b8] sm:$0xff] }
   0xb   :  { %646 = vmatpush3.msra.mxu1 %v93_v16  ;;  %591 = vmatprep.subr.mxu0 %v76_v17  ;;  %v58_v27 = vld [vmem:[%s1214_s0 + $0x48] sm:$0xff]  ;;  %v57_v31 = vld [vmem:[%s1214_s0 + $0x40] sm:$0xff]  ;;  %v56_v35 = vld [vmem:[%s1214_s0 + $0x38] sm:$0xff] }
   0xc   :  { %647 = vmatprep.subr.mxu1 %v108_v18  ;;  %592 = vmatpush3.msra.mxu0 %v60_v19  ;;  %v90_v28 = vld [vmem:[%s1214_s0 + $0x148] sm:$0xff]  ;;  %v89_v32 = vld [vmem:[%s1214_s0 + $0x140] sm:$0xff]  ;;  %v88_v36 = vld [vmem:[%s1214_s0 + $0x138] sm:$0xff] }
   0xd   :  { %648 = vmatpush3.msra.mxu1 %v92_v20  ;;  %593 = vmatprep.subr.mxu0 %v75_v21  ;;  %v71_v37 = vld [vmem:[%s1214_s0 + $0xb0] sm:$0xff]  ;;  %v70_v41 = vld [vmem:[%s1214_s0 + $0xa8] sm:$0xff]  ;;  %v69_v45 = vld [vmem:[%s1214_s0 + $0xa0] sm:$0xff] }
   0xe   :  { %649 = vmatprep.subr.mxu1 %v107_v22  ;;  %594 = vmatpush3.msra.mxu0 %v59_v23  ;;  %v103_v38 = vld [vmem:[%s1214_s0 + $0x1b0] sm:$0xff]  ;;  %v102_v42 = vld [vmem:[%s1214_s0 + $0x1a8] sm:$0xff]  ;;  %v101_v46 = vld [vmem:[%s1214_s0 + $0x1a0] sm:$0xff] }
   0xf   :  { %650 = vmatpush3.msra.mxu1 %v91_v24  ;;  %595 = vmatprep.subr.mxu0 %v74_v25  ;;  %v55_v39 = vld [vmem:[%s1214_s0 + $0x30] sm:$0xff]  ;;  %v54_v43 = vld [vmem:[%s1214_s0 + $0x28] sm:$0xff]  ;;  %v53_v47 = vld [vmem:[%s1214_s0 + $0x20] sm:$0xff] }
  0x10   :  { %651 = vmatprep.subr.mxu1 %v106_v26  ;;  %596 = vmatpush3.msra.mxu0 %v58_v27  ;;  %v87_v40 = vld [vmem:[%s1214_s0 + $0x130] sm:$0xff]  ;;  %v86_v44 = vld [vmem:[%s1214_s0 + $0x128] sm:$0xff]  ;;  %v85_v48 = vld [vmem:[%s1214_s0 + $0x120] sm:$0xff] }
  0x11   :  { %652 = vmatpush3.msra.mxu1 %v90_v28  ;;  %597 = vmatprep.subr.mxu0 %v73_v29  ;;  %v68_v49 = vld [vmem:[%s1214_s0 + $0x98] sm:$0xff]  ;;  %v67_v53 = vld [vmem:[%s1214_s0 + $0x90] sm:$0xff]  ;;  %v66_v57 = vld [vmem:[%s1214_s0 + $0x88] sm:$0xff] }
  0x12   :  { %653 = vmatprep.subr.mxu1 %v105_v30  ;;  %598 = vmatpush3.msra.mxu0 %v57_v31  ;;  %v100_v50 = vld [vmem:[%s1214_s0 + $0x198] sm:$0xff]  ;;  %v99_v54 = vld [vmem:[%s1214_s0 + $0x190] sm:$0xff]  ;;  %v98_v58 = vld [vmem:[%s1214_s0 + $0x188] sm:$0xff] }
  0x13   :  { %654 = vmatpush3.msra.mxu1 %v89_v32  ;;  %599 = vmatprep.subr.mxu0 %v72_v33  ;;  %v52_v51 = vld [vmem:[%s1214_s0 + $0x18] sm:$0xff]  ;;  %v51_v55 = vld [vmem:[%s1214_s0 + $0x10] sm:$0xff]  ;;  %v50_v59 = vld [vmem:[%s1214_s0 + $0x8] sm:$0xff] }
  0x14   :  { %655 = vmatprep.subr.mxu1 %v104_v34  ;;  %600 = vmatpush3.msra.mxu0 %v56_v35  ;;  %v84_v52 = vld [vmem:[%s1214_s0 + $0x118] sm:$0xff]  ;;  %v83_v56 = vld [vmem:[%s1214_s0 + $0x110] sm:$0xff]  ;;  %v82_v60 = vld [vmem:[%s1214_s0 + $0x108] sm:$0xff] }
  0x15   :  { %656 = vmatpush3.msra.mxu1 %v88_v36  ;;  %601 = vmatprep.subr.mxu0 %v71_v37  ;;  %v65_v61 = vld [vmem:[%s1214_s0 + $0x80] sm:$0xff]  ;;  %v18_v0 = vld [vmem:[%s1215_s1 + $0x8] sm:$0xff]  ;;  %v20_v2 = vld [vmem:[%s1215_s1 + $0x18] sm:$0xff] }
  0x16   :  { %657 = vmatprep.subr.mxu1 %v103_v38  ;;  %602 = vmatpush3.msra.mxu0 %v55_v39  ;;  %v97_v62 = vld [vmem:[%s1214_s0 + $0x180] sm:$0xff]  ;;  %v19_v4 = vld [vmem:[%s1215_s1 + $0x10] sm:$0xff]  ;;  %v22_v5 = vld [vmem:[%s1215_s1 + $0x28] sm:$0xff] }
  0x17   :  { %658 = vmatpush3.msra.mxu1 %v87_v40  ;;  %603 = vmatprep.subr.mxu0 %v70_v41  ;;  %v49_v63 = vld [vmem:[%s1214_s0] sm:$0xff]  ;;  %v24_v6 = vld [vmem:[%s1215_s1 + $0x38] sm:$0xff]  ;;  %v436_v7 = vld [vmem:[%s1216_s2 + $0x8] sm:$0xff] }
  0x18   :  { %659 = vmatprep.subr.mxu1 %v102_v42  ;;  %604 = vmatpush3.msra.mxu0 %v54_v43  ;;  %v81_v1 = vld [vmem:[%s1214_s0 + $0x100] sm:$0xff]  ;;  %v23_v9 = vld [vmem:[%s1215_s1 + $0x30] sm:$0xff]  ;;  %v26_v11 = vld [vmem:[%s1215_s1 + $0x48] sm:$0xff] }
  0x19   :  { %660 = vmatpush3.msra.mxu1 %v86_v44  ;;  %605 = vmatprep.subr.mxu0 %v69_v45  ;;  %v17_v3 = vld [vmem:[%s1215_s1] sm:$0xff]  ;;  %v28_v12 = vld [vmem:[%s1215_s1 + $0x58] sm:$0xff]  ;;  %v437_v13 = vld [vmem:[%s1216_s2 + $0x10] sm:$0xff] }
  0x1a   :  { %661 = vmatprep.subr.mxu1 %v101_v46  ;;  %606 = vmatpush3.msra.mxu0 %v53_v47  ;;  %v21_v8 = vld [vmem:[%s1215_s1 + $0x20] sm:$0xff]  ;;  %v492_v14 = vld [vmem:[%s1217_s3 + $0x8] sm:$0xff]  ;;  %v27_v16 = vld [vmem:[%s1215_s1 + $0x50] sm:$0xff] }
  0x1b   :  { %662 = vmatpush3.msra.mxu1 %v85_v48  ;;  %607 = vmatprep.subr.mxu0 %v68_v49  ;;  %v435_v10 = vld [vmem:[%s1216_s2] sm:$0xff]  ;;  %v30_v17 = vld [vmem:[%s1215_s1 + $0x68] sm:$0xff]  ;;  %v32_v18 = vld [vmem:[%s1215_s1 + $0x78] sm:$0xff] }
  0x1c   :  { %663 = vmatprep.subr.mxu1 %v100_v50  ;;  %608 = vmatpush3.msra.mxu0 %v52_v51  ;;  %v25_v15 = vld [vmem:[%s1215_s1 + $0x40] sm:$0xff]  ;;  %v438_v19 = vld [vmem:[%s1216_s2 + $0x18] sm:$0xff]  ;;  %v31_v22 = vld [vmem:[%s1215_s1 + $0x70] sm:$0xff] }
  0x1d   :  { %664 = vmatpush3.msra.mxu1 %v84_v52  ;;  %609 = vmatprep.subr.mxu0 %v67_v53  ;;  %v494_v20 = vld [vmem:[%s1217_s3 + $0x18] sm:$0xff]  ;;  %v29_v21 = vld [vmem:[%s1215_s1 + $0x60] sm:$0xff]  ;;  %v34_v23 = vld [vmem:[%s1215_s1 + $0x88] sm:$0xff] }
  0x1e   :  { %665 = vmatprep.subr.mxu1 %v99_v54  ;;  %610 = vmatpush3.msra.mxu0 %v51_v55  ;;  %v36_v24 = vld [vmem:[%s1215_s1 + $0x98] sm:$0xff]  ;;  %v439_v25 = vld [vmem:[%s1216_s2 + $0x20] sm:$0xff]  ;;  %v35_v27 = vld [vmem:[%s1215_s1 + $0x90] sm:$0xff] }
  0x1f   :  { %666 = vmatpush3.msra.mxu1 %v83_v56  ;;  %611 = vmatprep.subr.mxu0 %v66_v57  ;;  %v33_v26 = vld [vmem:[%s1215_s1 + $0x80] sm:$0xff]  ;;  %v38_v28 = vld [vmem:[%s1215_s1 + $0xa8] sm:$0xff]  ;;  %v40_v29 = vld [vmem:[%s1215_s1 + $0xb8] sm:$0xff] }
  0x20   :  { %667 = vmatprep.subr.mxu1 %v98_v58  ;;  %612 = vmatpush3.msra.mxu0 %v50_v59  ;;  %v440_v30 = vld [vmem:[%s1216_s2 + $0x28] sm:$0xff]  ;;  %v37_v31 = vld [vmem:[%s1215_s1 + $0xa0] sm:$0xff]  ;;  %v39_v32 = vld [vmem:[%s1215_s1 + $0xb0] sm:$0xff] }
  0x21   :  { %668 = vmatpush3.msra.mxu1 %v82_v60  ;;  %613 = vmatprep.subr.mxu0 %v65_v61  ;;  %v42_v33 = vld [vmem:[%s1215_s1 + $0xc8] sm:$0xff]  ;;  %v44_v34 = vld [vmem:[%s1215_s1 + $0xd8] sm:$0xff]  ;;  %v441_v35 = vld [vmem:[%s1216_s2 + $0x30] sm:$0xff] }
  0x22   :  { %669 = vmatprep.subr.mxu1 %v97_v62  ;;  %614 = vmatpush3.msra.mxu0 %v49_v63  ;;  %v41_v36 = vld [vmem:[%s1215_s1 + $0xc0] sm:$0xff]  ;;  %v43_v37 = vld [vmem:[%s1215_s1 + $0xd0] sm:$0xff]  ;;  %v46_v38 = vld [vmem:[%s1215_s1 + $0xe8] sm:$0xff] }
  0x23   :  { %177 = vmatprep.mubr.f32.mxu0 %v18_v0  ;;  %670 = vmatpush3.msra.mxu1 %v81_v1  ;;  %v48_v39 = vld [vmem:[%s1215_s1 + $0xf8] sm:$0xff]  ;;  %v45_v41 = vld [vmem:[%s1215_s1 + $0xe0] sm:$0xff]  ;;  %v47_v42 = vld [vmem:[%s1215_s1 + $0xf0] sm:$0xff] }
  0x24   :  { %282 = vmatprep.mubr.f32.mxu1 %v20_v2  ;;  %178 = vmatmul.mubr.f32.vlgmr.msra.gmra.mxu0 %v17_v3  ;;  %v442_v40 = vld [vmem:[%s1216_s2 + $0x38] sm:$0xff]  ;;  %v491_v43 = vld [vmem:[%s1217_s3] sm:$0xff]  ;;  %v493_v44 = vld [vmem:[%s1217_s3 + $0x10] sm:$0xff] }
  0x25   :  { %283 = vmatmul.mubr.f32.vlgmr.msra.gmra.mxu1 %v19_v4  ;;  %182 = vmatprep.mubr.f32.mxu0 %v22_v5  ;;  %v495_v45 = vld [vmem:[%s1217_s3 + $0x20] sm:$0xff] }
  0x26   :  { %287 = vmatprep.mubr.f32.mxu1 %v24_v6  ;;  %450 = vperm.xlu1 %697, %v436_v7  }
  0x27   :  { %445 = vperm.xlu0 %696, %v435_v10  }
  0x28   :  { %183 = vmatmul.mubr.f32.gmra.mxu0 %v21_v8 }
  0x29   :  { %288 = vmatmul.mubr.f32.gmra.mxu1 %v23_v9  ;;  %187 = vmatprep.mubr.f32.mxu0 %v26_v11 }
  0x2a   :  { %292 = vmatprep.mubr.f32.mxu1 %v28_v12  ;;  %455 = vperm.xlu1 %697, %v437_v13  }
  0x2b   :  { %506 = vperm.xlu0 %696, %v492_v14  }
  0x2c   :  { %188 = vmatmul.mubr.f32.gmra.mxu0 %v25_v15 }
  0x2d   :  { %293 = vmatmul.mubr.f32.gmra.mxu1 %v27_v16  ;;  %192 = vmatprep.mubr.f32.mxu0 %v30_v17 }
  0x2e   :  { %297 = vmatprep.mubr.f32.mxu1 %v32_v18  ;;  %460 = vperm.xlu1 %697, %v438_v19  }
  0x2f   :  { %516 = vperm.xlu0 %696, %v494_v20  }
  0x30   :  { %193 = vmatmul.mubr.f32.gmra.mxu0 %v29_v21 }
  0x31   :  { %298 = vmatmul.mubr.f32.gmra.mxu1 %v31_v22  ;;  %197 = vmatprep.mubr.f32.mxu0 %v34_v23 }
  0x32   :  { %302 = vmatprep.mubr.f32.mxu1 %v36_v24  ;;  %465 = vperm.xlu1 %697, %v439_v25  }
  0x34   :  { %198 = vmatmul.mubr.f32.gmra.mxu0 %v33_v26 }
  0x35   :  { %303 = vmatmul.mubr.f32.gmra.mxu1 %v35_v27  ;;  %202 = vmatprep.mubr.f32.mxu0 %v38_v28 }
  0x36   :  { %307 = vmatprep.mubr.f32.mxu1 %v40_v29  ;;  %470 = vperm.xlu1 %697, %v440_v30  }
  0x38   :  { %203 = vmatmul.mubr.f32.gmra.mxu0 %v37_v31 }
  0x39   :  { %308 = vmatmul.mubr.f32.gmra.mxu1 %v39_v32  ;;  %207 = vmatprep.mubr.f32.mxu0 %v42_v33 }
  0x3a   :  { %312 = vmatprep.mubr.f32.mxu1 %v44_v34  ;;  %475 = vperm.xlu1 %697, %v441_v35  }
  0x3c   :  { %208 = vmatmul.mubr.f32.gmra.mxu0 %v41_v36 }
  0x3d   :  { %313 = vmatmul.mubr.f32.gmra.mxu1 %v43_v37  ;;  %212 = vmatprep.mubr.f32.mxu0 %v46_v38 }
  0x3e   :  { %317 = vmatprep.mubr.f32.mxu1 %v48_v39  ;;  %480 = vperm.xlu1 %697, %v442_v40  }
  0x40   :  { %213 = vmatmul.mubr.f32.gmra.mxu0 %v45_v41 }
  0x41   :  { %318 = vmatmul.mubr.f32.gmra.mxu1 %v47_v42 }
  0x42   :  { %501 = vperm.xlu1 %697, %v491_v43  }
  0x46   :  { %511 = vperm.xlu1 %697, %v493_v44  }
  0x4a   :  { %521 = vperm.xlu1 %697, %v495_v45  }
  0xe4   :  { %v615_v46 = vpop.f32.mrf.mxu0 }
  0xe5   :  { %v671_v47 = vpop.f32.mrf.mxu1 }
  0xe6   :  { %v616_v48 = vpop.f32.mrf.mxu0 }
  0xe7   :  { %v672_v49 = vpop.f32.mrf.mxu1  ;;  %v617_v50 = vadd.f32 %v616_v48, %v615_v46  ;;  %v496_v46 = vld [vmem:[%s1217_s3 + $0x28] sm:$0xff]  ;;  %v498_v48 = vld [vmem:[%s1217_s3 + $0x38] sm:$0xff] }
  0xe8   :  { %v673_v51 = vadd.f32 %v672_v49, %v671_v47  ;;  %v618_v52 = vpop.f32.mrf.mxu0  ;;  %v497_v47 = vld [vmem:[%s1217_s3 + $0x30] sm:$0xff]  ;;  %v1116_v49 = vpop.permute.xlu1 %450 }
  0xe9   :  { %v674_v53 = vpop.f32.mrf.mxu1 }
  0xea   :  { %v1067_v54 = vadd.f32 %v673_v51, %v617_v50  ;;  %v619_v55 = vpop.f32.mrf.mxu0 }
  0xeb   :  { %v675_v56 = vpop.f32.mrf.mxu1  ;;  %v620_v57 = vadd.f32 %v619_v55, %v618_v52 }
  0xec   :  { %v676_v58 = vadd.f32 %v675_v56, %v674_v53  ;;  %323 = vadd.xlane.f32.xlu0 %v1067_v54  ;;  %v621_v59 = vpop.f32.mrf.mxu0  ;;  %v347_v62 = vmul.f32 %v1067_v54, %v1067_v54  ;;  %v1118_v50 = vpop.permute.xlu1 %455 }
  0xed   :  { %v677_v60 = vpop.f32.mrf.mxu1 }
  0xee   :  { %v1070_v61 = vadd.f32 %v676_v58, %v620_v57  ;;  %v622_v63 = vpop.f32.mrf.mxu0  ;;  %v446_v57 = vpop.permute.xlu0 %445 }
  0xef   :  { %v678_v0 = vpop.f32.mrf.mxu1  ;;  %v623_v1 = vadd.f32 %v622_v63, %v621_v59 }
  0xf0   :  { %v679_v2 = vadd.f32 %v678_v0, %v677_v60  ;;  %355 = vadd.xlane.f32.xlu0 %v347_v62  ;;  %v348_v3 = vmul.f32 %v1070_v61, %v1070_v61  ;;  %v624_v4 = vpop.f32.mrf.mxu0  ;;  %v1120_v51 = vpop.permute.xlu1 %460 }
  0xf1   :  { %v680_v5 = vpop.f32.mrf.mxu1 }
  0xf2   :  { %v1076_v6 = vadd.f32 %v679_v2, %v623_v1  ;;  %357 = vadd.xlane.f32.xlu1 %v348_v3  ;;  %v625_v7 = vpop.f32.mrf.mxu0  ;;  %v1132_v59 = vpop.permute.xlu0 %506 }
  0xf3   :  { %v681_v8 = vpop.f32.mrf.mxu1  ;;  %v626_v9 = vadd.f32 %v625_v7, %v624_v4 }
  0xf4   :  { %v682_v10 = vadd.f32 %v681_v8, %v680_v5  ;;  %325 = vadd.xlane.f32.xlu0 %v1070_v61  ;;  %v627_v11 = vpop.f32.mrf.mxu0  ;;  %v349_v13 = vmul.f32 %v1076_v6, %v1076_v6  ;;  %v1122_v52 = vpop.permute.xlu1 %465 }
  0xf5   :  { %v683_v12 = vpop.f32.mrf.mxu1 }
  0xf6   :  { %327 = vadd.xlane.f32.xlu1 %v1076_v6  ;;  %v628_v14 = vpop.f32.mrf.mxu0  ;;  %v1082_v16 = vadd.f32 %v682_v10, %v626_v9  ;;  %v1136_v62 = vpop.permute.xlu0 %516 }
  0xf7   :  { %v684_v15 = vpop.f32.mrf.mxu1  ;;  %v629_v17 = vadd.f32 %v628_v14, %v627_v11 }
  0xf8   :  { %v685_v18 = vadd.f32 %v684_v15, %v683_v12  ;;  %359 = vadd.xlane.f32.xlu0 %v349_v13  ;;  %v630_v19 = vpop.f32.mrf.mxu0  ;;  %v350_v26 = vmul.f32 %v1082_v16, %v1082_v16  ;;  %v1124_v53 = vpop.permute.xlu1 %470 }
  0xf9   :  { %v686_v20 = vpop.f32.mrf.mxu1 }
  0xfa   :  { %v1084_v21 = vadd.f32 %v685_v18, %v629_v17  ;;  %329 = vadd.xlane.f32.xlu1 %v1082_v16  ;;  %v631_v22 = vpop.f32.mrf.mxu0 }
  0xfb   :  { %v687_v23 = vpop.f32.mrf.mxu1  ;;  %v632_v24 = vadd.f32 %v631_v22, %v630_v19 }
  0xfc   :  { %v688_v25 = vadd.f32 %v687_v23, %v686_v20  ;;  %331 = vadd.xlane.f32.xlu0 %v1084_v21  ;;  %v633_v27 = vpop.f32.mrf.mxu0  ;;  %v351_v29 = vmul.f32 %v1084_v21, %v1084_v21  ;;  %v1126_v55 = vpop.permute.xlu1 %475 }
  0xfd   :  { %v689_v28 = vpop.f32.mrf.mxu1 }
  0xfe   :  { %361 = vadd.xlane.f32.xlu1 %v350_v26  ;;  %v634_v30 = vpop.f32.mrf.mxu0  ;;  %v1092_v32 = vadd.f32 %v688_v25, %v632_v24 }
  0xff   :  { %v690_v31 = vpop.f32.mrf.mxu1  ;;  %v635_v33 = vadd.f32 %v634_v30, %v633_v27 }
 0x100   :  { %v691_v34 = vadd.f32 %v690_v31, %v689_v28  ;;  %363 = vadd.xlane.f32.xlu0 %v351_v29  ;;  %v636_v35 = vpop.f32.mrf.mxu0  ;;  %v352_v42 = vmul.f32 %v1092_v32, %v1092_v32  ;;  %v1128_v56 = vpop.permute.xlu1 %480 }
 0x101   :  { %v692_v36 = vpop.f32.mrf.mxu1 }
 0x102   :  { %v1094_v37 = vadd.f32 %v691_v34, %v635_v33  ;;  %333 = vadd.xlane.f32.xlu1 %v1092_v32  ;;  %v637_v38 = vpop.f32.mrf.mxu0 }
 0x103   :  { %v693_v39 = vpop.f32.mrf.mxu1  ;;  %v638_v40 = vadd.f32 %v637_v38, %v636_v35 }
 0x104   :  { %v694_v41 = vadd.f32 %v693_v39, %v692_v36  ;;  %335 = vadd.xlane.f32.xlu0 %v1094_v37  ;;  %v353_v43 = vmul.f32 %v1094_v37, %v1094_v37  ;;  %v1130_v58 = vpop.permute.xlu1 %501 }
 0x106   :  { %365 = vadd.xlane.f32.xlu1 %v352_v42  ;;  %v1102_v44 = vadd.f32 %v694_v41, %v638_v40 }
 0x108   :  { %367 = vadd.xlane.f32.xlu0 %v353_v43  ;;  %v354_v45 = vmul.f32 %v1102_v44, %v1102_v44  ;;  %v1134_v60 = vpop.permute.xlu1 %511 }
 0x10a   :  { %337 = vadd.xlane.f32.xlu1 %v1102_v44 }
 0x10c   :  { %v1138_v1 = vpop.permute.xlu1 %521 }
 0x10e   :  { %369 = vadd.xlane.f32.xlu1 %v354_v45 }
 0x11e   :  { %526 = vperm.xlu0 %696, %v496_v46  }
 0x11f   :  { %531 = vperm.xlu1 %697, %v497_v47  }
 0x122   :  { %536 = vperm.xlu0 %696, %v498_v48  }
 0x175   :  { %v324_v63 = vpop.xlane.xlu0 %323 }
 0x176   :  { %v339_v0 = vmul.f32 0.0078125, %v324_v63 }
 0x178   :  { %v379_v3 = vmul.f32 %v339_v0, %v339_v0  ;;  %v403_v46 = vsub.f32 %v1067_v54, %v339_v0 }
 0x179   :  { %v356_v2 = vpop.xlane.xlu0 %355 }
 0x17a   :  { %v371_v4 = vmul.f32 0.0078125, %v356_v2 }
 0x17b   :  { %v358_v5 = vpop.xlane.xlu1 %357 }
 0x17c   :  { %v387_v7 = vsub.f32 %v371_v4, %v379_v3  ;;  %v372_v13 = vmul.f32 0.0078125, %v358_v5 }
 0x17d   :  { %v326_v8 = vpop.xlane.xlu0 %325 }
 0x17e   :  { %v395_v9 = vmax.f32 %v387_v7, 0.0  ;;  %v340_v10 = vmul.f32 0.0078125, %v326_v8 }
 0x17f   :  { %v328_v11 = vpop.xlane.xlu1 %327 }
 0x180   :  { %v411_v12 = vadd.f32 1e-05, %v395_v9  ;;  %v380_v14 = vmul.f32 %v340_v10, %v340_v10  ;;  %v1140_v15 = vmul.f32 0.0078125, %v328_v11 }
 0x181   :  { %v360_v17 = vpop.xlane.xlu0 %359 }
 0x182   :  { %698 = vrsqrt.f32 %v411_v12  ;;  %v388_v18 = vsub.f32 %v372_v13, %v380_v14  ;;  %v381_v19 = vmul.f32 %v1140_v15, %v1140_v15  ;;  %v373_v20 = vmul.f32 0.0078125, %v360_v17 }
 0x183   :  { %v330_v22 = vpop.xlane.xlu1 %329  ;;  %v404_v13 = vsub.f32 %v1070_v61, %v340_v10 }
 0x184   :  { %v396_v23 = vmax.f32 %v388_v18, 0.0  ;;  %v1144_v24 = vmul.f32 0.0078125, %v330_v22  ;;  %v389_v25 = vsub.f32 %v373_v20, %v381_v19 }
 0x185   :  { %v332_v26 = vpop.xlane.xlu0 %331 }
 0x186   :  { %v412_v27 = vadd.f32 1e-05, %v396_v23  ;;  %v1146_v28 = vmul.f32 0.0078125, %v332_v26  ;;  %v397_v29 = vmax.f32 %v389_v25, 0.0  ;;  %v382_v31 = vmul.f32 %v1144_v24, %v1144_v24 }
 0x187   :  { %v362_v30 = vpop.xlane.xlu1 %361 }
 0x188   :  { %700 = vrsqrt.f32 %v412_v27  ;;  %v374_v33 = vmul.f32 0.0078125, %v362_v30  ;;  %v413_v34 = vadd.f32 1e-05, %v397_v29  ;;  %v383_v36 = vmul.f32 %v1146_v28, %v1146_v28 }
 0x189   :  { %v364_v35 = vpop.xlane.xlu0 %363 }
 0x18a   :  { %v390_v38 = vsub.f32 %v374_v33, %v382_v31  ;;  %v375_v39 = vmul.f32 0.0078125, %v364_v35  ;;  %702 = vrsqrt.f32 %v413_v34 }
 0x18b   :  { %v334_v40 = vpop.xlane.xlu1 %333 }
 0x18c   :  { %v398_v41 = vmax.f32 %v390_v38, 0.0  ;;  %v391_v42 = vsub.f32 %v375_v39, %v383_v36  ;;  %v1152_v43 = vmul.f32 0.0078125, %v334_v40  ;;  %v406_v38 = vsub.f32 %v1082_v16, %v1144_v24 }
 0x18d   :  { %v336_v45 = vpop.xlane.xlu0 %335 }
 0x18e   :  { %v414_v47 = vadd.f32 1e-05, %v398_v41  ;;  %v399_v48 = vmax.f32 %v391_v42, 0.0  ;;  %v384_v2 = vmul.f32 %v1152_v43, %v1152_v43  ;;  %v1157_v3 = vmul.f32 0.0078125, %v336_v45 }
 0x18f   :  { %v699_v63 = vpop.eup %698  ;;  %v366_v4 = vpop.xlane.xlu1 %365  ;;  %v407_v42 = vsub.f32 %v1084_v21, %v1146_v28 }
 0x190   :  { %v427_v5 = vmul.f32 %v699_v63, %v403_v46  ;;  %704 = vrsqrt.f32 %v414_v47  ;;  %v415_v7 = vadd.f32 1e-05, %v399_v48  ;;  %v376_v8 = vmul.f32 0.0078125, %v366_v4 }
 0x191   :  { %v385_v9 = vmul.f32 %v1157_v3, %v1157_v3  ;;  %v368_v11 = vpop.xlane.xlu0 %367  ;;  %v408_v63 = vsub.f32 %v1092_v32, %v1152_v43 }
 0x192   :  { %v483_v12 = vmul.f32 %v446_v57, %v427_v5  ;;  %706 = vrsqrt.f32 %v415_v7  ;;  %v392_v54 = vsub.f32 %v376_v8, %v384_v2  ;;  %v377_v0 = vmul.f32 0.0078125, %v368_v11 }
 0x193   :  { %v338_v14 = vpop.xlane.xlu1 %337  ;;  %v405_v57 = vsub.f32 %v1076_v6, %v1140_v15 }
 0x194   :  { %v539_v17 = vadd.f32 %v1130_v58, %v483_v12  ;;  %v400_v18 = vmax.f32 %v392_v54, 0.0  ;;  %v393_v19 = vsub.f32 %v377_v0, %v385_v9  ;;  %v1163_v20 = vmul.f32 0.0078125, %v338_v14 }
 0x195   :  { %v701_v22 = vpop.eup %700 }
 0x196   :  { %vm547_vm0 = vcmp.gt.f32.partialorder %v539_v17, 0.0  ;;  %v555_v23 = vmul.f32 0.2, %v539_v17  ;;  %v428_v25 = vmul.f32 %v701_v22, %v404_v13  ;;  %v416_v26 = vadd.f32 1e-05, %v400_v18 }
 0x197   :  { %v401_v27 = vmax.f32 %v393_v19, 0.0  ;;  %v386_v29 = vmul.f32 %v1163_v20, %v1163_v20  ;;  %v370_v61 = vpop.xlane.xlu1 %369  ;;  %v703_v10 = vpop.eup %702  ;;  %v410_v11 = vsub.f32 %v1102_v44, %v1163_v20 }
 0x198   :  { %v563_v30 = vsel %vm547_vm0, %v539_v17, %v555_v23  ;;  %v484_v58 = vmul.f32 %v1116_v49, %v428_v25  ;;  %708 = vrsqrt.f32 %v416_v26  ;;  %v378_v31 = vmul.f32 0.0078125, %v370_v61 }
 0x199   :  { %571 = vst [vmem:[%s1218_s4] sm:$0xff] %v563_v30  ;;  %v429_v33 = vmul.f32 %v703_v10, %v405_v57  ;;  %v417_v34 = vadd.f32 1e-05, %v401_v27  ;;  %v527_v32 = vpop.permute.xlu0 %526 }
 0x19a   :  { %v540_v35 = vadd.f32 %v1132_v59, %v484_v58  ;;  %v394_v6 = vsub.f32 %v378_v31, %v386_v29 }
 0x19b   :  { %v485_v15 = vmul.f32 %v1118_v50, %v429_v33  ;;  %710 = vrsqrt.f32 %v417_v34  ;;  %v532_v54 = vpop.permute.xlu1 %531 }
 0x19c   :  { %vm548_vm1 = vcmp.gt.f32.partialorder %v540_v35, 0.0  ;;  %v556_v36 = vmul.f32 0.2, %v540_v35  ;;  %v402_v49 = vmax.f32 %v394_v6, 0.0 }
 0x19d   :  { %v705_v39 = vpop.eup %704  ;;  %v541_v40 = vadd.f32 %v1134_v60, %v485_v15 }
 0x19e   :  { %v564_v41 = vsel %vm548_vm1, %v540_v35, %v556_v36  ;;  %v430_v45 = vmul.f32 %v705_v39, %v406_v38  ;;  %v418_v46 = vadd.f32 1e-05, %v402_v49 }
 0x19f   :  { %v707_v59 = vpop.eup %706  ;;  %572 = vst [vmem:[%s1218_s4 + $0x8] sm:$0xff] %v564_v41  ;;  %vm549_vm2 = vcmp.gt.f32.partialorder %v541_v40, 0.0  ;;  %v557_v50 = vmul.f32 0.2, %v541_v40 }
 0x1a0   :  { %v486_v47 = vmul.f32 %v1120_v51, %v430_v45  ;;  %v431_v16 = vmul.f32 %v707_v59, %v407_v42  ;;  %712 = vrsqrt.f32 %v418_v46 }
 0x1a1   :  { %v565_v24 = vsel %vm549_vm2, %v541_v40, %v557_v50 }
 0x1a2   :  { %573 = vst [vmem:[%s1218_s4 + $0x10] sm:$0xff] %v565_v24  ;;  %v542_v21 = vadd.f32 %v1136_v62, %v486_v47  ;;  %v487_v60 = vmul.f32 %v1122_v52, %v431_v16  ;;  %v409_v62 = vsub.f32 %v1094_v37, %v1157_v3 }
 0x1a4   :  { %vm550_vm3 = vcmp.gt.f32.partialorder %v542_v21, 0.0  ;;  %v558_v28 = vmul.f32 0.2, %v542_v21  ;;  %v543_v48 = vadd.f32 %v1138_v1, %v487_v60 }
 0x1a5   :  { %v709_v2 = vpop.eup %708 }
 0x1a6   :  { %v566_v51 = vsel %vm550_vm3, %v542_v21, %v558_v28  ;;  %vm551_vm4 = vcmp.gt.f32.partialorder %v543_v48, 0.0  ;;  %v559_v4 = vmul.f32 0.2, %v543_v48  ;;  %v432_v5 = vmul.f32 %v709_v2, %v408_v63 }
 0x1a7   :  { %574 = vst [vmem:[%s1218_s4 + $0x18] sm:$0xff] %v566_v51 }
 0x1a8   :  { %v711_v52 = vpop.eup %710  ;;  %v567_v7 = vsel %vm551_vm4, %v543_v48, %v559_v4  ;;  %v488_v8 = vmul.f32 %v1124_v53, %v432_v5 }
 0x1a9   :  { %575 = vst [vmem:[%s1218_s4 + $0x20] sm:$0xff] %v567_v7  ;;  %v433_v1 = vmul.f32 %v711_v52, %v409_v62 }
 0x1aa   :  { %v544_v43 = vadd.f32 %v527_v32, %v488_v8 }
 0x1ab   :  { %v489_v9 = vmul.f32 %v1126_v55, %v433_v1  ;;  %v537_v55 = vpop.permute.xlu0 %536 }
 0x1ac   :  { %vm552_vm5 = vcmp.gt.f32.partialorder %v544_v43, 0.0  ;;  %v560_v12 = vmul.f32 0.2, %v544_v43 }
 0x1ad   :  { %v713_v37 = vpop.eup %712  ;;  %v545_v3 = vadd.f32 %v532_v54, %v489_v9 }
 0x1ae   :  { %v568_v0 = vsel %vm552_vm5, %v544_v43, %v560_v12  ;;  %v434_v13 = vmul.f32 %v713_v37, %v410_v11 }
 0x1af   :  { %576 = vst [vmem:[%s1218_s4 + $0x28] sm:$0xff] %v568_v0  ;;  %vm553_vm6 = vcmp.gt.f32.partialorder %v545_v3, 0.0  ;;  %v561_v53 = vmul.f32 0.2, %v545_v3 }
 0x1b0   :  { %v490_v14 = vmul.f32 %v1128_v56, %v434_v13 }
 0x1b1   :  { %v569_v17 = vsel %vm553_vm6, %v545_v3, %v561_v53 }
 0x1b2   :  { %577 = vst [vmem:[%s1218_s4 + $0x30] sm:$0xff] %v569_v17  ;;  %v546_v44 = vadd.f32 %v537_v55, %v490_v14 }
 0x1b4   :  { %vm554_vm7 = vcmp.gt.f32.partialorder %v546_v44, 0.0  ;;  %v562_v18 = vmul.f32 0.2, %v546_v44 }
 0x1b6   :  { %v570_v19 = vsel %vm554_vm7, %v546_v44, %v562_v18 }
 0x1b7   :  { %578 = vst [vmem:[%s1218_s4 + $0x38] sm:$0xff] %v570_v19 }

// kernel: discriminator_forward.7
= control target key start
LH: loop header
LB: loop body
LE: loop exit
PB: predicated region body
PF: predicated region fallthrough
CT: control target
= control target key end

     0   :  { %s3617_s0 = inlined_call_operand.vmem [shape: f32[1024,32], index: 0, kind: input, shape index: {}]   ;;  %s3618_s1 = inlined_call_operand.vmem [shape: f32[128,1024], index: 1, kind: input, shape index: {}]   ;;  %s3619_s2 = inlined_call_operand.vmem [shape: f32[128,1], index: 2, kind: input, shape index: {}]   ;;  %s3620_s3 = inlined_call_operand.vmem [shape: f32[128,1], index: 3, kind: input, shape index: {}]   ;;  %s3621_s4 = inlined_call_operand.vmem [shape: f32[128,32], index: 4, kind: input, shape index: {}]   ;;  %s3622_s5 = inlined_call_operand.vmem [shape: f32[32,2], index: 5, kind: input, shape index: {}]   ;;  %s3623_s6 = inlined_call_operand.<no memory space> [shape: f32[1,1], index: 6, kind: input, shape index: {}]   ;;  %s3624_s7 = inlined_call_operand.hbm [shape: f32[1,2], index: 7, kind: output, shape index: {}]  }
   0x1   :  { %v12_v0 = vstv %s3623_s6 }
   0x2   :  { %13 = vst [vmem:[#allocation2] sm:$0x1] %v12_v0 }
   0x3   :  { %v188_v1 = vld [vmem:[%s3617_s0 + $0xf8] sm:$0xff]  ;;  %v187_v5 = vld [vmem:[%s3617_s0 + $0xf0] sm:$0xff]  ;;  %v186_v9 = vld [vmem:[%s3617_s0 + $0xe8] sm:$0xff] }
   0x4   :  { %v220_v2 = vld [vmem:[%s3617_s0 + $0x1f8] sm:$0xff]  ;;  %1704 = vmatprep.subr.mxu0 %v188_v1  ;;  %v219_v6 = vld [vmem:[%s3617_s0 + $0x1f0] sm:$0xff]  ;;  %v218_v10 = vld [vmem:[%s3617_s0 + $0x1e8] sm:$0xff] }
   0x5   :  { %v172_v3 = vld [vmem:[%s3617_s0 + $0x78] sm:$0xff]  ;;  %1784 = vmatprep.subr.mxu1 %v220_v2  ;;  %v171_v7 = vld [vmem:[%s3617_s0 + $0x70] sm:$0xff]  ;;  %v170_v11 = vld [vmem:[%s3617_s0 + $0x68] sm:$0xff] }
   0x6   :  { %v204_v4 = vld [vmem:[%s3617_s0 + $0x178] sm:$0xff]  ;;  %1705 = vmatpush3.msra.mxu0 %v172_v3  ;;  %v203_v8 = vld [vmem:[%s3617_s0 + $0x170] sm:$0xff]  ;;  %v202_v12 = vld [vmem:[%s3617_s0 + $0x168] sm:$0xff] }
   0x7   :  { %1785 = vmatpush3.msra.mxu1 %v204_v4  ;;  %1706 = vmatprep.subr.mxu0 %v187_v5  ;;  %v185_v13 = vld [vmem:[%s3617_s0 + $0xe0] sm:$0xff]  ;;  %v184_v17 = vld [vmem:[%s3617_s0 + $0xd8] sm:$0xff]  ;;  %v183_v21 = vld [vmem:[%s3617_s0 + $0xd0] sm:$0xff] }
   0x8   :  { %1786 = vmatprep.subr.mxu1 %v219_v6  ;;  %1707 = vmatpush3.msra.mxu0 %v171_v7  ;;  %v217_v14 = vld [vmem:[%s3617_s0 + $0x1e0] sm:$0xff]  ;;  %v216_v18 = vld [vmem:[%s3617_s0 + $0x1d8] sm:$0xff]  ;;  %v215_v22 = vld [vmem:[%s3617_s0 + $0x1d0] sm:$0xff] }
   0x9   :  { %1787 = vmatpush3.msra.mxu1 %v203_v8  ;;  %1708 = vmatprep.subr.mxu0 %v186_v9  ;;  %v169_v15 = vld [vmem:[%s3617_s0 + $0x60] sm:$0xff]  ;;  %v168_v19 = vld [vmem:[%s3617_s0 + $0x58] sm:$0xff]  ;;  %v167_v23 = vld [vmem:[%s3617_s0 + $0x50] sm:$0xff] }
   0xa   :  { %1788 = vmatprep.subr.mxu1 %v218_v10  ;;  %v201_v16 = vld [vmem:[%s3617_s0 + $0x160] sm:$0xff]  ;;  %1709 = vmatpush3.msra.mxu0 %v170_v11  ;;  %v200_v20 = vld [vmem:[%s3617_s0 + $0x158] sm:$0xff]  ;;  %v199_v24 = vld [vmem:[%s3617_s0 + $0x150] sm:$0xff] }
   0xb   :  { %1789 = vmatpush3.msra.mxu1 %v202_v12  ;;  %1710 = vmatprep.subr.mxu0 %v185_v13  ;;  %v182_v25 = vld [vmem:[%s3617_s0 + $0xc8] sm:$0xff]  ;;  %v181_v29 = vld [vmem:[%s3617_s0 + $0xc0] sm:$0xff]  ;;  %v180_v33 = vld [vmem:[%s3617_s0 + $0xb8] sm:$0xff] }
   0xc   :  { %1790 = vmatprep.subr.mxu1 %v217_v14  ;;  %1711 = vmatpush3.msra.mxu0 %v169_v15  ;;  %v214_v26 = vld [vmem:[%s3617_s0 + $0x1c8] sm:$0xff]  ;;  %v213_v30 = vld [vmem:[%s3617_s0 + $0x1c0] sm:$0xff]  ;;  %v212_v34 = vld [vmem:[%s3617_s0 + $0x1b8] sm:$0xff] }
   0xd   :  { %1791 = vmatpush3.msra.mxu1 %v201_v16  ;;  %1712 = vmatprep.subr.mxu0 %v184_v17  ;;  %v166_v27 = vld [vmem:[%s3617_s0 + $0x48] sm:$0xff]  ;;  %v165_v31 = vld [vmem:[%s3617_s0 + $0x40] sm:$0xff]  ;;  %v164_v35 = vld [vmem:[%s3617_s0 + $0x38] sm:$0xff] }
   0xe   :  { %1792 = vmatprep.subr.mxu1 %v216_v18  ;;  %1713 = vmatpush3.msra.mxu0 %v168_v19  ;;  %v198_v28 = vld [vmem:[%s3617_s0 + $0x148] sm:$0xff]  ;;  %v197_v32 = vld [vmem:[%s3617_s0 + $0x140] sm:$0xff]  ;;  %v196_v36 = vld [vmem:[%s3617_s0 + $0x138] sm:$0xff] }
   0xf   :  { %1793 = vmatpush3.msra.mxu1 %v200_v20  ;;  %1714 = vmatprep.subr.mxu0 %v183_v21  ;;  %v179_v37 = vld [vmem:[%s3617_s0 + $0xb0] sm:$0xff]  ;;  %v178_v41 = vld [vmem:[%s3617_s0 + $0xa8] sm:$0xff]  ;;  %v177_v45 = vld [vmem:[%s3617_s0 + $0xa0] sm:$0xff] }
  0x10   :  { %1794 = vmatprep.subr.mxu1 %v215_v22  ;;  %1715 = vmatpush3.msra.mxu0 %v167_v23  ;;  %v211_v38 = vld [vmem:[%s3617_s0 + $0x1b0] sm:$0xff]  ;;  %v210_v42 = vld [vmem:[%s3617_s0 + $0x1a8] sm:$0xff]  ;;  %v209_v46 = vld [vmem:[%s3617_s0 + $0x1a0] sm:$0xff] }
  0x11   :  { %1795 = vmatpush3.msra.mxu1 %v199_v24  ;;  %1716 = vmatprep.subr.mxu0 %v182_v25  ;;  %v163_v39 = vld [vmem:[%s3617_s0 + $0x30] sm:$0xff]  ;;  %v162_v43 = vld [vmem:[%s3617_s0 + $0x28] sm:$0xff]  ;;  %v161_v47 = vld [vmem:[%s3617_s0 + $0x20] sm:$0xff] }
  0x12   :  { %1796 = vmatprep.subr.mxu1 %v214_v26  ;;  %1717 = vmatpush3.msra.mxu0 %v166_v27  ;;  %v195_v40 = vld [vmem:[%s3617_s0 + $0x130] sm:$0xff]  ;;  %v194_v44 = vld [vmem:[%s3617_s0 + $0x128] sm:$0xff]  ;;  %v193_v48 = vld [vmem:[%s3617_s0 + $0x120] sm:$0xff] }
  0x13   :  { %1797 = vmatpush3.msra.mxu1 %v198_v28  ;;  %1718 = vmatprep.subr.mxu0 %v181_v29  ;;  %v176_v49 = vld [vmem:[%s3617_s0 + $0x98] sm:$0xff]  ;;  %v175_v53 = vld [vmem:[%s3617_s0 + $0x90] sm:$0xff]  ;;  %v174_v57 = vld [vmem:[%s3617_s0 + $0x88] sm:$0xff] }
  0x14   :  { %1798 = vmatprep.subr.mxu1 %v213_v30  ;;  %1719 = vmatpush3.msra.mxu0 %v165_v31  ;;  %v208_v50 = vld [vmem:[%s3617_s0 + $0x198] sm:$0xff]  ;;  %v207_v54 = vld [vmem:[%s3617_s0 + $0x190] sm:$0xff]  ;;  %v206_v58 = vld [vmem:[%s3617_s0 + $0x188] sm:$0xff] }
  0x15   :  { %1799 = vmatpush3.msra.mxu1 %v197_v32  ;;  %1720 = vmatprep.subr.mxu0 %v180_v33  ;;  %v160_v51 = vld [vmem:[%s3617_s0 + $0x18] sm:$0xff]  ;;  %v159_v55 = vld [vmem:[%s3617_s0 + $0x10] sm:$0xff]  ;;  %v158_v59 = vld [vmem:[%s3617_s0 + $0x8] sm:$0xff] }
  0x16   :  { %1800 = vmatprep.subr.mxu1 %v212_v34  ;;  %1721 = vmatpush3.msra.mxu0 %v164_v35  ;;  %v192_v52 = vld [vmem:[%s3617_s0 + $0x118] sm:$0xff]  ;;  %v191_v56 = vld [vmem:[%s3617_s0 + $0x110] sm:$0xff]  ;;  %v190_v60 = vld [vmem:[%s3617_s0 + $0x108] sm:$0xff] }
  0x17   :  { %1801 = vmatpush3.msra.mxu1 %v196_v36  ;;  %1722 = vmatprep.subr.mxu0 %v179_v37  ;;  %v173_v61 = vld [vmem:[%s3617_s0 + $0x80] sm:$0xff]  ;;  %v30_v0 = vld [vmem:[%s3618_s1 + $0x8] sm:$0xff]  ;;  %v32_v2 = vld [vmem:[%s3618_s1 + $0x18] sm:$0xff] }
  0x18   :  { %1802 = vmatprep.subr.mxu1 %v211_v38  ;;  %1723 = vmatpush3.msra.mxu0 %v163_v39  ;;  %v205_v62 = vld [vmem:[%s3617_s0 + $0x180] sm:$0xff]  ;;  %v31_v4 = vld [vmem:[%s3618_s1 + $0x10] sm:$0xff]  ;;  %v252_v5 = vld [vmem:[%s3617_s0 + $0x2f8] sm:$0xff] }
  0x19   :  { %1803 = vmatpush3.msra.mxu1 %v195_v40  ;;  %1724 = vmatprep.subr.mxu0 %v178_v41  ;;  %v157_v63 = vld [vmem:[%s3617_s0] sm:$0xff]  ;;  %v284_v6 = vld [vmem:[%s3617_s0 + $0x3f8] sm:$0xff]  ;;  %v38_v8 = vld [vmem:[%s3618_s1 + $0x48] sm:$0xff] }
  0x1a   :  { %1804 = vmatprep.subr.mxu1 %v210_v42  ;;  %1725 = vmatpush3.msra.mxu0 %v162_v43  ;;  %v189_v1 = vld [vmem:[%s3617_s0 + $0x100] sm:$0xff]  ;;  %v236_v7 = vld [vmem:[%s3617_s0 + $0x278] sm:$0xff]  ;;  %v39_v12 = vld [vmem:[%s3618_s1 + $0x50] sm:$0xff] }
  0x1b   :  { %1805 = vmatpush3.msra.mxu1 %v194_v44  ;;  %1726 = vmatprep.subr.mxu0 %v177_v45  ;;  %v29_v3 = vld [vmem:[%s3618_s1] sm:$0xff]  ;;  %v40_v9 = vld [vmem:[%s3618_s1 + $0x58] sm:$0xff]  ;;  %v251_v13 = vld [vmem:[%s3617_s0 + $0x2f0] sm:$0xff] }
  0x1c   :  { %1806 = vmatprep.subr.mxu1 %v209_v46  ;;  %1727 = vmatpush3.msra.mxu0 %v161_v47  ;;  %v268_v10 = vld [vmem:[%s3617_s0 + $0x378] sm:$0xff]  ;;  %v37_v11 = vld [vmem:[%s3618_s1 + $0x40] sm:$0xff]  ;;  %v283_v14 = vld [vmem:[%s3617_s0 + $0x3f0] sm:$0xff] }
  0x1d   :  { %1807 = vmatpush3.msra.mxu1 %v193_v48  ;;  %1728 = vmatprep.subr.mxu0 %v176_v49  ;;  %v235_v15 = vld [vmem:[%s3617_s0 + $0x270] sm:$0xff]  ;;  %v46_v16 = vld [vmem:[%s3618_s1 + $0x88] sm:$0xff]  ;;  %v48_v17 = vld [vmem:[%s3618_s1 + $0x98] sm:$0xff] }
  0x1e   :  { %1808 = vmatprep.subr.mxu1 %v208_v50  ;;  %1729 = vmatpush3.msra.mxu0 %v160_v51  ;;  %v267_v18 = vld [vmem:[%s3617_s0 + $0x370] sm:$0xff]  ;;  %v45_v19 = vld [vmem:[%s3618_s1 + $0x80] sm:$0xff]  ;;  %v250_v21 = vld [vmem:[%s3617_s0 + $0x2e8] sm:$0xff] }
  0x1f   :  { %1809 = vmatpush3.msra.mxu1 %v192_v52  ;;  %1730 = vmatprep.subr.mxu0 %v175_v53  ;;  %v47_v20 = vld [vmem:[%s3618_s1 + $0x90] sm:$0xff]  ;;  %v282_v22 = vld [vmem:[%s3617_s0 + $0x3e8] sm:$0xff]  ;;  %v56_v25 = vld [vmem:[%s3618_s1 + $0xd8] sm:$0xff] }
  0x20   :  { %1810 = vmatprep.subr.mxu1 %v207_v54  ;;  %1731 = vmatpush3.msra.mxu0 %v159_v55  ;;  %v234_v23 = vld [vmem:[%s3617_s0 + $0x268] sm:$0xff]  ;;  %v53_v27 = vld [vmem:[%s3618_s1 + $0xc0] sm:$0xff]  ;;  %v55_v28 = vld [vmem:[%s3618_s1 + $0xd0] sm:$0xff] }
  0x21   :  { %1811 = vmatpush3.msra.mxu1 %v191_v56  ;;  %1732 = vmatprep.subr.mxu0 %v174_v57  ;;  %v54_v24 = vld [vmem:[%s3618_s1 + $0xc8] sm:$0xff]  ;;  %v249_v29 = vld [vmem:[%s3617_s0 + $0x2e0] sm:$0xff]  ;;  %v64_v33 = vld [vmem:[%s3618_s1 + $0x118] sm:$0xff] }
  0x22   :  { %1812 = vmatprep.subr.mxu1 %v206_v58  ;;  %1733 = vmatpush3.msra.mxu0 %v158_v59  ;;  %v266_v26 = vld [vmem:[%s3617_s0 + $0x368] sm:$0xff]  ;;  %v281_v30 = vld [vmem:[%s3617_s0 + $0x3e0] sm:$0xff]  ;;  %v63_v36 = vld [vmem:[%s3618_s1 + $0x110] sm:$0xff] }
  0x23   :  { %1813 = vmatpush3.msra.mxu1 %v190_v60  ;;  %1734 = vmatprep.subr.mxu0 %v173_v61  ;;  %v233_v31 = vld [vmem:[%s3617_s0 + $0x260] sm:$0xff]  ;;  %v62_v32 = vld [vmem:[%s3618_s1 + $0x108] sm:$0xff]  ;;  %v248_v37 = vld [vmem:[%s3617_s0 + $0x2d8] sm:$0xff] }
  0x24   :  { %1814 = vmatprep.subr.mxu1 %v205_v62  ;;  %1735 = vmatpush3.msra.mxu0 %v157_v63  ;;  %v265_v34 = vld [vmem:[%s3617_s0 + $0x360] sm:$0xff]  ;;  %v280_v38 = vld [vmem:[%s3617_s0 + $0x3d8] sm:$0xff]  ;;  %v70_v40 = vld [vmem:[%s3618_s1 + $0x148] sm:$0xff] }
  0x25   :  { %349 = vmatprep.mubr.f32.mxu0 %v30_v0  ;;  %1815 = vmatpush3.msra.mxu1 %v189_v1  ;;  %v61_v35 = vld [vmem:[%s3618_s1 + $0x100] sm:$0xff]  ;;  %v232_v39 = vld [vmem:[%s3617_s0 + $0x258] sm:$0xff]  ;;  %v71_v44 = vld [vmem:[%s3618_s1 + $0x150] sm:$0xff] }
  0x26   :  { %494 = vmatprep.mubr.f32.mxu1 %v32_v2  ;;  %350 = vmatmul.mubr.f32.vlgmr.msra.gmra.mxu0 %v29_v3  ;;  %v72_v41 = vld [vmem:[%s3618_s1 + $0x158] sm:$0xff]  ;;  %v69_v43 = vld [vmem:[%s3618_s1 + $0x140] sm:$0xff]  ;;  %v247_v45 = vld [vmem:[%s3617_s0 + $0x2d0] sm:$0xff] }
  0x27   :  { %495 = vmatmul.mubr.f32.vlgmr.msra.gmra.mxu1 %v31_v4  ;;  %1864 = vmatprep.subr.mxu0 %v252_v5  ;;  %v264_v42 = vld [vmem:[%s3617_s0 + $0x358] sm:$0xff]  ;;  %v279_v46 = vld [vmem:[%s3617_s0 + $0x3d0] sm:$0xff]  ;;  %v78_v48 = vld [vmem:[%s3618_s1 + $0x188] sm:$0xff] }
  0x28   :  { %1944 = vmatprep.subr.mxu1 %v284_v6  ;;  %1865 = vmatpush3.msra.mxu0 %v236_v7  ;;  %v231_v47 = vld [vmem:[%s3617_s0 + $0x250] sm:$0xff]  ;;  %v80_v49 = vld [vmem:[%s3618_s1 + $0x198] sm:$0xff]  ;;  %v77_v51 = vld [vmem:[%s3618_s1 + $0x180] sm:$0xff] }
  0x29   :  { %354 = vmatprep.mubr.f32.mxu0 %v38_v8  ;;  %499 = vmatprep.mubr.f32.mxu1 %v40_v9  ;;  %v263_v50 = vld [vmem:[%s3617_s0 + $0x350] sm:$0xff]  ;;  %v246_v53 = vld [vmem:[%s3617_s0 + $0x2c8] sm:$0xff]  ;;  %v88_v57 = vld [vmem:[%s3618_s1 + $0x1d8] sm:$0xff] }
  0x2a   :  { %1945 = vmatpush3.msra.mxu1 %v268_v10  ;;  %355 = vmatmul.mubr.f32.gmra.mxu0 %v37_v11  ;;  %v79_v52 = vld [vmem:[%s3618_s1 + $0x190] sm:$0xff]  ;;  %v278_v54 = vld [vmem:[%s3617_s0 + $0x3c8] sm:$0xff]  ;;  %v85_v59 = vld [vmem:[%s3618_s1 + $0x1c0] sm:$0xff] }
  0x2b   :  { %500 = vmatmul.mubr.f32.gmra.mxu1 %v39_v12  ;;  %1866 = vmatprep.subr.mxu0 %v251_v13  ;;  %v230_v55 = vld [vmem:[%s3617_s0 + $0x248] sm:$0xff]  ;;  %v87_v60 = vld [vmem:[%s3618_s1 + $0x1d0] sm:$0xff]  ;;  %v245_v61 = vld [vmem:[%s3617_s0 + $0x2c0] sm:$0xff] }
  0x2c   :  { %1946 = vmatprep.subr.mxu1 %v283_v14  ;;  %1867 = vmatpush3.msra.mxu0 %v235_v15  ;;  %v86_v56 = vld [vmem:[%s3618_s1 + $0x1c8] sm:$0xff]  ;;  %v277_v62 = vld [vmem:[%s3617_s0 + $0x3c0] sm:$0xff]  ;;  %v96_v1 = vld [vmem:[%s3618_s1 + $0x218] sm:$0xff] }
  0x2d   :  { %359 = vmatprep.mubr.f32.mxu0 %v46_v16  ;;  %504 = vmatprep.mubr.f32.mxu1 %v48_v17  ;;  %v262_v58 = vld [vmem:[%s3617_s0 + $0x348] sm:$0xff]  ;;  %v229_v63 = vld [vmem:[%s3617_s0 + $0x240] sm:$0xff]  ;;  %v95_v4 = vld [vmem:[%s3618_s1 + $0x210] sm:$0xff] }
  0x2e   :  { %1947 = vmatpush3.msra.mxu1 %v267_v18  ;;  %360 = vmatmul.mubr.f32.gmra.mxu0 %v45_v19  ;;  %v94_v0 = vld [vmem:[%s3618_s1 + $0x208] sm:$0xff]  ;;  %v261_v2 = vld [vmem:[%s3617_s0 + $0x340] sm:$0xff]  ;;  %v244_v5 = vld [vmem:[%s3617_s0 + $0x2b8] sm:$0xff] }
  0x2f   :  { %505 = vmatmul.mubr.f32.gmra.mxu1 %v47_v20  ;;  %1868 = vmatprep.subr.mxu0 %v250_v21  ;;  %v93_v3 = vld [vmem:[%s3618_s1 + $0x200] sm:$0xff]  ;;  %v276_v6 = vld [vmem:[%s3617_s0 + $0x3b8] sm:$0xff]  ;;  %v102_v8 = vld [vmem:[%s3618_s1 + $0x248] sm:$0xff] }
  0x30   :  { %1948 = vmatprep.subr.mxu1 %v282_v22  ;;  %1869 = vmatpush3.msra.mxu0 %v234_v23  ;;  %v228_v7 = vld [vmem:[%s3617_s0 + $0x238] sm:$0xff]  ;;  %v101_v11 = vld [vmem:[%s3618_s1 + $0x240] sm:$0xff]  ;;  %v103_v12 = vld [vmem:[%s3618_s1 + $0x250] sm:$0xff] }
  0x31   :  { %364 = vmatprep.mubr.f32.mxu0 %v54_v24  ;;  %509 = vmatprep.mubr.f32.mxu1 %v56_v25  ;;  %v104_v9 = vld [vmem:[%s3618_s1 + $0x258] sm:$0xff]  ;;  %v243_v13 = vld [vmem:[%s3617_s0 + $0x2b0] sm:$0xff]  ;;  %v110_v16 = vld [vmem:[%s3618_s1 + $0x288] sm:$0xff] }
  0x32   :  { %1949 = vmatpush3.msra.mxu1 %v266_v26  ;;  %365 = vmatmul.mubr.f32.gmra.mxu0 %v53_v27  ;;  %v260_v10 = vld [vmem:[%s3617_s0 + $0x338] sm:$0xff]  ;;  %v275_v14 = vld [vmem:[%s3617_s0 + $0x3b0] sm:$0xff]  ;;  %v109_v19 = vld [vmem:[%s3618_s1 + $0x280] sm:$0xff] }
  0x33   :  { %510 = vmatmul.mubr.f32.gmra.mxu1 %v55_v28  ;;  %1870 = vmatprep.subr.mxu0 %v249_v29  ;;  %v227_v15 = vld [vmem:[%s3617_s0 + $0x230] sm:$0xff]  ;;  %v112_v17 = vld [vmem:[%s3618_s1 + $0x298] sm:$0xff]  ;;  %v242_v21 = vld [vmem:[%s3617_s0 + $0x2a8] sm:$0xff] }
  0x34   :  { %1950 = vmatprep.subr.mxu1 %v281_v30  ;;  %1871 = vmatpush3.msra.mxu0 %v233_v31  ;;  %v259_v18 = vld [vmem:[%s3617_s0 + $0x330] sm:$0xff]  ;;  %v274_v22 = vld [vmem:[%s3617_s0 + $0x3a8] sm:$0xff]  ;;  %v120_v25 = vld [vmem:[%s3618_s1 + $0x2d8] sm:$0xff] }
  0x35   :  { %369 = vmatprep.mubr.f32.mxu0 %v62_v32  ;;  %514 = vmatprep.mubr.f32.mxu1 %v64_v33  ;;  %v111_v20 = vld [vmem:[%s3618_s1 + $0x290] sm:$0xff]  ;;  %v226_v23 = vld [vmem:[%s3617_s0 + $0x228] sm:$0xff]  ;;  %v117_v27 = vld [vmem:[%s3618_s1 + $0x2c0] sm:$0xff] }
  0x36   :  { %1951 = vmatpush3.msra.mxu1 %v265_v34  ;;  %370 = vmatmul.mubr.f32.gmra.mxu0 %v61_v35  ;;  %v118_v24 = vld [vmem:[%s3618_s1 + $0x2c8] sm:$0xff]  ;;  %v119_v28 = vld [vmem:[%s3618_s1 + $0x2d0] sm:$0xff]  ;;  %v241_v29 = vld [vmem:[%s3617_s0 + $0x2a0] sm:$0xff] }
  0x37   :  { %515 = vmatmul.mubr.f32.gmra.mxu1 %v63_v36  ;;  %1872 = vmatprep.subr.mxu0 %v248_v37  ;;  %v258_v26 = vld [vmem:[%s3617_s0 + $0x328] sm:$0xff]  ;;  %v273_v30 = vld [vmem:[%s3617_s0 + $0x3a0] sm:$0xff]  ;;  %v128_v33 = vld [vmem:[%s3618_s1 + $0x318] sm:$0xff] }
  0x38   :  { %1952 = vmatprep.subr.mxu1 %v280_v38  ;;  %1873 = vmatpush3.msra.mxu0 %v232_v39  ;;  %v225_v31 = vld [vmem:[%s3617_s0 + $0x220] sm:$0xff]  ;;  %v126_v32 = vld [vmem:[%s3618_s1 + $0x308] sm:$0xff]  ;;  %v127_v36 = vld [vmem:[%s3618_s1 + $0x310] sm:$0xff] }
  0x39   :  { %374 = vmatprep.mubr.f32.mxu0 %v70_v40  ;;  %519 = vmatprep.mubr.f32.mxu1 %v72_v41  ;;  %v257_v34 = vld [vmem:[%s3617_s0 + $0x320] sm:$0xff]  ;;  %v240_v37 = vld [vmem:[%s3617_s0 + $0x298] sm:$0xff]  ;;  %v134_v40 = vld [vmem:[%s3618_s1 + $0x348] sm:$0xff] }
  0x3a   :  { %1953 = vmatpush3.msra.mxu1 %v264_v42  ;;  %375 = vmatmul.mubr.f32.gmra.mxu0 %v69_v43  ;;  %v125_v35 = vld [vmem:[%s3618_s1 + $0x300] sm:$0xff]  ;;  %v272_v38 = vld [vmem:[%s3617_s0 + $0x398] sm:$0xff] }
  0x3b   :  { %520 = vmatmul.mubr.f32.gmra.mxu1 %v71_v44  ;;  %1874 = vmatprep.subr.mxu0 %v247_v45  ;;  %v224_v39 = vld [vmem:[%s3617_s0 + $0x218] sm:$0xff]  ;;  %v133_v43 = vld [vmem:[%s3618_s1 + $0x340] sm:$0xff]  ;;  %v135_v44 = vld [vmem:[%s3618_s1 + $0x350] sm:$0xff] }
  0x3c   :  { %1954 = vmatprep.subr.mxu1 %v279_v46  ;;  %1875 = vmatpush3.msra.mxu0 %v231_v47  ;;  %v136_v41 = vld [vmem:[%s3618_s1 + $0x358] sm:$0xff]  ;;  %v239_v45 = vld [vmem:[%s3617_s0 + $0x290] sm:$0xff] }
  0x3d   :  { %379 = vmatprep.mubr.f32.mxu0 %v78_v48  ;;  %524 = vmatprep.mubr.f32.mxu1 %v80_v49  ;;  %v256_v42 = vld [vmem:[%s3617_s0 + $0x318] sm:$0xff]  ;;  %v271_v46 = vld [vmem:[%s3617_s0 + $0x390] sm:$0xff]  ;;  %v142_v48 = vld [vmem:[%s3618_s1 + $0x388] sm:$0xff] }
  0x3e   :  { %1955 = vmatpush3.msra.mxu1 %v263_v50  ;;  %380 = vmatmul.mubr.f32.gmra.mxu0 %v77_v51  ;;  %v223_v47 = vld [vmem:[%s3617_s0 + $0x210] sm:$0xff]  ;;  %v144_v49 = vld [vmem:[%s3618_s1 + $0x398] sm:$0xff]  ;;  %v141_v51 = vld [vmem:[%s3618_s1 + $0x380] sm:$0xff] }
  0x3f   :  { %525 = vmatmul.mubr.f32.gmra.mxu1 %v79_v52  ;;  %1876 = vmatprep.subr.mxu0 %v246_v53  ;;  %v255_v50 = vld [vmem:[%s3617_s0 + $0x310] sm:$0xff]  ;;  %v238_v53 = vld [vmem:[%s3617_s0 + $0x288] sm:$0xff] }
  0x40   :  { %1956 = vmatprep.subr.mxu1 %v278_v54  ;;  %1877 = vmatpush3.msra.mxu0 %v230_v55  ;;  %v143_v52 = vld [vmem:[%s3618_s1 + $0x390] sm:$0xff]  ;;  %v270_v54 = vld [vmem:[%s3617_s0 + $0x388] sm:$0xff] }
  0x41   :  { %384 = vmatprep.mubr.f32.mxu0 %v86_v56  ;;  %529 = vmatprep.mubr.f32.mxu1 %v88_v57  ;;  %v222_v55 = vld [vmem:[%s3617_s0 + $0x208] sm:$0xff]  ;;  %v152_v57 = vld [vmem:[%s3618_s1 + $0x3d8] sm:$0xff] }
  0x42   :  { %1957 = vmatpush3.msra.mxu1 %v262_v58  ;;  %385 = vmatmul.mubr.f32.gmra.mxu0 %v85_v59  ;;  %v150_v56 = vld [vmem:[%s3618_s1 + $0x3c8] sm:$0xff]  ;;  %v149_v59 = vld [vmem:[%s3618_s1 + $0x3c0] sm:$0xff] }
  0x43   :  { %530 = vmatmul.mubr.f32.gmra.mxu1 %v87_v60  ;;  %1878 = vmatprep.subr.mxu0 %v245_v61  ;;  %v254_v58 = vld [vmem:[%s3617_s0 + $0x308] sm:$0xff]  ;;  %v151_v60 = vld [vmem:[%s3618_s1 + $0x3d0] sm:$0xff]  ;;  %v237_v61 = vld [vmem:[%s3617_s0 + $0x280] sm:$0xff] }
  0x44   :  { %1958 = vmatprep.subr.mxu1 %v277_v62  ;;  %1879 = vmatpush3.msra.mxu0 %v229_v63  ;;  %v269_v62 = vld [vmem:[%s3617_s0 + $0x380] sm:$0xff] }
  0x45   :  { %389 = vmatprep.mubr.f32.mxu0 %v94_v0  ;;  %534 = vmatprep.mubr.f32.mxu1 %v96_v1  ;;  %v221_v63 = vld [vmem:[%s3617_s0 + $0x200] sm:$0xff]  ;;  %v34_v0 = vld [vmem:[%s3618_s1 + $0x28] sm:$0xff] }
  0x46   :  { %1959 = vmatpush3.msra.mxu1 %v261_v2  ;;  %390 = vmatmul.mubr.f32.gmra.mxu0 %v93_v3  ;;  %v253_v1 = vld [vmem:[%s3617_s0 + $0x300] sm:$0xff]  ;;  %v36_v2 = vld [vmem:[%s3618_s1 + $0x38] sm:$0xff] }
  0x47   :  { %535 = vmatmul.mubr.f32.gmra.mxu1 %v95_v4  ;;  %1880 = vmatprep.subr.mxu0 %v244_v5 }
  0x48   :  { %1960 = vmatprep.subr.mxu1 %v276_v6  ;;  %1881 = vmatpush3.msra.mxu0 %v228_v7 }
  0x49   :  { %394 = vmatprep.mubr.f32.mxu0 %v102_v8  ;;  %539 = vmatprep.mubr.f32.mxu1 %v104_v9 }
  0x4a   :  { %1961 = vmatpush3.msra.mxu1 %v260_v10  ;;  %395 = vmatmul.mubr.f32.gmra.mxu0 %v101_v11 }
  0x4b   :  { %540 = vmatmul.mubr.f32.gmra.mxu1 %v103_v12  ;;  %1882 = vmatprep.subr.mxu0 %v243_v13 }
  0x4c   :  { %1962 = vmatprep.subr.mxu1 %v275_v14  ;;  %1883 = vmatpush3.msra.mxu0 %v227_v15 }
  0x4d   :  { %399 = vmatprep.mubr.f32.mxu0 %v110_v16  ;;  %544 = vmatprep.mubr.f32.mxu1 %v112_v17 }
  0x4e   :  { %1963 = vmatpush3.msra.mxu1 %v259_v18  ;;  %400 = vmatmul.mubr.f32.gmra.mxu0 %v109_v19 }
  0x4f   :  { %545 = vmatmul.mubr.f32.gmra.mxu1 %v111_v20  ;;  %1884 = vmatprep.subr.mxu0 %v242_v21 }
  0x50   :  { %1964 = vmatprep.subr.mxu1 %v274_v22  ;;  %1885 = vmatpush3.msra.mxu0 %v226_v23 }
  0x51   :  { %404 = vmatprep.mubr.f32.mxu0 %v118_v24  ;;  %549 = vmatprep.mubr.f32.mxu1 %v120_v25 }
  0x52   :  { %1965 = vmatpush3.msra.mxu1 %v258_v26  ;;  %405 = vmatmul.mubr.f32.gmra.mxu0 %v117_v27 }
  0x53   :  { %550 = vmatmul.mubr.f32.gmra.mxu1 %v119_v28  ;;  %1886 = vmatprep.subr.mxu0 %v241_v29 }
  0x54   :  { %1966 = vmatprep.subr.mxu1 %v273_v30  ;;  %1887 = vmatpush3.msra.mxu0 %v225_v31 }
  0x55   :  { %409 = vmatprep.mubr.f32.mxu0 %v126_v32  ;;  %554 = vmatprep.mubr.f32.mxu1 %v128_v33 }
  0x56   :  { %1967 = vmatpush3.msra.mxu1 %v257_v34  ;;  %410 = vmatmul.mubr.f32.gmra.mxu0 %v125_v35 }
  0x57   :  { %555 = vmatmul.mubr.f32.gmra.mxu1 %v127_v36  ;;  %1888 = vmatprep.subr.mxu0 %v240_v37 }
  0x58   :  { %1968 = vmatprep.subr.mxu1 %v272_v38  ;;  %1889 = vmatpush3.msra.mxu0 %v224_v39 }
  0x59   :  { %414 = vmatprep.mubr.f32.mxu0 %v134_v40  ;;  %559 = vmatprep.mubr.f32.mxu1 %v136_v41 }
  0x5a   :  { %1969 = vmatpush3.msra.mxu1 %v256_v42  ;;  %415 = vmatmul.mubr.f32.gmra.mxu0 %v133_v43 }
  0x5b   :  { %560 = vmatmul.mubr.f32.gmra.mxu1 %v135_v44  ;;  %1890 = vmatprep.subr.mxu0 %v239_v45 }
  0x5c   :  { %1970 = vmatprep.subr.mxu1 %v271_v46  ;;  %1891 = vmatpush3.msra.mxu0 %v223_v47 }
  0x5d   :  { %419 = vmatprep.mubr.f32.mxu0 %v142_v48  ;;  %564 = vmatprep.mubr.f32.mxu1 %v144_v49 }
  0x5e   :  { %1971 = vmatpush3.msra.mxu1 %v255_v50  ;;  %420 = vmatmul.mubr.f32.gmra.mxu0 %v141_v51 }
  0x5f   :  { %565 = vmatmul.mubr.f32.gmra.mxu1 %v143_v52  ;;  %1892 = vmatprep.subr.mxu0 %v238_v53 }
  0x60   :  { %1972 = vmatprep.subr.mxu1 %v270_v54  ;;  %1893 = vmatpush3.msra.mxu0 %v222_v55 }
  0x61   :  { %424 = vmatprep.mubr.f32.mxu0 %v150_v56  ;;  %569 = vmatprep.mubr.f32.mxu1 %v152_v57 }
  0x62   :  { %1973 = vmatpush3.msra.mxu1 %v254_v58  ;;  %425 = vmatmul.mubr.f32.gmra.mxu0 %v149_v59 }
  0x63   :  { %570 = vmatmul.mubr.f32.gmra.mxu1 %v151_v60 }
  0x64   :  { %14 = vsyncpa [#allocation4], 0  ;;  %1894 = vmatprep.subr.mxu0 %v237_v61  ;;  %1974 = vmatprep.subr.mxu1 %v269_v62  ;;  %v33_v3 = vld [vmem:[%s3618_s1 + $0x20] sm:$0xff]  ;;  %v35_v4 = vld [vmem:[%s3618_s1 + $0x30] sm:$0xff]  ;;  %v2142_v13 = vmov 0   ;;  %vm865_vm0 = vcmask 261120  }
  0x65   :  { %1895 = vmatpush3.msra.mxu0 %v221_v63  ;;  %639 = vmatprep.mubr.f32.mxu0 %v34_v0  ;;  %v42_v5 = vld [vmem:[%s3618_s1 + $0x68] sm:$0xff]  ;;  %v44_v6 = vld [vmem:[%s3618_s1 + $0x78] sm:$0xff]  ;;  %v1122_v8 = vld [vmem:[%s3619_s2] sm:$0xff] }
  0x66   :  { %1975 = vmatpush3.msra.mxu1 %v253_v1  ;;  %784 = vmatprep.mubr.f32.mxu1 %v36_v2  ;;  %v1123_v7 = vld [vmem:[%s3619_s2 + $0x8] sm:$0xff]  ;;  %v41_v9 = vld [vmem:[%s3618_s1 + $0x60] sm:$0xff]  ;;  %v43_v10 = vld [vmem:[%s3618_s1 + $0x70] sm:$0xff] }
  0x67   :  { %640 = vmatmul.mubr.f32.vlgmr.msra.gmra.mxu0 %v33_v3  ;;  %785 = vmatmul.mubr.f32.vlgmr.msra.gmra.mxu1 %v35_v4  ;;  %v50_v11 = vld [vmem:[%s3618_s1 + $0xa8] sm:$0xff]  ;;  %v52_v12 = vld [vmem:[%s3618_s1 + $0xb8] sm:$0xff]  ;;  %v1234_v14 = vld [vmem:[%s3620_s3] sm:$0xff] }
  0x68   :  { %644 = vmatprep.mubr.f32.mxu0 %v42_v5  ;;  %789 = vmatprep.mubr.f32.mxu1 %v44_v6  ;;  %v1127_v15 = vld [vmem:[%s3619_s2 + $0x28] sm:$0xff]  ;;  %v49_v16 = vld [vmem:[%s3618_s1 + $0xa0] sm:$0xff]  ;;  %v51_v17 = vld [vmem:[%s3618_s1 + $0xb0] sm:$0xff] }
  0x69   :  { %2087 = vset.pattern.permute.xlu1 %v2142_v13  ;;  %2086 = vset.pattern.permute.xlu0 %v2142_v13  ;;  %v58_v18 = vld [vmem:[%s3618_s1 + $0xe8] sm:$0xff]  ;;  %v60_v19 = vld [vmem:[%s3618_s1 + $0xf8] sm:$0xff]  ;;  %v57_v22 = vld [vmem:[%s3618_s1 + $0xe0] sm:$0xff] }
  0x6a   :  { %1145 = vperm.xlu1 %2087, %v1123_v7   ;;  %1140 = vperm.xlu0 %2086, %v1122_v8   ;;  %v1235_v20 = vld [vmem:[%s3620_s3 + $0x8] sm:$0xff]  ;;  %v59_v23 = vld [vmem:[%s3618_s1 + $0xf0] sm:$0xff]  ;;  %v68_v25 = vld [vmem:[%s3618_s1 + $0x138] sm:$0xff] }
  0x6b   :  { %645 = vmatmul.mubr.f32.gmra.mxu0 %v41_v9  ;;  %790 = vmatmul.mubr.f32.gmra.mxu1 %v43_v10  ;;  %v1239_v21 = vld [vmem:[%s3620_s3 + $0x28] sm:$0xff]  ;;  %v1124_v26 = vld [vmem:[%s3619_s2 + $0x10] sm:$0xff]  ;;  %v1129_v27 = vld [vmem:[%s3619_s2 + $0x38] sm:$0xff] }
  0x6c   :  { %649 = vmatprep.mubr.f32.mxu0 %v50_v11  ;;  %794 = vmatprep.mubr.f32.mxu1 %v52_v12  ;;  %v66_v24 = vld [vmem:[%s3618_s1 + $0x128] sm:$0xff]  ;;  %v65_v28 = vld [vmem:[%s3618_s1 + $0x120] sm:$0xff]  ;;  %v67_v29 = vld [vmem:[%s3618_s1 + $0x130] sm:$0xff] }
  0x6d   :  { %v74_v30 = vld [vmem:[%s3618_s1 + $0x168] sm:$0xff]  ;;  %v76_v31 = vld [vmem:[%s3618_s1 + $0x178] sm:$0xff]  ;;  %v73_v34 = vld [vmem:[%s3618_s1 + $0x160] sm:$0xff] }
  0x6e   :  { %1252 = vperm.xlu1 %2087, %v1234_v14   ;;  %1165 = vperm.xlu0 %2086, %v1127_v15   ;;  %v1125_v32 = vld [vmem:[%s3619_s2 + $0x18] sm:$0xff]  ;;  %v75_v35 = vld [vmem:[%s3618_s1 + $0x170] sm:$0xff]  ;;  %v82_v36 = vld [vmem:[%s3618_s1 + $0x1a8] sm:$0xff] }
  0x6f   :  { %650 = vmatmul.mubr.f32.gmra.mxu0 %v49_v16  ;;  %795 = vmatmul.mubr.f32.gmra.mxu1 %v51_v17  ;;  %v1241_v33 = vld [vmem:[%s3620_s3 + $0x38] sm:$0xff]  ;;  %v1236_v38 = vld [vmem:[%s3620_s3 + $0x10] sm:$0xff]  ;;  %v1131_v39 = vld [vmem:[%s3619_s2 + $0x48] sm:$0xff] }
  0x70   :  { %654 = vmatprep.mubr.f32.mxu0 %v58_v18  ;;  %799 = vmatprep.mubr.f32.mxu1 %v60_v19  ;;  %v84_v37 = vld [vmem:[%s3618_s1 + $0x1b8] sm:$0xff]  ;;  %v81_v40 = vld [vmem:[%s3618_s1 + $0x1a0] sm:$0xff]  ;;  %v83_v41 = vld [vmem:[%s3618_s1 + $0x1b0] sm:$0xff] }
  0x71   :  { %v90_v42 = vld [vmem:[%s3618_s1 + $0x1e8] sm:$0xff]  ;;  %v92_v43 = vld [vmem:[%s3618_s1 + $0x1f8] sm:$0xff]  ;;  %v89_v46 = vld [vmem:[%s3618_s1 + $0x1e0] sm:$0xff] }
  0x72   :  { %1257 = vperm.xlu1 %2087, %v1235_v20   ;;  %1277 = vperm.xlu0 %2086, %v1239_v21   ;;  %v1237_v44 = vld [vmem:[%s3620_s3 + $0x18] sm:$0xff]  ;;  %v1243_v45 = vld [vmem:[%s3620_s3 + $0x48] sm:$0xff]  ;;  %v91_v47 = vld [vmem:[%s3618_s1 + $0x1f0] sm:$0xff] }
  0x73   :  { %655 = vmatmul.mubr.f32.gmra.mxu0 %v57_v22  ;;  %800 = vmatmul.mubr.f32.gmra.mxu1 %v59_v23  ;;  %v98_v48 = vld [vmem:[%s3618_s1 + $0x228] sm:$0xff]  ;;  %v100_v49 = vld [vmem:[%s3618_s1 + $0x238] sm:$0xff]  ;;  %v1126_v50 = vld [vmem:[%s3619_s2 + $0x20] sm:$0xff] }
  0x74   :  { %659 = vmatprep.mubr.f32.mxu0 %v66_v24  ;;  %804 = vmatprep.mubr.f32.mxu1 %v68_v25  ;;  %v1133_v51 = vld [vmem:[%s3619_s2 + $0x58] sm:$0xff]  ;;  %v97_v52 = vld [vmem:[%s3618_s1 + $0x220] sm:$0xff]  ;;  %v99_v53 = vld [vmem:[%s3618_s1 + $0x230] sm:$0xff] }
  0x75   :  { %v106_v54 = vld [vmem:[%s3618_s1 + $0x268] sm:$0xff]  ;;  %v108_v55 = vld [vmem:[%s3618_s1 + $0x278] sm:$0xff]  ;;  %v1238_v56 = vld [vmem:[%s3620_s3 + $0x20] sm:$0xff] }
  0x76   :  { %1150 = vperm.xlu1 %2087, %v1124_v26   ;;  %1175 = vperm.xlu0 %2086, %v1129_v27   ;;  %v1245_v57 = vld [vmem:[%s3620_s3 + $0x58] sm:$0xff]  ;;  %v105_v58 = vld [vmem:[%s3618_s1 + $0x260] sm:$0xff]  ;;  %v107_v59 = vld [vmem:[%s3618_s1 + $0x270] sm:$0xff] }
  0x77   :  { %660 = vmatmul.mubr.f32.gmra.mxu0 %v65_v28  ;;  %805 = vmatmul.mubr.f32.gmra.mxu1 %v67_v29  ;;  %v114_v60 = vld [vmem:[%s3618_s1 + $0x2a8] sm:$0xff]  ;;  %v116_v61 = vld [vmem:[%s3618_s1 + $0x2b8] sm:$0xff]  ;;  %v1128_v62 = vld [vmem:[%s3619_s2 + $0x30] sm:$0xff] }
  0x78   :  { %664 = vmatprep.mubr.f32.mxu0 %v74_v30  ;;  %809 = vmatprep.mubr.f32.mxu1 %v76_v31  ;;  %v1135_v63 = vld [vmem:[%s3619_s2 + $0x68] sm:$0xff]  ;;  %v113_v0 = vld [vmem:[%s3618_s1 + $0x2a0] sm:$0xff]  ;;  %v115_v1 = vld [vmem:[%s3618_s1 + $0x2b0] sm:$0xff] }
  0x79   :  { %v122_v2 = vld [vmem:[%s3618_s1 + $0x2e8] sm:$0xff]  ;;  %v124_v3 = vld [vmem:[%s3618_s1 + $0x2f8] sm:$0xff]  ;;  %v1240_v4 = vld [vmem:[%s3620_s3 + $0x30] sm:$0xff] }
  0x7a   :  { %1155 = vperm.xlu1 %2087, %v1125_v32   ;;  %1287 = vperm.xlu0 %2086, %v1241_v33   ;;  %v1247_v5 = vld [vmem:[%s3620_s3 + $0x68] sm:$0xff]  ;;  %v121_v6 = vld [vmem:[%s3618_s1 + $0x2e0] sm:$0xff]  ;;  %v123_v7 = vld [vmem:[%s3618_s1 + $0x2f0] sm:$0xff] }
  0x7b   :  { %665 = vmatmul.mubr.f32.gmra.mxu0 %v73_v34  ;;  %810 = vmatmul.mubr.f32.gmra.mxu1 %v75_v35  ;;  %v130_v8 = vld [vmem:[%s3618_s1 + $0x328] sm:$0xff]  ;;  %v132_v9 = vld [vmem:[%s3618_s1 + $0x338] sm:$0xff]  ;;  %v1130_v10 = vld [vmem:[%s3619_s2 + $0x40] sm:$0xff] }
  0x7c   :  { %669 = vmatprep.mubr.f32.mxu0 %v82_v36  ;;  %814 = vmatprep.mubr.f32.mxu1 %v84_v37  ;;  %v129_v11 = vld [vmem:[%s3618_s1 + $0x320] sm:$0xff]  ;;  %v131_v12 = vld [vmem:[%s3618_s1 + $0x330] sm:$0xff]  ;;  %v138_v13 = vld [vmem:[%s3618_s1 + $0x368] sm:$0xff] }
  0x7d   :  { %v140_v14 = vld [vmem:[%s3618_s1 + $0x378] sm:$0xff]  ;;  %v1242_v15 = vld [vmem:[%s3620_s3 + $0x40] sm:$0xff]  ;;  %v139_v17 = vld [vmem:[%s3618_s1 + $0x370] sm:$0xff] }
  0x7e   :  { %1262 = vperm.xlu1 %2087, %v1236_v38   ;;  %1185 = vperm.xlu0 %2086, %v1131_v39   ;;  %v137_v16 = vld [vmem:[%s3618_s1 + $0x360] sm:$0xff]  ;;  %v146_v18 = vld [vmem:[%s3618_s1 + $0x3a8] sm:$0xff]  ;;  %v148_v19 = vld [vmem:[%s3618_s1 + $0x3b8] sm:$0xff] }
  0x7f   :  { %670 = vmatmul.mubr.f32.gmra.mxu0 %v81_v40  ;;  %815 = vmatmul.mubr.f32.gmra.mxu1 %v83_v41  ;;  %v1132_v20 = vld [vmem:[%s3619_s2 + $0x50] sm:$0xff]  ;;  %v145_v21 = vld [vmem:[%s3618_s1 + $0x3a0] sm:$0xff]  ;;  %v154_v23 = vld [vmem:[%s3618_s1 + $0x3e8] sm:$0xff] }
  0x80   :  { %674 = vmatprep.mubr.f32.mxu0 %v90_v42  ;;  %819 = vmatprep.mubr.f32.mxu1 %v92_v43  ;;  %v147_v22 = vld [vmem:[%s3618_s1 + $0x3b0] sm:$0xff]  ;;  %v156_v24 = vld [vmem:[%s3618_s1 + $0x3f8] sm:$0xff]  ;;  %v153_v26 = vld [vmem:[%s3618_s1 + $0x3e0] sm:$0xff] }
  0x81   :  { %v1244_v25 = vld [vmem:[%s3620_s3 + $0x50] sm:$0xff]  ;;  %v1134_v28 = vld [vmem:[%s3619_s2 + $0x60] sm:$0xff] }
  0x82   :  { %1267 = vperm.xlu1 %2087, %v1237_v44   ;;  %1297 = vperm.xlu0 %2086, %v1243_v45   ;;  %v155_v27 = vld [vmem:[%s3618_s1 + $0x3f0] sm:$0xff]  ;;  %v1246_v29 = vld [vmem:[%s3620_s3 + $0x60] sm:$0xff] }
  0x83   :  { %675 = vmatmul.mubr.f32.gmra.mxu0 %v89_v46  ;;  %820 = vmatmul.mubr.f32.gmra.mxu1 %v91_v47  ;;  %v1136_v30 = vld [vmem:[%s3619_s2 + $0x70] sm:$0xff] }
  0x84   :  { %679 = vmatprep.mubr.f32.mxu0 %v98_v48  ;;  %824 = vmatprep.mubr.f32.mxu1 %v100_v49 }
  0x86   :  { %1160 = vperm.xlu1 %2087, %v1126_v50   ;;  %1195 = vperm.xlu0 %2086, %v1133_v51  }
  0x87   :  { %680 = vmatmul.mubr.f32.gmra.mxu0 %v97_v52  ;;  %825 = vmatmul.mubr.f32.gmra.mxu1 %v99_v53 }
  0x88   :  { %684 = vmatprep.mubr.f32.mxu0 %v106_v54  ;;  %829 = vmatprep.mubr.f32.mxu1 %v108_v55 }
  0x8a   :  { %1272 = vperm.xlu1 %2087, %v1238_v56   ;;  %1307 = vperm.xlu0 %2086, %v1245_v57  }
  0x8b   :  { %685 = vmatmul.mubr.f32.gmra.mxu0 %v105_v58  ;;  %830 = vmatmul.mubr.f32.gmra.mxu1 %v107_v59 }
  0x8c   :  { %689 = vmatprep.mubr.f32.mxu0 %v114_v60  ;;  %834 = vmatprep.mubr.f32.mxu1 %v116_v61 }
  0x8e   :  { %1170 = vperm.xlu1 %2087, %v1128_v62   ;;  %1205 = vperm.xlu0 %2086, %v1135_v63  }
  0x8f   :  { %690 = vmatmul.mubr.f32.gmra.mxu0 %v113_v0  ;;  %835 = vmatmul.mubr.f32.gmra.mxu1 %v115_v1 }
  0x90   :  { %694 = vmatprep.mubr.f32.mxu0 %v122_v2  ;;  %839 = vmatprep.mubr.f32.mxu1 %v124_v3 }
  0x92   :  { %1282 = vperm.xlu1 %2087, %v1240_v4   ;;  %1317 = vperm.xlu0 %2086, %v1247_v5  }
  0x93   :  { %695 = vmatmul.mubr.f32.gmra.mxu0 %v121_v6  ;;  %840 = vmatmul.mubr.f32.gmra.mxu1 %v123_v7 }
  0x94   :  { %699 = vmatprep.mubr.f32.mxu0 %v130_v8  ;;  %844 = vmatprep.mubr.f32.mxu1 %v132_v9 }
  0x96   :  { %1180 = vperm.xlu1 %2087, %v1130_v10  }
  0x97   :  { %700 = vmatmul.mubr.f32.gmra.mxu0 %v129_v11  ;;  %845 = vmatmul.mubr.f32.gmra.mxu1 %v131_v12 }
  0x98   :  { %704 = vmatprep.mubr.f32.mxu0 %v138_v13  ;;  %849 = vmatprep.mubr.f32.mxu1 %v140_v14 }
  0x9a   :  { %1292 = vperm.xlu1 %2087, %v1242_v15  }
  0x9b   :  { %705 = vmatmul.mubr.f32.gmra.mxu0 %v137_v16  ;;  %850 = vmatmul.mubr.f32.gmra.mxu1 %v139_v17 }
  0x9c   :  { %709 = vmatprep.mubr.f32.mxu0 %v146_v18  ;;  %854 = vmatprep.mubr.f32.mxu1 %v148_v19 }
  0x9e   :  { %1190 = vperm.xlu1 %2087, %v1132_v20  }
  0x9f   :  { %710 = vmatmul.mubr.f32.gmra.mxu0 %v145_v21  ;;  %855 = vmatmul.mubr.f32.gmra.mxu1 %v147_v22 }
  0xa0   :  { %714 = vmatprep.mubr.f32.mxu0 %v154_v23  ;;  %859 = vmatprep.mubr.f32.mxu1 %v156_v24 }
  0xa2   :  { %1302 = vperm.xlu1 %2087, %v1244_v25  }
  0xa3   :  { %715 = vmatmul.mubr.f32.gmra.mxu0 %v153_v26  ;;  %860 = vmatmul.mubr.f32.gmra.mxu1 %v155_v27 }
  0xa6   :  { %1200 = vperm.xlu1 %2087, %v1134_v28  }
  0xaa   :  { %1312 = vperm.xlu1 %2087, %v1246_v29  }
  0xae   :  { %1210 = vperm.xlu1 %2087, %v1136_v30  }
  0xe6   :  { %v3042_v31 = vpop.f32.mrf.mxu0 }
  0xe7   :  { %v3044_v32 = vpop.f32.mrf.mxu1 }
  0xe8   :  { %v1737_v33 = vpop.f32.mrf.mxu0 }
  0xe9   :  { %v1817_v34 = vpop.f32.mrf.mxu1 }
  0xea   :  { %v3046_v35 = vpop.f32.mrf.mxu0 }
  0xeb   :  { %v3048_v36 = vpop.f32.mrf.mxu1 }
  0xec   :  { %v3050_v37 = vpop.f32.mrf.mxu0 }
  0xed   :  { %v3052_v38 = vpop.f32.mrf.mxu1 }
  0xee   :  { %v3054_v39 = vpop.f32.mrf.mxu0 }
  0xef   :  { %v3056_v40 = vpop.f32.mrf.mxu1 }
  0xf0   :  { %v3058_v41 = vpop.f32.mrf.mxu0 }
  0xf1   :  { %v3060_v42 = vpop.f32.mrf.mxu1 }
  0xf2   :  { %v3062_v43 = vpop.f32.mrf.mxu0 }
  0xf3   :  { %v3064_v44 = vpop.f32.mrf.mxu1 }
  0xf4   :  { %v3066_v45 = vpop.f32.mrf.mxu0 }
  0xf5   :  { %v3068_v46 = vpop.f32.mrf.mxu1 }
  0xf6   :  { %v3070_v47 = vpop.f32.mrf.mxu0 }
  0xf7   :  { %v3072_v48 = vpop.f32.mrf.mxu1 }
  0xf8   :  { %v3074_v49 = vpop.f32.mrf.mxu0 }
  0xf9   :  { %v3076_v50 = vpop.f32.mrf.mxu1 }
  0xfa   :  { %v3078_v51 = vpop.f32.mrf.mxu0 }
  0xfb   :  { %v3080_v52 = vpop.f32.mrf.mxu1 }
  0xfc   :  { %v3082_v53 = vpop.f32.mrf.mxu0 }
  0xfd   :  { %v3084_v54 = vpop.f32.mrf.mxu1 }
  0xfe   :  { %v3086_v55 = vpop.f32.mrf.mxu0 }
  0xff   :  { %v3088_v56 = vpop.f32.mrf.mxu1 }
 0x100   :  { %v3090_v57 = vpop.f32.mrf.mxu0 }
 0x101   :  { %v3092_v58 = vpop.f32.mrf.mxu1 }
 0x102   :  { %v3094_v59 = vpop.f32.mrf.mxu0 }
 0x103   :  { %v3096_v60 = vpop.f32.mrf.mxu1 }
 0x104   :  { %v3098_v61 = vpop.f32.mrf.mxu0 }
 0x105   :  { %v3100_v62 = vpop.f32.mrf.mxu1 }
 0x106   :  { %v3102_v63 = vpop.f32.mrf.mxu0 }
 0x107   :  { %v3104_v0 = vpop.f32.mrf.mxu1 }
 0x108   :  { %v3106_v1 = vpop.f32.mrf.mxu0 }
 0x109   :  { %v3108_v2 = vpop.f32.mrf.mxu1 }
 0x10a   :  { %v3110_v3 = vpop.f32.mrf.mxu0 }
 0x10b   :  { %v3112_v4 = vpop.f32.mrf.mxu1 }
 0x10c   :  { %v3114_v5 = vpop.f32.mrf.mxu0 }
 0x10d   :  { %v3116_v6 = vpop.f32.mrf.mxu1 }
 0x10e   :  { %v3118_v7 = vpop.f32.mrf.mxu0 }
 0x10f   :  { %v3120_v8 = vpop.f32.mrf.mxu1 }
 0x110   :  { %v3122_v9 = vpop.f32.mrf.mxu0 }
 0x111   :  { %v3124_v10 = vpop.f32.mrf.mxu1 }
 0x112   :  { %v3126_v11 = vpop.f32.mrf.mxu0 }
 0x113   :  { %v3128_v12 = vpop.f32.mrf.mxu1 }
 0x114   :  { %v3130_v13 = vpop.f32.mrf.mxu0 }
 0x115   :  { %v3132_v14 = vpop.f32.mrf.mxu1 }
 0x116   :  { %v3134_v15 = vpop.f32.mrf.mxu0 }
 0x117   :  { %v3136_v16 = vpop.f32.mrf.mxu1 }
 0x118   :  { %3627 = vst [vmem:[#allocation6_spill] sm:$0xff] %v3136_v16  ;;  %v3138_v17 = vpop.f32.mrf.mxu0 }
 0x119   :  { %v3140_v18 = vpop.f32.mrf.mxu1 }
 0x11a   :  { %3628 = vst [vmem:[#allocation7_spill] sm:$0xff] %v3140_v18  ;;  %v3142_v19 = vpop.f32.mrf.mxu0 }
 0x11b   :  { %3629 = vst [vmem:[#allocation8_spill] sm:$0xff] %v3142_v19  ;;  %v3144_v20 = vpop.f32.mrf.mxu1 }
 0x11c   :  { %3630 = vst [vmem:[#allocation9_spill] sm:$0xff] %v3144_v20  ;;  %v3146_v21 = vpop.f32.mrf.mxu0  ;;  %v1738_v20 = vadd.f32 %v1737_v33, %v3042_v31  ;;  %v1744_v31 = vadd.f32 %v3058_v41, %v3054_v39 }
 0x11d   :  { %3631 = vst [vmem:[#allocation10_spill] sm:$0xff] %v3146_v21  ;;  %v3148_v22 = vpop.f32.mrf.mxu1 }
 0x11e   :  { %3632 = vst [vmem:[#allocation11_spill] sm:$0xff] %v3148_v22  ;;  %v3150_v23 = vpop.f32.mrf.mxu0  ;;  %v1818_v22 = vadd.f32 %v1817_v34, %v3044_v32  ;;  %v1824_v32 = vadd.f32 %v3060_v42, %v3056_v40  ;;  %v1747_v40 = vadd.f32 %v3066_v45, %v3062_v43  ;;  %v1750_v45 = vadd.f32 %v3074_v49, %v3070_v47 }
 0x11f   :  { %3633 = vst [vmem:[#allocation12_spill] sm:$0xff] %v3150_v23  ;;  %v3152_v24 = vpop.f32.mrf.mxu1 }
 0x120   :  { %3634 = vst [vmem:[#allocation13_spill] sm:$0xff] %v3152_v24  ;;  %v3154_v25 = vpop.f32.mrf.mxu0  ;;  %v497_v18 = vadd.f32 %v1818_v22, %v1738_v20  ;;  %v507_v41 = vadd.f32 %v1824_v32, %v1744_v31 }
 0x121   :  { %3635 = vst [vmem:[#allocation14_spill] sm:$0xff] %v3154_v25  ;;  %v3156_v26 = vpop.f32.mrf.mxu1 }
 0x122   :  { %3636 = vst [vmem:[#allocation15_spill] sm:$0xff] %v3156_v26  ;;  %v3158_v27 = vpop.f32.mrf.mxu0  ;;  %v1741_v26 = vadd.f32 %v3050_v37, %v3046_v35 }
 0x123   :  { %3637 = vst [vmem:[#allocation16_spill] sm:$0xff] %v3158_v27  ;;  %v3160_v28 = vpop.f32.mrf.mxu1  ;;  %v1821_v27 = vadd.f32 %v3052_v38, %v3048_v36 }
 0x124   :  { %3638 = vst [vmem:[#allocation17_spill] sm:$0xff] %v3160_v28  ;;  %v3162_v29 = vpop.f32.mrf.mxu0 }
 0x125   :  { %3639 = vst [vmem:[#allocation18_spill] sm:$0xff] %v3162_v29  ;;  %v3164_v30 = vpop.f32.mrf.mxu1  ;;  %v502_v20 = vadd.f32 %v1821_v27, %v1741_v26 }
 0x126   :  { %3640 = vst [vmem:[#allocation19_spill] sm:$0xff] %v3164_v30 }
 0x127   :  { %v1896_v21 = vpop.f32.mrf.mxu0  ;;  %v1976_v23 = vpop.f32.mrf.mxu1 }
 0x129   :  { %v1897_v19 = vpop.f32.mrf.mxu0  ;;  %v1977_v24 = vpop.f32.mrf.mxu1 }
 0x12a   :  { %v1898_v28 = vadd.f32 %v1897_v19, %v1896_v21  ;;  %v1978_v30 = vadd.f32 %v1977_v24, %v1976_v23 }
 0x12b   :  { %v1899_v25 = vpop.f32.mrf.mxu0  ;;  %v1979_v29 = vpop.f32.mrf.mxu1 }
 0x12c   :  { %v642_v16 = vadd.f32 %v1898_v28, %v497_v18 }
 0x12d   :  { %v1900_v33 = vpop.f32.mrf.mxu0  ;;  %v1980_v34 = vpop.f32.mrf.mxu1 }
 0x12e   :  { %v3176_v22 = vadd.f32 %v1978_v30, %v642_v16  ;;  %v1901_v35 = vadd.f32 %v1900_v33, %v1899_v25  ;;  %v1981_v19 = vadd.f32 %v1980_v34, %v1979_v29  ;;  %v1827_v16 = vadd.f32 %v3068_v46, %v3064_v44 }
 0x12f   :  { %v1902_v37 = vpop.f32.mrf.mxu0  ;;  %v1982_v36 = vpop.f32.mrf.mxu1  ;;  %v1830_v44 = vadd.f32 %v3076_v50, %v3072_v48 }
 0x130   :  { %v647_v38 = vadd.f32 %v1901_v35, %v502_v20  ;;  %v866_v18 = vsel %vm865_vm0, %v3176_v22, 0.0  ;;  %v930_v39 = vmul.f32 %v3176_v22, %v3176_v22  ;;  %v512_v32 = vadd.f32 %v1827_v16, %v1747_v40 }
 0x131   :  { %v1903_v42 = vpop.f32.mrf.mxu0  ;;  %867 = vadd.xlane.f32.xlu0 %v866_v18  ;;  %v1983_v21 = vpop.f32.mrf.mxu1  ;;  %v517_v49 = vadd.f32 %v1830_v44, %v1750_v45  ;;  %v1753_v18 = vadd.f32 %v3082_v53, %v3078_v51  ;;  %v1756_v51 = vadd.f32 %v3090_v57, %v3086_v55 }
 0x132   :  { %v3186_v23 = vadd.f32 %v1981_v19, %v647_v38  ;;  %v1904_v24 = vadd.f32 %v1903_v42, %v1902_v37  ;;  %v946_v25 = vsel %vm865_vm0, %v930_v39, 0.0  ;;  %v1984_v29 = vadd.f32 %v1983_v21, %v1982_v36 }
 0x133   :  { %v1905_v26 = vpop.f32.mrf.mxu0  ;;  %947 = vadd.xlane.f32.xlu1 %v946_v25  ;;  %v1985_v27 = vpop.f32.mrf.mxu1  ;;  %v1833_v39 = vadd.f32 %v3084_v54, %v3080_v52  ;;  %v1836_v52 = vadd.f32 %v3092_v58, %v3088_v56 }
 0x134   :  { %v652_v28 = vadd.f32 %v1904_v24, %v507_v41  ;;  %v869_v30 = vsel %vm865_vm0, %v3186_v23, 0.0  ;;  %v931_v43 = vmul.f32 %v3186_v23, %v3186_v23 }
 0x135   :  { %v1906_v46 = vpop.f32.mrf.mxu0  ;;  %870 = vadd.xlane.f32.xlu0 %v869_v30  ;;  %v1986_v31 = vpop.f32.mrf.mxu1  ;;  %v527_v57 = vadd.f32 %v1836_v52, %v1756_v51  ;;  %v1765_v51 = vadd.f32 %v3114_v5, %v3110_v3  ;;  %v1845_v52 = vadd.f32 %v3116_v6, %v3112_v4  ;;  %v1768_v3 = vadd.f32 %v3122_v9, %v3118_v7 }
 0x136   :  { %v3197_v33 = vadd.f32 %v1984_v29, %v652_v28  ;;  %v1907_v34 = vadd.f32 %v1906_v46, %v1905_v26  ;;  %v949_v20 = vsel %vm865_vm0, %v931_v43, 0.0  ;;  %v1987_v38 = vadd.f32 %v1986_v31, %v1985_v27 }
 0x137   :  { %v1908_v35 = vpop.f32.mrf.mxu0  ;;  %950 = vadd.xlane.f32.xlu1 %v949_v20  ;;  %v1988_v37 = vpop.f32.mrf.mxu1  ;;  %v522_v28 = vadd.f32 %v1833_v39, %v1753_v18  ;;  %v1839_v20 = vadd.f32 %v3100_v62, %v3096_v60  ;;  %v1842_v60 = vadd.f32 %v3108_v2, %v3104_v0  ;;  %v1429_v18 = vld [vmem:[%s3622_s5 + $0x18] sm:$0xff]  ;;  %v1848_v4 = vadd.f32 %v3124_v10, %v3120_v8 }
 0x138   :  { %v657_v36 = vadd.f32 %v1907_v34, %v512_v32  ;;  %v872_v47 = vsel %vm865_vm0, %v3197_v33, 0.0  ;;  %v932_v48 = vmul.f32 %v3197_v33, %v3197_v33  ;;  %v1759_v34 = vadd.f32 %v3098_v61, %v3094_v59  ;;  %2044 = vmatprep.subr.mxu0 %v1429_v18  ;;  %2076 = vmatprep.subr.mxu1 %v1429_v18 }
 0x139   :  { %v1909_v50 = vpop.f32.mrf.mxu0  ;;  %873 = vadd.xlane.f32.xlu0 %v872_v47  ;;  %v1989_v19 = vpop.f32.mrf.mxu1  ;;  %v1762_v59 = vadd.f32 %v3106_v1, %v3102_v63  ;;  %2045 = vmatpush3.msra.mxu0 %v1429_v18  ;;  %v547_v9 = vadd.f32 %v1848_v4, %v1768_v3 }
 0x13a   :  { %v3208_v41 = vadd.f32 %v1987_v38, %v657_v36  ;;  %v1910_v40 = vadd.f32 %v1909_v50, %v1908_v35  ;;  %v1990_v42 = vadd.f32 %v1989_v19, %v1988_v37  ;;  %v952_v26 = vsel %vm865_vm0, %v932_v48, 0.0  ;;  %2080 = vmatpush3.msra.mxu1 %v1429_v18 }
 0x13b   :  { %v1911_v21 = vpop.f32.mrf.mxu0  ;;  %v1991_v16 = vpop.f32.mrf.mxu1  ;;  %v532_v39 = vadd.f32 %v1839_v20, %v1759_v34 }
 0x13c   :  { %v662_v24 = vadd.f32 %v1910_v40, %v517_v49  ;;  %v875_v25 = vsel %vm865_vm0, %v3208_v41, 0.0  ;;  %v933_v27 = vmul.f32 %v3208_v41, %v3208_v41 }
 0x13d   :  { %v1912_v53 = vpop.f32.mrf.mxu0  ;;  %876 = vadd.xlane.f32.xlu1 %v875_v25  ;;  %953 = vadd.xlane.f32.xlu0 %v952_v26  ;;  %v1992_v54 = vpop.f32.mrf.mxu1  ;;  %v537_v25 = vadd.f32 %v1842_v60, %v1762_v59 }
 0x13e   :  { %v3219_v29 = vadd.f32 %v1990_v42, %v662_v24  ;;  %v1913_v30 = vadd.f32 %v1912_v53, %v1911_v21  ;;  %v1993_v43 = vadd.f32 %v1992_v54, %v1991_v16  ;;  %v955_v31 = vsel %vm865_vm0, %v933_v27, 0.0 }
 0x13f   :  { %v1914_v45 = vpop.f32.mrf.mxu0  ;;  %v1994_v44 = vpop.f32.mrf.mxu1 }
 0x140   :  { %v667_v46 = vadd.f32 %v1913_v30, %v522_v28  ;;  %v878_v55 = vsel %vm865_vm0, %v3219_v29, 0.0  ;;  %v934_v56 = vmul.f32 %v3219_v29, %v3219_v29 }
 0x141   :  { %v1915_v58 = vpop.f32.mrf.mxu0  ;;  %956 = vadd.xlane.f32.xlu1 %v955_v31  ;;  %879 = vadd.xlane.f32.xlu0 %v878_v55  ;;  %v1995_v32 = vpop.f32.mrf.mxu1  ;;  %v542_v55 = vadd.f32 %v1845_v52, %v1765_v51 }
 0x142   :  { %v3230_v35 = vadd.f32 %v1993_v43, %v667_v46  ;;  %v1916_v37 = vadd.f32 %v1915_v58, %v1914_v45  ;;  %v1996_v36 = vadd.f32 %v1995_v32, %v1994_v44  ;;  %v958_v50 = vsel %vm865_vm0, %v934_v56, 0.0 }
 0x143   :  { %v1917_v38 = vpop.f32.mrf.mxu0  ;;  %v1997_v47 = vpop.f32.mrf.mxu1 }
 0x144   :  { %v672_v48 = vadd.f32 %v1916_v37, %v527_v57  ;;  %v881_v49 = vsel %vm865_vm0, %v3230_v35, 0.0  ;;  %v935_v19 = vmul.f32 %v3230_v35, %v3230_v35 }
 0x145   :  { %v1918_v61 = vpop.f32.mrf.mxu0  ;;  %882 = vadd.xlane.f32.xlu1 %v881_v49  ;;  %959 = vadd.xlane.f32.xlu0 %v958_v50  ;;  %v1998_v62 = vpop.f32.mrf.mxu1 }
 0x146   :  { %v3244_v40 = vadd.f32 %v1996_v36, %v672_v48  ;;  %v1919_v42 = vadd.f32 %v1918_v61, %v1917_v38  ;;  %v1999_v21 = vadd.f32 %v1998_v62, %v1997_v47  ;;  %v961_v1 = vsel %vm865_vm0, %v935_v19, 0.0  ;;  %v3273_v38 = vpop.permute.xlu1 %1145 }
 0x147   :  { %v1920_v16 = vpop.f32.mrf.mxu0  ;;  %v2000_v63 = vpop.f32.mrf.mxu1  ;;  %v1771_v47 = vadd.f32 %v3130_v13, %v3126_v11  ;;  %v1851_v48 = vadd.f32 %v3132_v14, %v3128_v12  ;;  %v1774_v11 = vadd.f32 %v3138_v17, %v3134_v15  ;;  %v3641_v13 = vld [vmem:[#allocation6_spill] sm:$0xff]  ;;  %v3642_v12 = vld [vmem:[#allocation7_spill] sm:$0xff] }
 0x148   :  { %v677_v0 = vadd.f32 %v1919_v42, %v532_v39  ;;  %v884_v2 = vsel %vm865_vm0, %v3244_v40, 0.0  ;;  %v936_v24 = vmul.f32 %v3244_v40, %v3244_v40  ;;  %v1854_v14 = vadd.f32 %v3642_v12, %v3641_v13 }
 0x149   :  { %v1921_v26 = vpop.f32.mrf.mxu0  ;;  %962 = vadd.xlane.f32.xlu1 %v961_v1  ;;  %885 = vadd.xlane.f32.xlu0 %v884_v2  ;;  %v2001_v27 = vpop.f32.mrf.mxu1 }
 0x14a   :  { %v3255_v53 = vadd.f32 %v1999_v21, %v677_v0  ;;  %v1922_v54 = vadd.f32 %v1921_v26, %v1920_v16  ;;  %v2002_v28 = vadd.f32 %v2001_v27, %v2000_v63  ;;  %v964_v46 = vsel %vm865_vm0, %v936_v24, 0.0 }
 0x14b   :  { %v1923_v30 = vpop.f32.mrf.mxu0  ;;  %v2003_v43 = vpop.f32.mrf.mxu1  ;;  %v552_v16 = vadd.f32 %v1851_v48, %v1771_v47  ;;  %v557_v51 = vadd.f32 %v1854_v14, %v1774_v11  ;;  %v1426_v14 = vld [vmem:[%s3622_s5] sm:$0xff] }
 0x14c   :  { %v682_v45 = vadd.f32 %v1922_v54, %v537_v25  ;;  %v887_v44 = vsel %vm865_vm0, %v3255_v53, 0.0  ;;  %v937_v31 = vmul.f32 %v3255_v53, %v3255_v53  ;;  %v3292_v25 = vpop.permute.xlu1 %1252 }
 0x14d   :  { %v1924_v5 = vpop.f32.mrf.mxu0  ;;  %888 = vadd.xlane.f32.xlu1 %v887_v44  ;;  %965 = vadd.xlane.f32.xlu0 %v964_v46  ;;  %v2004_v6 = vpop.f32.mrf.mxu1  ;;  %v3646_v44 = vld [vmem:[#allocation11_spill] sm:$0xff] }
 0x14e   :  { %v3266_v56 = vadd.f32 %v2002_v28, %v682_v45  ;;  %v1925_v57 = vadd.f32 %v1924_v5, %v1923_v30  ;;  %v2005_v58 = vadd.f32 %v2004_v6, %v2003_v43  ;;  %v967_v37 = vsel %vm865_vm0, %v937_v31, 0.0  ;;  %v3643_v28 = vld [vmem:[#allocation8_spill] sm:$0xff]  ;;  %v3644_v30 = vld [vmem:[#allocation10_spill] sm:$0xff]  ;;  %v3645_v45 = vld [vmem:[#allocation9_spill] sm:$0xff] }
 0x14f   :  { %v1926_v32 = vpop.f32.mrf.mxu0  ;;  %v2006_v34 = vpop.f32.mrf.mxu1  ;;  %v1777_v43 = vadd.f32 %v3644_v30, %v3643_v28  ;;  %v1857_v46 = vadd.f32 %v3646_v44, %v3645_v45 }
 0x150   :  { %v687_v20 = vadd.f32 %v1925_v57, %v542_v55  ;;  %v890_v7 = vsel %vm865_vm0, %v3266_v56, 0.0  ;;  %v938_v8 = vmul.f32 %v3266_v56, %v3266_v56  ;;  %v1428_v55 = vld [vmem:[%s3622_s5 + $0x10] sm:$0xff]  ;;  %v3317_v48 = vpop.permute.xlu1 %1257 }
 0x151   :  { %v1927_v10 = vpop.f32.mrf.mxu0  ;;  %968 = vadd.xlane.f32.xlu1 %v967_v37  ;;  %891 = vadd.xlane.f32.xlu0 %v890_v7  ;;  %v2007_v36 = vpop.f32.mrf.mxu1  ;;  %v3648_v37 = vld [vmem:[#allocation14_spill] sm:$0xff] }
 0x152   :  { %v3279_v49 = vadd.f32 %v2005_v58, %v687_v20  ;;  %v1928_v50 = vadd.f32 %v1927_v10, %v1926_v32  ;;  %v2008_v19 = vadd.f32 %v2007_v36, %v2006_v34  ;;  %v970_v18 = vsel %vm865_vm0, %v938_v8, 0.0  ;;  %2046 = vmatprep.subr.mxu0 %v1428_v55  ;;  %2077 = vmatprep.subr.mxu1 %v1428_v55  ;;  %v3647_v20 = vld [vmem:[#allocation12_spill] sm:$0xff]  ;;  %v3649_v8 = vld [vmem:[#allocation13_spill] sm:$0xff] }
 0x153   :  { %v1929_v59 = vpop.f32.mrf.mxu0  ;;  %v2009_v60 = vpop.f32.mrf.mxu1  ;;  %v1780_v7 = vadd.f32 %v3648_v37, %v3647_v20  ;;  %2047 = vmatpush3.msra.mxu0 %v1428_v55  ;;  %2081 = vmatpush3.msra.mxu1 %v1428_v55 }
 0x154   :  { %v692_v61 = vadd.f32 %v1928_v50, %v547_v9  ;;  %v893_v62 = vsel %vm865_vm0, %v3279_v49, 0.0  ;;  %v939_v39 = vmul.f32 %v3279_v49, %v3279_v49  ;;  %v3650_v9 = vld [vmem:[#allocation15_spill] sm:$0xff]  ;;  %v562_v50 = vadd.f32 %v1857_v46, %v1777_v43  ;;  %v3338_v28 = vpop.permute.xlu1 %1150 }
 0x155   :  { %v1930_v42 = vpop.f32.mrf.mxu0  ;;  %894 = vadd.xlane.f32.xlu1 %v893_v62  ;;  %971 = vadd.xlane.f32.xlu0 %v970_v18  ;;  %v2010_v21 = vpop.f32.mrf.mxu1  ;;  %v1860_v10 = vadd.f32 %v3650_v9, %v3649_v8 }
 0x156   :  { %v3290_v63 = vadd.f32 %v2008_v19, %v692_v61  ;;  %v1931_v0 = vadd.f32 %v1930_v42, %v1929_v59  ;;  %v2011_v1 = vadd.f32 %v2010_v21, %v2009_v60  ;;  %v973_v27 = vsel %vm865_vm0, %v939_v39, 0.0  ;;  %v1427_v60 = vld [vmem:[%s3622_s5 + $0x8] sm:$0xff]  ;;  %v3651_v21 = vld [vmem:[#allocation16_spill] sm:$0xff] }
 0x157   :  { %v1932_v2 = vpop.f32.mrf.mxu0  ;;  %v2012_v24 = vpop.f32.mrf.mxu1  ;;  %2048 = vmatprep.subr.mxu0 %v1427_v60  ;;  %2078 = vmatprep.subr.mxu1 %v1427_v60  ;;  %v567_v42 = vadd.f32 %v1860_v10, %v1780_v7 }
 0x158   :  { %v697_v26 = vadd.f32 %v1931_v0, %v552_v16  ;;  %v896_v15 = vsel %vm865_vm0, %v3290_v63, 0.0  ;;  %v940_v17 = vmul.f32 %v3290_v63, %v3290_v63  ;;  %2049 = vmatpush3.msra.mxu0 %v1427_v60  ;;  %2082 = vmatpush3.msra.mxu1 %v1427_v60  ;;  %v3652_v16 = vld [vmem:[#allocation18_spill] sm:$0xff]  ;;  %v3352_v20 = vpop.permute.xlu1 %1155  ;;  %v1248_v60 = vld [vmem:[%s3620_s3 + $0x70] sm:$0xff] }
 0x159   :  { %v1933_v52 = vpop.f32.mrf.mxu0  ;;  %974 = vadd.xlane.f32.xlu1 %v973_v27  ;;  %897 = vadd.xlane.f32.xlu0 %v896_v15  ;;  %v2013_v54 = vpop.f32.mrf.mxu1  ;;  %v1783_v0 = vadd.f32 %v3652_v16, %v3651_v21 }
 0x15a   :  { %v3303_v31 = vadd.f32 %v2011_v1, %v697_v26  ;;  %v1934_v3 = vadd.f32 %v1933_v52, %v1932_v2  ;;  %v2014_v4 = vadd.f32 %v2013_v54, %v2012_v24  ;;  %v976_v32 = vsel %vm865_vm0, %v940_v17, 0.0  ;;  %v3653_v24 = vld [vmem:[#allocation17_spill] sm:$0xff]  ;;  %v3654_v26 = vld [vmem:[#allocation19_spill] sm:$0xff]  ;;  %2050 = vmatprep.subr.mxu0 %v1426_v14  ;;  %2079 = vmatprep.subr.mxu1 %v1426_v14 }
 0x15b   :  { %v1935_v5 = vpop.f32.mrf.mxu0  ;;  %v2015_v6 = vpop.f32.mrf.mxu1  ;;  %v1863_v27 = vadd.f32 %v3654_v26, %v3653_v24  ;;  %2051 = vmatpush3.msra.mxu0 %v1426_v14  ;;  %2083 = vmatpush3.msra.mxu1 %v1426_v14 }
 0x15c   :  { %v702_v57 = vadd.f32 %v1934_v3, %v557_v51  ;;  %v899_v58 = vsel %vm865_vm0, %v3303_v31, 0.0  ;;  %v941_v34 = vmul.f32 %v3303_v31, %v3303_v31  ;;  %v3361_v10 = vpop.permute.xlu1 %1262 }
 0x15d   :  { %v1936_v36 = vpop.f32.mrf.mxu0  ;;  %900 = vadd.xlane.f32.xlu1 %v899_v58  ;;  %977 = vadd.xlane.f32.xlu0 %v976_v32  ;;  %v2016_v47 = vpop.f32.mrf.mxu1 }
 0x15e   :  { %v3319_v19 = vadd.f32 %v2014_v4, %v702_v57  ;;  %v1937_v59 = vadd.f32 %v1936_v36, %v1935_v5  ;;  %v2017_v61 = vadd.f32 %v2016_v47, %v2015_v6  ;;  %v979_v11 = vsel %vm865_vm0, %v941_v34, 0.0 }
 0x15f   :  { %v1938_v62 = vpop.f32.mrf.mxu0  ;;  %v2018_v18 = vpop.f32.mrf.mxu1  ;;  %v572_v4 = vadd.f32 %v1863_v27, %v1783_v0 }
 0x160   :  { %v707_v39 = vadd.f32 %v1937_v59, %v562_v50  ;;  %v902_v13 = vsel %vm865_vm0, %v3319_v19, 0.0  ;;  %v942_v12 = vmul.f32 %v3319_v19, %v3319_v19  ;;  %v3364_v47 = vpop.permute.xlu1 %1267  ;;  %v3366_v50 = vpop.permute.xlu0 %1140 }
 0x161   :  { %v1939_v1 = vpop.f32.mrf.mxu0  ;;  %980 = vadd.xlane.f32.xlu1 %v979_v11  ;;  %903 = vadd.xlane.f32.xlu0 %v902_v13  ;;  %v2019_v2 = vpop.f32.mrf.mxu1  ;;  %v1249_v11 = vld [vmem:[%s3620_s3 + $0x78] sm:$0xff] }
 0x162   :  { %v3336_v15 = vadd.f32 %v2017_v61, %v707_v39  ;;  %v1940_v17 = vadd.f32 %v1939_v1, %v1938_v62  ;;  %v2020_v51 = vadd.f32 %v2019_v2, %v2018_v18  ;;  %v982_v45 = vsel %vm865_vm0, %v942_v12, 0.0  ;;  %v1137_v62 = vld [vmem:[%s3619_s2 + $0x78] sm:$0xff]  ;;  %v1661_v39 = vld [vmem:[#allocation2] sm:$0x1] }
 0x163   :  { %v1941_v52 = vpop.f32.mrf.mxu0  ;;  %v2021_v54 = vpop.f32.mrf.mxu1 }
 0x164   :  { %v712_v30 = vadd.f32 %v1940_v17, %v567_v42  ;;  %v905_v43 = vsel %vm865_vm0, %v3336_v15, 0.0  ;;  %v943_v44 = vmul.f32 %v3336_v15, %v3336_v15  ;;  %v3368_v59 = vpop.permute.xlu1 %1160  ;;  %v3373_v61 = vpop.permute.xlu0 %1165 }
 0x165   :  { %v1942_v46 = vpop.f32.mrf.mxu0  ;;  %906 = vadd.xlane.f32.xlu1 %v905_v43  ;;  %983 = vadd.xlane.f32.xlu0 %v982_v45  ;;  %v2022_v3 = vpop.f32.mrf.mxu1 }
 0x166   :  { %v3345_v5 = vadd.f32 %v2020_v51, %v712_v30  ;;  %v1943_v6 = vadd.f32 %v1942_v46, %v1941_v52  ;;  %v2023_v55 = vadd.f32 %v2022_v3, %v2021_v54  ;;  %v985_v58 = vsel %vm865_vm0, %v943_v44, 0.0 }
 0x168   :  { %3655 = vst [vmem:[#allocation6_spill] sm:$0xff] %v3345_v5  ;;  %v717_v57 = vadd.f32 %v1943_v6, %v572_v4  ;;  %v908_v32 = vsel %vm865_vm0, %v3345_v5, 0.0  ;;  %v944_v34 = vmul.f32 %v3345_v5, %v3345_v5  ;;  %v3378_v18 = vpop.permute.xlu1 %1272  ;;  %v3383_v13 = vpop.permute.xlu0 %1277 }
 0x169   :  { %986 = vadd.xlane.f32.xlu1 %v985_v58  ;;  %909 = vadd.xlane.f32.xlu0 %v908_v32 }
 0x16a   :  { %v3354_v37 = vadd.f32 %v2023_v55, %v717_v57  ;;  %v988_v8 = vsel %vm865_vm0, %v944_v34, 0.0 }
 0x16c   :  { %3656 = vst [vmem:[#allocation7_spill] sm:$0xff] %v3354_v37  ;;  %v911_v7 = vsel %vm865_vm0, %v3354_v37, 0.0  ;;  %v945_v9 = vmul.f32 %v3354_v37, %v3354_v37  ;;  %v3385_v12 = vpop.permute.xlu1 %1170  ;;  %v3387_v14 = vpop.permute.xlu0 %1175 }
 0x16d   :  { %912 = vadd.xlane.f32.xlu1 %v911_v7  ;;  %989 = vadd.xlane.f32.xlu0 %v988_v8 }
 0x16e   :  { %v991_v36 = vsel %vm865_vm0, %v945_v9, 0.0 }
 0x170   :  { %v3389_v42 = vpop.permute.xlu1 %1282  ;;  %v3391_v21 = vpop.permute.xlu0 %1287 }
 0x171   :  { %992 = vadd.xlane.f32.xlu1 %v991_v36 }
 0x174   :  { %v3393_v16 = vpop.permute.xlu1 %1180  ;;  %v3395_v0 = vpop.permute.xlu0 %1185 }
 0x178   :  { %v3397_v1 = vpop.permute.xlu1 %1292  ;;  %v3399_v2 = vpop.permute.xlu0 %1297 }
 0x17c   :  { %v3401_v24 = vpop.permute.xlu1 %1190  ;;  %v3403_v26 = vpop.permute.xlu0 %1195 }
 0x180   :  { %v3405_v27 = vpop.permute.xlu1 %1302  ;;  %v3407_v17 = vpop.permute.xlu0 %1307 }
 0x182   :  { %1322 = vperm.xlu1 %2087, %v1248_v60  }
 0x183   :  { %1215 = vperm.xlu0 %2086, %v1137_v62  }
 0x184   :  { %v3409_v51 = vpop.permute.xlu1 %1200  ;;  %v3411_v52 = vpop.permute.xlu0 %1205 }
 0x185   :  { %3657 = vst [vmem:[#allocation8_spill] sm:$0xff] %v3411_v52 }
 0x186   :  { %1664 = vperm.xlu1 %2087, %v1661_v39  }
 0x187   :  { %1327 = vperm.xlu0 %2086, %v1249_v11  }
 0x188   :  { %v3413_v54 = vpop.permute.xlu1 %1312  ;;  %v3415_v30 = vpop.permute.xlu0 %1317 }
 0x189   :  { %3658 = vst [vmem:[#allocation10_spill] sm:$0xff] %v3413_v54  ;;  %3659 = vst [vmem:[#allocation9_spill] sm:$0xff] %v3415_v30 }
 0x18c   :  { %v3417_v43 = vpop.permute.xlu1 %1210 }
 0x18d   :  { %3660 = vst [vmem:[#allocation11_spill] sm:$0xff] %v3417_v43 }
 0x1ba   :  { %v868_v45 = vpop.xlane.xlu0 %867 }
 0x1bb   :  { %v914_v44 = vmul.f32 0.03125, %v868_v45 }
 0x1bc   :  { %v948_v46 = vpop.xlane.xlu1 %947 }
 0x1bd   :  { %v1010_v3 = vmul.f32 %v914_v44, %v914_v44  ;;  %v994_v4 = vmul.f32 0.03125, %v948_v46 }
 0x1be   :  { %v871_v6 = vpop.xlane.xlu0 %870 }
 0x1bf   :  { %v1026_v55 = vsub.f32 %v994_v4, %v1010_v3  ;;  %v915_v57 = vmul.f32 0.03125, %v871_v6 }
 0x1c0   :  { %v951_v58 = vpop.xlane.xlu1 %950 }
 0x1c1   :  { %v1042_v32 = vmax.f32 %v1026_v55, 0.0  ;;  %v1011_v34 = vmul.f32 %v915_v57, %v915_v57  ;;  %v995_v7 = vmul.f32 0.03125, %v951_v58 }
 0x1c2   :  { %v874_v8 = vpop.xlane.xlu0 %873 }
 0x1c3   :  { %v1074_v9 = vadd.f32 1e-05, %v1042_v32  ;;  %v1027_v36 = vsub.f32 %v995_v7, %v1011_v34  ;;  %v3419_v60 = vmul.f32 0.03125, %v874_v8 }
 0x1c5   :  { %2088 = vrsqrt.f32 %v1074_v9  ;;  %v1043_v62 = vmax.f32 %v1027_v36, 0.0  ;;  %v1012_v46 = vmul.f32 %v3419_v60, %v3419_v60 }
 0x1c6   :  { %v877_v39 = vpop.xlane.xlu1 %876  ;;  %v954_v11 = vpop.xlane.xlu0 %953 }
 0x1c7   :  { %v1075_v45 = vadd.f32 1e-05, %v1043_v62  ;;  %v3423_v43 = vmul.f32 0.03125, %v877_v39  ;;  %v996_v3 = vmul.f32 0.03125, %v954_v11 }
 0x1c9   :  { %2090 = vrsqrt.f32 %v1075_v45  ;;  %v1028_v4 = vsub.f32 %v996_v3, %v1012_v46  ;;  %v1013_v58 = vmul.f32 %v3423_v43, %v3423_v43 }
 0x1ca   :  { %v957_v6 = vpop.xlane.xlu1 %956  ;;  %v880_v55 = vpop.xlane.xlu0 %879 }
 0x1cb   :  { %v1044_v32 = vmax.f32 %v1028_v4, 0.0  ;;  %v997_v34 = vmul.f32 0.03125, %v957_v6  ;;  %v3427_v7 = vmul.f32 0.03125, %v880_v55  ;;  %v1058_v4 = vsub.f32 %v3176_v22, %v914_v44 }
 0x1cd   :  { %v1076_v8 = vadd.f32 1e-05, %v1044_v32  ;;  %v1029_v9 = vsub.f32 %v997_v34, %v1013_v58  ;;  %v1014_v36 = vmul.f32 %v3427_v7, %v3427_v7 }
 0x1ce   :  { %v883_v62 = vpop.xlane.xlu1 %882  ;;  %v960_v39 = vpop.xlane.xlu0 %959 }
 0x1cf   :  { %2092 = vrsqrt.f32 %v1076_v8  ;;  %v1045_v11 = vmax.f32 %v1029_v9, 0.0  ;;  %v3431_v45 = vmul.f32 0.03125, %v883_v62  ;;  %v998_v46 = vmul.f32 0.03125, %v960_v39 }
 0x1d0   :  { %v1059_v9 = vsub.f32 %v3186_v23, %v915_v57 }
 0x1d1   :  { %v1077_v3 = vadd.f32 1e-05, %v1045_v11  ;;  %v1030_v37 = vsub.f32 %v998_v46, %v1014_v36  ;;  %v1015_v58 = vmul.f32 %v3431_v45, %v3431_v45 }
 0x1d2   :  { %v2089_v30 = vpop.eup %2088  ;;  %v963_v6 = vpop.xlane.xlu1 %962 }
 0x1d3   :  { %v886_v55 = vpop.xlane.xlu0 %885  ;;  %2094 = vrsqrt.f32 %v1077_v3  ;;  %v1046_v32 = vmax.f32 %v1030_v37, 0.0  ;;  %v999_v34 = vmul.f32 0.03125, %v963_v6  ;;  %v1106_v8 = vmul.f32 %v2089_v30, %v1058_v4 }
 0x1d4   :  { %v3436_v5 = vmul.f32 0.03125, %v886_v55 }
 0x1d5   :  { %v1078_v62 = vadd.f32 1e-05, %v1046_v32  ;;  %v1031_v39 = vsub.f32 %v999_v34, %v1015_v58  ;;  %v1218_v22 = vmul.f32 %v3366_v50, %v1106_v8  ;;  %v1394_v34 = vld [vmem:[%s3621_s4] sm:$0xff] }
 0x1d6   :  { %v2091_v11 = vpop.eup %2090  ;;  %v889_v36 = vpop.xlane.xlu1 %888  ;;  %v1016_v37 = vmul.f32 %v3436_v5, %v3436_v5 }
 0x1d7   :  { %v966_v46 = vpop.xlane.xlu0 %965  ;;  %v1107_v44 = vmul.f32 %v2091_v11, %v1059_v9  ;;  %2096 = vrsqrt.f32 %v1078_v62  ;;  %v1047_v3 = vmax.f32 %v1031_v39, 0.0  ;;  %v3440_v52 = vmul.f32 0.03125, %v889_v36 }
 0x1d8   :  { %v1000_v6 = vmul.f32 0.03125, %v966_v46  ;;  %v1330_v30 = vadd.f32 %v3292_v25, %v1218_v22  ;;  %v1060_v62 = vsub.f32 %v3197_v33, %v3419_v60  ;;  %v1395_v33 = vld [vmem:[%s3621_s4 + $0x8] sm:$0xff] }
 0x1d9   :  { %v1219_v23 = vmul.f32 %v3273_v38, %v1107_v44  ;;  %v1079_v57 = vadd.f32 1e-05, %v1047_v3  ;;  %v1017_v4 = vmul.f32 %v3440_v52, %v3440_v52 }
 0x1da   :  { %v1032_v55 = vsub.f32 %v1000_v6, %v1016_v37  ;;  %v969_v58 = vpop.xlane.xlu1 %968  ;;  %vm1346_vm1 = vcmp.gt.f32.partialorder %v1330_v30, 0.0  ;;  %v1362_v32 = vmul.f32 0.2, %v1330_v30 }
 0x1db   :  { %v892_v50 = vpop.xlane.xlu0 %891  ;;  %v1331_v8 = vadd.f32 %v3317_v48, %v1219_v23  ;;  %2098 = vrsqrt.f32 %v1079_v57  ;;  %v1001_v9 = vmul.f32 0.03125, %v969_v58 }
 0x1dc   :  { %v3452_v25 = vmul.f32 0.03125, %v892_v50  ;;  %v2093_v38 = vpop.eup %2092  ;;  %v1048_v39 = vmax.f32 %v1032_v55, 0.0  ;;  %v1378_v11 = vsel %vm1346_vm1, %v1330_v30, %v1362_v32  ;;  %v1061_v30 = vsub.f32 %v3208_v41, %v3423_v43 }
 0x1dd   :  { %v1033_v36 = vsub.f32 %v1001_v9, %v1017_v4  ;;  %v1410_v46 = vmul.f32 %v1394_v34, %v1378_v11  ;;  %vm1347_vm2 = vcmp.gt.f32.partialorder %v1331_v8, 0.0  ;;  %v1363_v37 = vmul.f32 0.2, %v1331_v8 }
 0x1de   :  { %v1080_v22 = vadd.f32 1e-05, %v1048_v39  ;;  %v895_v44 = vpop.xlane.xlu1 %894  ;;  %v1108_v6 = vmul.f32 %v2093_v38, %v1060_v62  ;;  %v1018_v48 = vmul.f32 %v3452_v25, %v3452_v25 }
 0x1df   :  { %v972_v3 = vpop.xlane.xlu0 %971  ;;  %v1049_v54 = vmax.f32 %v1033_v36, 0.0  ;;  %v3458_v23 = vmul.f32 0.03125, %v895_v44  ;;  %2052 = vmatprep.mubr.msk.f32.mxu0 %vm865_vm0, %v1410_v46  ;;  %v1379_v4 = vsel %vm1347_vm2, %v1331_v8, %v1363_v37  ;;  %v1063_v8 = vsub.f32 %v3230_v35, %v3431_v45  ;;  %v1396_v44 = vld [vmem:[%s3621_s4 + $0x10] sm:$0xff] }
 0x1e0   :  { %v1002_v57 = vmul.f32 0.03125, %v972_v3  ;;  %v2095_v60 = vpop.eup %2094  ;;  %2100 = vrsqrt.f32 %v1080_v22  ;;  %v1220_v55 = vmul.f32 %v3338_v28, %v1108_v6  ;;  %v1411_v9 = vmul.f32 %v1395_v33, %v1379_v4 }
 0x1e1   :  { %v1081_v58 = vadd.f32 1e-05, %v1049_v54  ;;  %v1019_v32 = vmul.f32 %v3458_v23, %v3458_v23  ;;  %v1109_v39 = vmul.f32 %v2095_v60, %v1061_v30  ;;  %v1062_v28 = vsub.f32 %v3219_v29, %v3427_v7 }
 0x1e2   :  { %v1034_v50 = vsub.f32 %v1002_v57, %v1018_v48  ;;  %v975_v34 = vpop.xlane.xlu1 %974  ;;  %v1332_v62 = vadd.f32 %v3361_v10, %v1220_v55  ;;  %2053 = vmatmul.mubr.msk.f32.vlgmr.msra.gmra.mxu0 %vm865_vm0, %v1411_v9  ;;  %v1064_v4 = vsub.f32 %v3244_v40, %v3436_v5  ;;  %vm1623_vm2 = vcmask 15360  }
 0x1e3   :  { %v898_v38 = vpop.xlane.xlu0 %897  ;;  %2102 = vrsqrt.f32 %v1081_v58  ;;  %v1003_v36 = vmul.f32 0.03125, %v975_v34  ;;  %v1221_v43 = vmul.f32 %v3352_v20, %v1109_v39 }
 0x1e4   :  { %v1050_v11 = vmax.f32 %v1034_v50, 0.0  ;;  %v3470_v46 = vmul.f32 0.03125, %v898_v38  ;;  %v2097_v41 = vpop.eup %2096  ;;  %vm1348_vm3 = vcmp.gt.f32.partialorder %v1332_v62, 0.0  ;;  %v1364_v54 = vmul.f32 0.2, %v1332_v62 }
 0x1e5   :  { %v1035_v22 = vsub.f32 %v1003_v36, %v1019_v32  ;;  %v1333_v6 = vadd.f32 %v3364_v47, %v1221_v43  ;;  %v1110_v48 = vmul.f32 %v2097_v41, %v1062_v28  ;;  %v1397_v47 = vld [vmem:[%s3621_s4 + $0x18] sm:$0xff]  ;;  %v1065_v28 = vsub.f32 %v3255_v53, %v3440_v52 }
 0x1e6   :  { %v1082_v10 = vadd.f32 1e-05, %v1050_v11  ;;  %v1020_v3 = vmul.f32 %v3470_v46, %v3470_v46  ;;  %v901_v37 = vpop.xlane.xlu1 %900  ;;  %v1380_v7 = vsel %vm1348_vm3, %v1332_v62, %v1364_v54 }
 0x1e7   :  { %v978_v29 = vpop.xlane.xlu0 %977  ;;  %v1051_v20 = vmax.f32 %v1035_v22, 0.0  ;;  %v3484_v57 = vmul.f32 0.03125, %v901_v37  ;;  %v1412_v33 = vmul.f32 %v1396_v44, %v1380_v7  ;;  %vm1349_vm4 = vcmp.gt.f32.partialorder %v1333_v6, 0.0 }
 0x1e8   :  { %2104 = vrsqrt.f32 %v1082_v10  ;;  %v1004_v35 = vmul.f32 0.03125, %v978_v29  ;;  %v2099_v45 = vpop.eup %2098  ;;  %v1365_v60 = vmul.f32 0.2, %v1333_v6  ;;  %v1222_v30 = vmul.f32 %v3368_v59, %v1110_v48 }
 0x1e9   :  { %v1083_v55 = vadd.f32 1e-05, %v1051_v20  ;;  %v1021_v50 = vmul.f32 %v3484_v57, %v3484_v57  ;;  %2055 = vmatprep.mubr.msk.f32.mxu0 %vm865_vm0, %v1412_v33  ;;  %v1111_v59 = vmul.f32 %v2099_v45, %v1063_v8  ;;  %v1066_v20 = vsub.f32 %v3266_v56, %v3452_v25 }
 0x1ea   :  { %v1036_v58 = vsub.f32 %v1004_v35, %v1020_v3  ;;  %v981_v32 = vpop.xlane.xlu1 %980  ;;  %v1381_v9 = vsel %vm1349_vm4, %v1333_v6, %v1365_v60  ;;  %v1334_v38 = vadd.f32 %v3378_v18, %v1222_v30  ;;  %v1398_v18 = vld [vmem:[%s3621_s4 + $0x20] sm:$0xff] }
 0x1eb   :  { %v904_v34 = vpop.xlane.xlu0 %903  ;;  %2106 = vrsqrt.f32 %v1083_v55  ;;  %v1005_v40 = vmul.f32 0.03125, %v981_v32  ;;  %v1413_v39 = vmul.f32 %v1397_v47, %v1381_v9  ;;  %v1223_v36 = vmul.f32 %v3373_v61, %v1111_v59 }
 0x1ec   :  { %v1052_v62 = vmax.f32 %v1036_v58, 0.0  ;;  %v3496_v5 = vmul.f32 0.03125, %v904_v34  ;;  %vm1350_vm5 = vcmp.gt.f32.partialorder %v1334_v38, 0.0  ;;  %v1366_v11 = vmul.f32 0.2, %v1334_v38 }
 0x1ed   :  { %v2101_v41 = vpop.eup %2100  ;;  %v1037_v43 = vsub.f32 %v1005_v40, %v1021_v50  ;;  %2056 = vmatmul.mubr.msk.f32.gmra.mxu0 %vm865_vm0, %v1413_v39  ;;  %v1335_v61 = vadd.f32 %v3383_v13, %v1223_v36  ;;  %v1399_v13 = vld [vmem:[%s3621_s4 + $0x28] sm:$0xff]  ;;  %v1067_v9 = vsub.f32 %v3279_v49, %v3458_v23 }
 0x1ee   :  { %v1084_v54 = vadd.f32 1e-05, %v1052_v62  ;;  %v1022_v8 = vmul.f32 %v3496_v5, %v3496_v5  ;;  %v907_v10 = vpop.xlane.xlu1 %906  ;;  %v1382_v44 = vsel %vm1350_vm5, %v1334_v38, %v1366_v11  ;;  %v1112_v3 = vmul.f32 %v2101_v41, %v1064_v4 }
 0x1ef   :  { %v984_v22 = vpop.xlane.xlu0 %983  ;;  %v1053_v37 = vmax.f32 %v1037_v43, 0.0  ;;  %v3508_v53 = vmul.f32 0.03125, %v907_v10  ;;  %v1414_v7 = vmul.f32 %v1398_v18, %v1382_v44  ;;  %vm1351_vm6 = vcmp.gt.f32.partialorder %v1335_v61, 0.0  ;;  %v1401_v18 = vld [vmem:[%s3621_s4 + $0x38] sm:$0xff] }
 0x1f0   :  { %2108 = vrsqrt.f32 %v1084_v54  ;;  %v1006_v52 = vmul.f32 0.03125, %v984_v22  ;;  %v2103_v29 = vpop.eup %2102  ;;  %v1367_v6 = vmul.f32 0.2, %v1335_v61  ;;  %v1224_v48 = vmul.f32 %v3385_v12, %v1112_v3 }
 0x1f1   :  { %v1085_v35 = vadd.f32 1e-05, %v1053_v37  ;;  %v1023_v33 = vmul.f32 %v3508_v53, %v3508_v53  ;;  %2058 = vmatprep.mubr.msk.f32.mxu0 %vm865_vm0, %v1414_v7  ;;  %v1113_v12 = vmul.f32 %v2103_v29, %v1065_v28 }
 0x1f2   :  { %v1038_v45 = vsub.f32 %v1006_v52, %v1022_v8  ;;  %v987_v60 = vpop.xlane.xlu1 %986  ;;  %v1383_v4 = vsel %vm1351_vm6, %v1335_v61, %v1367_v6  ;;  %v1336_v55 = vadd.f32 %v3389_v42, %v1224_v48  ;;  %v1400_v42 = vld [vmem:[%s3621_s4 + $0x30] sm:$0xff] }
 0x1f3   :  { %v910_v30 = vpop.xlane.xlu0 %909  ;;  %2110 = vrsqrt.f32 %v1085_v35  ;;  %v1007_v56 = vmul.f32 0.03125, %v987_v60  ;;  %v1415_v50 = vmul.f32 %v1399_v13, %v1383_v4  ;;  %v1225_v34 = vmul.f32 %v3387_v14, %v1113_v12  ;;  %v1403_v4 = vld [vmem:[%s3621_s4 + $0x48] sm:$0xff] }
 0x1f4   :  { %v1054_v58 = vmax.f32 %v1038_v45, 0.0  ;;  %v3520_v25 = vmul.f32 0.03125, %v910_v30  ;;  %vm1352_vm7 = vcmp.gt.f32.partialorder %v1336_v55, 0.0  ;;  %v1368_v32 = vmul.f32 0.2, %v1336_v55 }
 0x1f5   :  { %v2105_v47 = vpop.eup %2104  ;;  %v1039_v59 = vsub.f32 %v1007_v56, %v1023_v33  ;;  %2059 = vmatmul.mubr.msk.f32.gmra.mxu0 %vm865_vm0, %v1415_v50  ;;  %v1337_v36 = vadd.f32 %v3391_v21, %v1225_v34  ;;  %v1068_v21 = vsub.f32 %v3290_v63, %v3470_v46  ;;  %v1402_v46 = vld [vmem:[%s3621_s4 + $0x40] sm:$0xff] }
 0x1f6   :  { %v1086_v38 = vadd.f32 1e-05, %v1054_v58  ;;  %v1024_v62 = vmul.f32 %v3520_v25, %v3520_v25  ;;  %v913_v40 = vpop.xlane.xlu1 %912  ;;  %v1384_v11 = vsel %vm1352_vm7, %v1336_v55, %v1368_v32  ;;  %v1114_v14 = vmul.f32 %v2105_v47, %v1066_v20 }
 0x1f7   :  { %v990_v39 = vpop.xlane.xlu0 %989  ;;  %v1055_v41 = vmax.f32 %v1039_v59, 0.0  ;;  %v3532_v49 = vmul.f32 0.03125, %v913_v40  ;;  %v1416_v54 = vmul.f32 %v1400_v42, %v1384_v11  ;;  %vm1353_vm8 = vcmp.gt.f32.partialorder %v1337_v36, 0.0 }
 0x1f8   :  { %2112 = vrsqrt.f32 %v1086_v38  ;;  %v1008_v23 = vmul.f32 0.03125, %v990_v39  ;;  %v2107_v28 = vpop.eup %2106  ;;  %v1369_v43 = vmul.f32 0.2, %v1337_v36  ;;  %v1226_v8 = vmul.f32 %v3393_v16, %v1114_v14  ;;  %v3661_v39 = vld [vmem:[#allocation10_spill] sm:$0xff]  ;;  %v3662_v14 = vld [vmem:[#allocation8_spill] sm:$0xff] }
 0x1f9   :  { %v1115_v10 = vmul.f32 %v2107_v28, %v1067_v9  ;;  %v1087_v22 = vadd.f32 1e-05, %v1055_v41  ;;  %v1025_v44 = vmul.f32 %v3532_v49, %v3532_v49  ;;  %2061 = vmatprep.mubr.msk.f32.mxu0 %vm865_vm0, %v1416_v54  ;;  %v1070_v47 = vsub.f32 %v3319_v19, %v3496_v5 }
 0x1fa   :  { %v1040_v61 = vsub.f32 %v1008_v23, %v1024_v62  ;;  %v993_v3 = vpop.xlane.xlu1 %992  ;;  %v1385_v37 = vsel %vm1353_vm8, %v1337_v36, %v1369_v43  ;;  %v1338_v52 = vadd.f32 %v3397_v1, %v1226_v8  ;;  %v3663_v23 = vld [vmem:[#allocation6_spill] sm:$0xff]  ;;  %v3664_v43 = vld [vmem:[#allocation9_spill] sm:$0xff] }
 0x1fb   :  { %v1227_v29 = vmul.f32 %v3395_v0, %v1115_v10  ;;  %2114 = vrsqrt.f32 %v1087_v22  ;;  %v1009_v7 = vmul.f32 0.03125, %v993_v3  ;;  %v1417_v16 = vmul.f32 %v1401_v18, %v1385_v37  ;;  %v3665_v22 = vld [vmem:[#allocation7_spill] sm:$0xff] }
 0x1fc   :  { %v1056_v48 = vmax.f32 %v1040_v61, 0.0  ;;  %vm1354_vm9 = vcmp.gt.f32.partialorder %v1338_v52, 0.0  ;;  %v1370_v63 = vmul.f32 0.2, %v1338_v52  ;;  %v1069_v0 = vsub.f32 %v3303_v31, %v3484_v57  ;;  %v1407_v3 = vld [vmem:[%s3621_s4 + $0x68] sm:$0xff] }
 0x1fd   :  { %v2109_v6 = vpop.eup %2108  ;;  %v1339_v20 = vadd.f32 %v3399_v2, %v1227_v29  ;;  %v1041_v35 = vsub.f32 %v1009_v7, %v1025_v44  ;;  %2062 = vmatmul.mubr.msk.f32.gmra.mxu0 %vm865_vm0, %v1417_v16  ;;  %v1072_v28 = vsub.f32 %v3663_v23, %v3520_v25  ;;  %v1073_v44 = vsub.f32 %v3665_v22, %v3532_v49  ;;  %v3666_v25 = vld [vmem:[#allocation11_spill] sm:$0xff] }
 0x1fe   :  { %v1116_v45 = vmul.f32 %v2109_v6, %v1068_v21  ;;  %v1088_v1 = vadd.f32 1e-05, %v1056_v48  ;;  %v1386_v13 = vsel %vm1354_vm9, %v1338_v52, %v1370_v63  ;;  %v1216_v10 = vpop.permute.xlu0 %1215  ;;  %v1323_v29 = vpop.permute.xlu1 %1322  ;;  %v1408_v49 = vld [vmem:[%s3621_s4 + $0x70] sm:$0xff] }
 0x1ff   :  { %v1057_v33 = vmax.f32 %v1041_v35, 0.0  ;;  %v1418_v60 = vmul.f32 %v1402_v46, %v1386_v13  ;;  %vm1355_vm10 = vcmp.gt.f32.partialorder %v1339_v20, 0.0  ;;  %v1371_v30 = vmul.f32 0.2, %v1339_v20 }
 0x200   :  { %v2111_v55 = vpop.eup %2110  ;;  %2116 = vrsqrt.f32 %v1088_v1  ;;  %v1228_v2 = vmul.f32 %v3401_v24, %v1116_v45  ;;  %v1404_v24 = vld [vmem:[%s3621_s4 + $0x50] sm:$0xff]  ;;  %v1409_v1 = vld [vmem:[%s3621_s4 + $0x78] sm:$0xff] }
 0x201   :  { %v1089_v12 = vadd.f32 1e-05, %v1057_v33  ;;  %2064 = vmatprep.mubr.msk.f32.mxu1 %vm865_vm0, %v1418_v60  ;;  %v1387_v58 = vsel %vm1355_vm10, %v1339_v20, %v1371_v30  ;;  %v1117_v56 = vmul.f32 %v2111_v55, %v1069_v0 }
 0x202   :  { %v1419_v31 = vmul.f32 %v1403_v4, %v1387_v58  ;;  %v1340_v57 = vadd.f32 %v3405_v27, %v1228_v2  ;;  %v1071_v27 = vsub.f32 %v3336_v15, %v3508_v53  ;;  %v1406_v53 = vld [vmem:[%s3621_s4 + $0x60] sm:$0xff]  ;;  %v1328_v20 = vpop.permute.xlu0 %1327 }
 0x203   :  { %2118 = vrsqrt.f32 %v1089_v12  ;;  %v1229_v50 = vmul.f32 %v3403_v26, %v1117_v56  ;;  %v1405_v26 = vld [vmem:[%s3621_s4 + $0x58] sm:$0xff]  ;;  %s2143_s4 = smov [#allocation3]  }
 0x204   :  { %2065 = vmatmul.mubr.msk.f32.vlgmr.msra.gmra.mxu1 %vm865_vm0, %v1419_v31  ;;  %vm1356_vm11 = vcmp.gt.f32.partialorder %v1340_v57, 0.0  ;;  %v1372_v34 = vmul.f32 0.2, %v1340_v57  ;;  %s1680_s25 = sshll.u32 %s2143_s4, 4  ;;  %s1681_s25 = int_to_ptr.vmem [resolvable:$true] %s1680_s25 }
 0x205   :  { %v2113_v32 = vpop.eup %2112  ;;  %v1341_v9 = vadd.f32 %v3407_v17, %v1229_v50  ;;  %s2120_s26 = scalar_lea.vmem %s1681_s25, 16  ;;  %s2124_s27 = scalar_lea.vmem %s1681_s25, 32 }
 0x206   :  { %v1118_v38 = vmul.f32 %v2113_v32, %v1070_v47  ;;  %v1388_v59 = vsel %vm1356_vm11, %v1340_v57, %v1372_v34  ;;  %p2121_p0 = scmp.ne.s32.totalorder %s1681_s25, %s2120_s26  ;;  %p2125_p1 = scmp.lt.s32.totalorder %s1681_s25, %s1681_s25 }
 0x207   :  { %v1420_v19 = vmul.f32 %v1404_v24, %v1388_v59  ;;  %vm1357_vm12 = vcmp.gt.f32.partialorder %v1341_v9, 0.0  ;;  %v1373_v5 = vmul.f32 0.2, %v1341_v9  ;;  %p2126_p2 = scmp.lt.s32.totalorder %s2124_s27, %s2120_s26 }
 0x208   :  { %v1230_v42 = vmul.f32 %v3409_v51, %v1118_v38  ;;  %v2115_v62 = vpop.eup %2114 }
 0x209   :  { %2067 = vmatprep.mubr.msk.f32.mxu1 %vm865_vm0, %v1420_v19  ;;  %v1389_v40 = vsel %vm1357_vm12, %v1341_v9, %v1373_v5  ;;  %v1119_v11 = vmul.f32 %v2115_v62, %v1071_v27  ;;  %p2127_p3 = por %p2126_p2, %p2125_p1 }
 0x20a   :  { %v1342_v17 = vadd.f32 %v3661_v39, %v1230_v42  ;;  %v1421_v36 = vmul.f32 %v1405_v26, %v1389_v40 }
 0x20b   :  { %v1231_v41 = vmul.f32 %v3662_v14, %v1119_v11  ;;  %p2128_p4 = pnand %p2127_p3, %p2121_p0 }
 0x20c   :  { %vm1358_vm13 = vcmp.gt.f32.partialorder %v1342_v17, 0.0  ;;  %v1374_v15 = vmul.f32 0.2, %v1342_v17  ;;  %2068 = vmatmul.mubr.msk.f32.gmra.mxu1 %vm865_vm0, %v1421_v36 }
 0x20d   :  { %v2117_v51 = vpop.eup %2116  ;;  %v1343_v18 = vadd.f32 %v3664_v43, %v1231_v41 }
 0x20e   :  { %v1390_v54 = vsel %vm1358_vm13, %v1342_v17, %v1374_v15  ;;  %v1120_v8 = vmul.f32 %v2117_v51, %v1072_v28 }
 0x20f   :  { %v1422_v21 = vmul.f32 %v1406_v53, %v1390_v54  ;;  %vm1359_vm14 = vcmp.gt.f32.partialorder %v1343_v18, 0.0  ;;  %v1375_v61 = vmul.f32 0.2, %v1343_v18 }
 0x210   :  { %v2119_v37 = vpop.eup %2118  ;;  %v1232_v52 = vmul.f32 %v3666_v25, %v1120_v8  ;;  %v1667_v25 = vlaneseq }
 0x211   :  { %2070 = vmatprep.mubr.msk.f32.mxu1 %vm865_vm0, %v1422_v21  ;;  %v1121_v7 = vmul.f32 %v2119_v37, %v1073_v44  ;;  %v1391_v16 = vsel %vm1359_vm14, %v1343_v18, %v1375_v61 }
 0x212   :  { %v1344_v6 = vadd.f32 %v1323_v29, %v1232_v52  ;;  %v1423_v48 = vmul.f32 %v1407_v3, %v1391_v16 }
 0x213   :  { %v1233_v63 = vmul.f32 %v1216_v10, %v1121_v7  ;;  %v1668_v7 = vshrl.u32 %v1667_v25, 7 }
 0x214   :  { %vm1360_vm15 = vcmp.gt.f32.partialorder %v1344_v6, 0.0  ;;  %v1376_v46 = vmul.f32 0.2, %v1344_v6  ;;  %2071 = vmatmul.mubr.msk.f32.gmra.mxu1 %vm865_vm0, %v1423_v48 }
 0x215   :  { %v1345_v35 = vadd.f32 %v1328_v20, %v1233_v63  ;;  %v1669_v48 = vsub.s32 0, %v1668_v7 }
 0x216   :  { %v1392_v45 = vsel %vm1360_vm15, %v1344_v6, %v1376_v46 }
 0x217   :  { %v1424_v0 = vmul.f32 %v1408_v49, %v1392_v45  ;;  %vm1361_vm1 = vcmp.gt.f32.partialorder %v1345_v35, 0.0  ;;  %v1377_v13 = vmul.f32 0.2, %v1345_v35  ;;  %v1665_v49 = vpop.permute.xlu1 %1664 }
 0x218   :  { %v1670_v20 = vrot.slane %v1665_v49, %v1669_v48 }
 0x219   :  { %v1393_v33 = vsel %vm1361_vm1, %v1345_v35, %v1377_v13  ;;  %2073 = vmatprep.mubr.msk.f32.mxu1 %vm865_vm0, %v1424_v0 }
 0x21a   :  { %v1425_v60 = vmul.f32 %v1409_v1, %v1393_v33 }
 0x21c   :  { %2074 = vmatmul.mubr.msk.f32.gmra.mxu1 %vm865_vm0, %v1425_v60  ;;  %vm1672_vm0 = vcmask 8192  }
 0x2a2   :  { %v2054_v30 = vpop.f32.mrf.mxu0 }
 0x2a3   :  { %v1625_v56 = vsel %vm1623_vm2, %v2054_v30, 0.0 }
 0x2a4   :  { %v1544_v4 = vpop.f32.mrf.mxu0 }
 0x2a5   :  { %v1624_v12 = vsel %vm1623_vm2, %v1544_v4, 0.0 }
 0x2a6   :  { %v1626_v57 = vadd.f32 %v1625_v56, %v1624_v12 }
 0x2ad   :  { %v2057_v55 = vpop.f32.mrf.mxu0 }
 0x2ae   :  { %v1629_v34 = vsel %vm1623_vm2, %v2057_v55, 0.0 }
 0x2af   :  { %v1554_v2 = vpop.f32.mrf.mxu0 }
 0x2b0   :  { %v1627_v31 = vsel %vm1623_vm2, %v1554_v2, 0.0 }
 0x2b1   :  { %v1628_v47 = vadd.f32 %v1627_v31, %v1626_v57 }
 0x2b3   :  { %v1630_v9 = vadd.f32 %v1629_v34, %v1628_v47 }
 0x2b5   :  { %v2060_v58 = vpop.f32.mrf.mxu0 }
 0x2b6   :  { %v1633_v19 = vsel %vm1623_vm2, %v2060_v58, 0.0 }
 0x2b7   :  { %v1564_v50 = vpop.f32.mrf.mxu0 }
 0x2b8   :  { %v1631_v24 = vsel %vm1623_vm2, %v1564_v50, 0.0 }
 0x2b9   :  { %v1632_v38 = vadd.f32 %v1631_v24, %v1630_v9 }
 0x2bb   :  { %v1634_v26 = vadd.f32 %v1633_v19, %v1632_v38 }
 0x2bd   :  { %v2063_v32 = vpop.f32.mrf.mxu0 }
 0x2be   :  { %v1637_v40 = vsel %vm1623_vm2, %v2063_v32, 0.0 }
 0x2bf   :  { %v1574_v27 = vpop.f32.mrf.mxu0 }
 0x2c0   :  { %v1635_v5 = vsel %vm1623_vm2, %v1574_v27, 0.0 }
 0x2c1   :  { %v1636_v42 = vadd.f32 %v1635_v5, %v1634_v26 }
 0x2c3   :  { %v1638_v17 = vadd.f32 %v1637_v40, %v1636_v42 }
 0x2c4   :  { %v2066_v59 = vpop.f32.mrf.mxu1 }
 0x2c5   :  { %v1641_v53 = vsel %vm1623_vm2, %v2066_v59, 0.0 }
 0x2c6   :  { %v1584_v62 = vpop.f32.mrf.mxu1 }
 0x2c7   :  { %v1639_v39 = vsel %vm1623_vm2, %v1584_v62, 0.0 }
 0x2c8   :  { %v1640_v36 = vadd.f32 %v1639_v39, %v1638_v17 }
 0x2ca   :  { %v1642_v41 = vadd.f32 %v1641_v53, %v1640_v36 }
 0x2cc   :  { %v2069_v11 = vpop.f32.mrf.mxu1 }
 0x2cd   :  { %v1645_v54 = vsel %vm1623_vm2, %v2069_v11, 0.0 }
 0x2ce   :  { %v1594_v15 = vpop.f32.mrf.mxu1 }
 0x2cf   :  { %v1643_v14 = vsel %vm1623_vm2, %v1594_v15, 0.0 }
 0x2d0   :  { %v1644_v23 = vadd.f32 %v1643_v14, %v1642_v41 }
 0x2d2   :  { %v1646_v18 = vadd.f32 %v1645_v54, %v1644_v23 }
 0x2d4   :  { %v2072_v28 = vpop.f32.mrf.mxu1 }
 0x2d5   :  { %v1649_v21 = vsel %vm1623_vm2, %v2072_v28, 0.0 }
 0x2d6   :  { %v1604_v51 = vpop.f32.mrf.mxu1 }
 0x2d7   :  { %v1647_v43 = vsel %vm1623_vm2, %v1604_v51, 0.0 }
 0x2d8   :  { %v1648_v8 = vadd.f32 %v1647_v43, %v1646_v18 }
 0x2da   :  { %v1650_v44 = vadd.f32 %v1649_v21, %v1648_v8 }
 0x2dc   :  { %v2075_v10 = vpop.f32.mrf.mxu1 }
 0x2dd   :  { %v1653_v37 = vsel %vm1623_vm2, %v2075_v10, 0.0 }
 0x2de   :  { %v1614_v22 = vpop.f32.mrf.mxu1 }
 0x2df   :  { %v1651_v61 = vsel %vm1623_vm2, %v1614_v22, 0.0 }
 0x2e0   :  { %v1652_v3 = vadd.f32 %v1651_v61, %v1650_v44 }
 0x2e2   :  { %v1654_v52 = vadd.f32 %v1653_v37, %v1652_v3 }
 0x2e4   :  { %v1655_v29 = vrot.slane %v1654_v52, 4 }
 0x2e6   :  { %v1656_v16 = vadd.f32 %v1655_v29, %v1654_v52 }
 0x2e8   :  { %v1657_v6 = vrot.slane %v1656_v16, 2 }
 0x2ea   :  { %v1658_v63 = vadd.f32 %v1657_v6, %v1656_v16 }
 0x2ec   :  { %v1659_v46 = vrot.slane %v1658_v63, 1 }
 0x2ee   :  { %v1660_v35 = vadd.f32 %v1659_v46, %v1658_v63 }
 0x2f0   :  { %v1671_v45 = vadd.f32 %v1670_v20, %v1660_v35 }
 0x2f2   :  { %1673 = vst.msk [vmem:[#allocation3] sm:$0x1] %vm1672_vm0, %v1671_v45 }
 0x2f3   :  { %2131 = shalt.err (!%p2128_p4)
}
 0x2f4   :  { %1683 = dma.vmem_to_hbm [thread:$0]  %s1681_s25, 16, %s3624_s7, [#allocation4]  }
 0x2f5   :  { %2140 = dma.done.wait [#allocation4], 16  }
 0x2f6   :  { %2141 = vsyncadd [#allocation4], 4294967280 }
 0x2f7   :  { %1687 = vsyncpa [#allocation4], 1 }

</bundles_post_ra>
